<compile_context>
chip_gen: v7x
topology: tpu7x:2x2x1
jax: 0.10.0
libtpu: 0.0.40
codegen_flags: <defaults>
</compile_context>

<pallas_src>
from functools import partial

import jax
import jax.numpy as jnp
import numpy as np
from jax.experimental import pallas as pl
from jax.experimental.pallas import tpu as pltpu


def _ssa_kernel(num_heads, head_dim, matmul_dtype,
                x_ref, wq_ref, bq_ref, wk_ref, bk_ref, wv_ref, bv_ref,
                wp_ref, bp_ref, o_ref, y_sc):
    # x_ref is (N, C) thanks to the squeezed leading batch dim.
    x = x_ref[...]  # already cast to matmul_dtype on the host side

    def lin_relu(w_ref, b_ref):
        # Linear + folded eval-mode BN (inside w/b) + ReLU ("LIF").
        y = jax.lax.dot_general(
            x, w_ref[...],
            (((1,), (0,)), ((), ())),
            preferred_element_type=jnp.float32)
        return jnp.maximum(y + b_ref[...], 0.0)       # f32 (N, C)

    q = lin_relu(wq_ref, bq_ref)    # scale (0.125) already folded into wq/bq
    k = lin_relu(wk_ref, bk_ref)
    v = lin_relu(wv_ref, bv_ref)

    qm = q.astype(matmul_dtype)
    km = k.astype(matmul_dtype)
    vm = v.astype(matmul_dtype)

    # Per-head (no-softmax) attention.  NT dot_general contracts over the head
    # dim directly (no explicit k^T); each head result lands in the VMEM
    # scratch slab, so there is no concatenate and no long live ranges.
    for h in range(num_heads):
        sl = slice(h * head_dim, (h + 1) * head_dim)
        qh = qm[:, sl]                                # (N, D)
        kh = km[:, sl]                                # (N, D)
        vh = vm[:, sl]                                # (N, D)
        attn = jax.lax.dot_general(
            qh, kh, (((1,), (1,)), ((), ())),         # q @ k^T, "NT" form
            preferred_element_type=jnp.float32)       # (N, N) f32
        yh = jax.lax.dot_general(
            attn.astype(matmul_dtype), vh,
            (((1,), (0,)), ((), ())),
            preferred_element_type=jnp.float32)       # (N, D) f32
        y_sc[:, sl] = yh

    y = jnp.maximum(y_sc[...], 0.0).astype(matmul_dtype)   # attn_lif, (N, C)

    # proj linear + folded BN + ReLU — a single (N,C)@(C,C) matmul.
    p = jax.lax.dot_general(
        y, wp_ref[...],
        (((1,), (0,)), ((), ())),
        preferred_element_type=jnp.float32) + bp_ref[...]
    o_ref[...] = jnp.maximum(p, 0.0)


def ssa_forward(x, params, num_heads, matmul_dtype=jnp.bfloat16):
    B, N, C = x.shape
    assert C % num_heads == 0
    head_dim = C // num_heads
    scale = 0.125  # hard-coded in the PyTorch module

    # Fold the attention scale into the effective q weights/bias (exact: 0.125
    # is a power of two), and cast matmul operands to the MXU dtype.
    wq = (params["wq"] * scale).astype(matmul_dtype)
    bq = params["bq"] * scale                         # bias stays f32
    wk = params["wk"].astype(matmul_dtype)
    wv = params["wv"].astype(matmul_dtype)
    wp = params["wp"].astype(matmul_dtype)
    x_in = x.astype(matmul_dtype)

    kernel = partial(_ssa_kernel, num_heads, head_dim, matmul_dtype)

    x_spec = pl.BlockSpec((None, N, C), lambda b: (b, 0, 0))   # squeezed batch
    w_spec = pl.BlockSpec((C, C), lambda b: (0, 0))            # resident
    b_spec = pl.BlockSpec((1, C), lambda b: (0, 0))            # resident

    return pl.pallas_call(
        kernel,
        out_shape=jax.ShapeDtypeStruct((B, N, C), jnp.float32),
        grid_spec=pltpu.PrefetchScalarGridSpec(
            num_scalar_prefetch=0,
            grid=(B,),
            in_specs=[x_spec,
                      w_spec, b_spec,   # q (scale folded)
                      w_spec, b_spec,   # k
                      w_spec, b_spec,   # v
                      w_spec, b_spec],  # proj
            out_specs=x_spec,
            scratch_shapes=[pltpu.VMEM((N, C), jnp.float32)],
        ),
        compiler_params=pltpu.CompilerParams(dimension_semantics=("parallel",)),
    )(x_in,
      wq, bq,
      wk, params["bk"],
      wv, params["bv"],
      wp, params["bp"])


def _fold_linear_bn(keys, C, eps=1e-5):
    """Deterministic Linear + eval-mode BatchNorm1d, folded into (W_eff, b_eff)."""
    kw, kb, kg, kbe, km, kv = keys
    W = 0.05 * jax.random.normal(kw, (C, C), jnp.float32)          # (in, out)
    b = 0.05 * jax.random.normal(kb, (C,), jnp.float32)
    gamma = 1.0 + 0.1 * jax.random.normal(kg, (C,), jnp.float32)
    beta = 0.1 * jax.random.normal(kbe, (C,), jnp.float32)
    run_mean = 0.1 * jax.random.normal(km, (C,), jnp.float32)
    run_var = jax.random.uniform(kv, (C,), jnp.float32, minval=0.5, maxval=1.5)
    s = gamma / jnp.sqrt(run_var + eps)          # per-channel scale
    t = beta - run_mean * s                      # per-channel shift
    w_eff = W * s[None, :]
    b_eff = (b * s + t)[None, :]                 # keep 2-D for TPU layout
    return w_eff, b_eff


def make_params(key, C):
    keys = jax.random.split(key, 24)
    wq, bq = _fold_linear_bn(keys[0:6], C)
    wk, bk = _fold_linear_bn(keys[6:12], C)
    wv, bv = _fold_linear_bn(keys[12:18], C)
    wp, bp = _fold_linear_bn(keys[18:24], C)
    return dict(wq=wq, bq=bq, wk=wk, bk=bk, wv=wv, bv=bv, wp=wp, bp=bp)


def ssa_reference(x, params, num_heads):
    """Pure-JAX f32 reference (mirrors the PyTorch forward, eval-mode BN folded)."""
    B, N, C = x.shape
    D = C // num_heads

    def branch(w, b):
        return jnp.maximum(x @ w + b, 0.0)

    q = branch(params["wq"], params["bq"]).reshape(B, N, num_heads, D).transpose(0, 2, 1, 3)
    k = branch(params["wk"], params["bk"]).reshape(B, N, num_heads, D).transpose(0, 2, 1, 3)
    v = branch(params["wv"], params["bv"]).reshape(B, N, num_heads, D).transpose(0, 2, 1, 3)

    attn = jnp.einsum("bhnd,bhmd->bhnm", q, k) * 0.125
    y = jnp.einsum("bhnm,bhmd->bhnd", attn, v)
    y = y.transpose(0, 2, 1, 3).reshape(B, N, C)
    y = jnp.maximum(y, 0.0)
    return jnp.maximum(y @ params["wp"] + params["bp"], 0.0)


if __name__ == "__main__":
    B, N, C, H = 2, 128, 128, 8   # dim=128, num_heads=8 -> head_dim=16

    root = jax.random.PRNGKey(0)
    kx, kp = jax.random.split(root)
    x = jax.random.normal(kx, (B, N, C), jnp.float32)
    params = make_params(kp, C)

    ref = ssa_reference(x, params, H)
    ref = jax.block_until_ready(ref)

    # Exact-semantics check: f32 matmul operands must match the reference tightly.
    out_f32 = ssa_forward(x, params, H, matmul_dtype=jnp.float32)
    out_f32 = jax.block_until_ready(out_f32)
    np.testing.assert_allclose(np.asarray(out_f32), np.asarray(ref),
                               rtol=1e-4, atol=1e-4)

    # Performance config (default): bf16 operands, f32 accumulation — looser
    # tolerance reflecting bf16 operand rounding, still catches structural bugs.
    out_bf16 = ssa_forward(x, params, H)
    out_bf16 = jax.block_until_ready(out_bf16)
    np.testing.assert_allclose(np.asarray(out_bf16), np.asarray(ref),
                               rtol=2.5e-2, atol=1.5e-1)

    print("KERNEL_OK")
</pallas_src>

<mosaic_0001>
module attributes {stable_mosaic.version = 11 : i64} {
  func.func @_ssa_kernel(%arg0: i32, %arg1: memref<1x128x128xf32, #tpu.memory_space<vmem>>, %arg2: memref<128x128xf32, #tpu.memory_space<vmem>>, %arg3: memref<1x128xf32, #tpu.memory_space<vmem>>, %arg4: memref<128x128xf32, #tpu.memory_space<vmem>>, %arg5: memref<1x128xf32, #tpu.memory_space<vmem>>, %arg6: memref<128x128xf32, #tpu.memory_space<vmem>>, %arg7: memref<1x128xf32, #tpu.memory_space<vmem>>, %arg8: memref<128x128xf32, #tpu.memory_space<vmem>>, %arg9: memref<1x128xf32, #tpu.memory_space<vmem>>, %arg10: memref<1x128x128xf32, #tpu.memory_space<vmem>>, %arg11: memref<128x128xf32, #tpu.memory_space<vmem>>) attributes {dimension_semantics = [#tpu.dimension_semantics<parallel>], iteration_bounds = array<i64: 2>, scalar_prefetch = 0 : i64, scratch_operands = 1 : i64, tpu.core_type = #tpu.core_type<tc>, window_params = [{transform_indices = @transform_0, window_bounds = array<i64: 1, 128, 128>}, {pipeline_mode = #tpu.pipeline_mode<synchronous>, transform_indices = @transform_1, window_bounds = array<i64: 128, 128>}, {pipeline_mode = #tpu.pipeline_mode<synchronous>, transform_indices = @transform_2, window_bounds = array<i64: 1, 128>}, {pipeline_mode = #tpu.pipeline_mode<synchronous>, transform_indices = @transform_3, window_bounds = array<i64: 128, 128>}, {pipeline_mode = #tpu.pipeline_mode<synchronous>, transform_indices = @transform_4, window_bounds = array<i64: 1, 128>}, {pipeline_mode = #tpu.pipeline_mode<synchronous>, transform_indices = @transform_5, window_bounds = array<i64: 128, 128>}, {pipeline_mode = #tpu.pipeline_mode<synchronous>, transform_indices = @transform_6, window_bounds = array<i64: 1, 128>}, {pipeline_mode = #tpu.pipeline_mode<synchronous>, transform_indices = @transform_7, window_bounds = array<i64: 128, 128>}, {pipeline_mode = #tpu.pipeline_mode<synchronous>, transform_indices = @transform_8, window_bounds = array<i64: 1, 128>}, {transform_indices = @transform_9, window_bounds = array<i64: 1, 128, 128>}]} {
    %c0 = arith.constant 0 : index
    %c0_0 = arith.constant 0 : index
    %c0_1 = arith.constant 0 : index
    %0 = vector.load %arg1[%c0, %c0_0, %c0_1] : memref<1x128x128xf32, #tpu.memory_space<vmem>>, vector<1x128x128xf32>
    %1 = vector.shape_cast %0 : vector<1x128x128xf32> to vector<128x128xf32>
    %c0_2 = arith.constant 0 : index
    %c0_3 = arith.constant 0 : index
    %2 = vector.load %arg2[%c0_2, %c0_3] : memref<128x128xf32, #tpu.memory_space<vmem>>, vector<128x128xf32>
    %cst = arith.constant dense<0.000000e+00> : vector<128x128xf32>
    %3 = tpu.matmul %1, %2, %cst {dimension_numbers = #tpu.dot_dimension_numbers<[1], [0], [0], [1], [0, 0, 1, 1], [], []>} : vector<128x128xf32>, vector<128x128xf32>, vector<128x128xf32> -> vector<128x128xf32>
    %c0_4 = arith.constant 0 : index
    %c0_5 = arith.constant 0 : index
    %4 = vector.load %arg3[%c0_4, %c0_5] : memref<1x128xf32, #tpu.memory_space<vmem>>, vector<1x128xf32>
    %5 = vector.broadcast %4 : vector<1x128xf32> to vector<128x128xf32>
    %6 = arith.addf %3, %5 : vector<128x128xf32>
    %cst_6 = arith.constant 0.000000e+00 : f32
    %7 = vector.broadcast %cst_6 : f32 to vector<128x128xf32>
    %8 = arith.maximumf %6, %7 : vector<128x128xf32>
    %c0_7 = arith.constant 0 : index
    %c0_8 = arith.constant 0 : index
    %9 = vector.load %arg4[%c0_7, %c0_8] : memref<128x128xf32, #tpu.memory_space<vmem>>, vector<128x128xf32>
    %cst_9 = arith.constant dense<0.000000e+00> : vector<128x128xf32>
    %10 = tpu.matmul %1, %9, %cst_9 {dimension_numbers = #tpu.dot_dimension_numbers<[1], [0], [0], [1], [0, 0, 1, 1], [], []>} : vector<128x128xf32>, vector<128x128xf32>, vector<128x128xf32> -> vector<128x128xf32>
    %c0_10 = arith.constant 0 : index
    %c0_11 = arith.constant 0 : index
    %11 = vector.load %arg5[%c0_10, %c0_11] : memref<1x128xf32, #tpu.memory_space<vmem>>, vector<1x128xf32>
    %12 = vector.broadcast %11 : vector<1x128xf32> to vector<128x128xf32>
    %13 = arith.addf %10, %12 : vector<128x128xf32>
    %cst_12 = arith.constant 0.000000e+00 : f32
    %14 = vector.broadcast %cst_12 : f32 to vector<128x128xf32>
    %15 = arith.maximumf %13, %14 : vector<128x128xf32>
    %c0_13 = arith.constant 0 : index
    %c0_14 = arith.constant 0 : index
    %16 = vector.load %arg6[%c0_13, %c0_14] : memref<128x128xf32, #tpu.memory_space<vmem>>, vector<128x128xf32>
    %cst_15 = arith.constant dense<0.000000e+00> : vector<128x128xf32>
    %17 = tpu.matmul %1, %16, %cst_15 {dimension_numbers = #tpu.dot_dimension_numbers<[1], [0], [0], [1], [0, 0, 1, 1], [], []>} : vector<128x128xf32>, vector<128x128xf32>, vector<128x128xf32> -> vector<128x128xf32>
    %c0_16 = arith.constant 0 : index
    %c0_17 = arith.constant 0 : index
    %18 = vector.load %arg7[%c0_16, %c0_17] : memref<1x128xf32, #tpu.memory_space<vmem>>, vector<1x128xf32>
    %19 = vector.broadcast %18 : vector<1x128xf32> to vector<128x128xf32>
    %20 = arith.addf %17, %19 : vector<128x128xf32>
    %cst_18 = arith.constant 0.000000e+00 : f32
    %21 = vector.broadcast %cst_18 : f32 to vector<128x128xf32>
    %22 = arith.maximumf %20, %21 : vector<128x128xf32>
    %23 = vector.extract_strided_slice %8 {offsets = [0, 0], sizes = [128, 16], strides = [1, 1]} : vector<128x128xf32> to vector<128x16xf32>
    %24 = vector.extract_strided_slice %15 {offsets = [0, 0], sizes = [128, 16], strides = [1, 1]} : vector<128x128xf32> to vector<128x16xf32>
    %25 = vector.extract_strided_slice %22 {offsets = [0, 0], sizes = [128, 16], strides = [1, 1]} : vector<128x128xf32> to vector<128x16xf32>
    %cst_19 = arith.constant dense<0.000000e+00> : vector<128x128xf32>
    %26 = tpu.matmul %23, %24, %cst_19 {dimension_numbers = #tpu.dot_dimension_numbers<[1], [1], [0], [0], [0, 0, 1, 0], [], []>} : vector<128x16xf32>, vector<128x16xf32>, vector<128x128xf32> -> vector<128x128xf32>
    %cst_20 = arith.constant dense<0.000000e+00> : vector<128x16xf32>
    %27 = tpu.matmul %26, %25, %cst_20 {dimension_numbers = #tpu.dot_dimension_numbers<[1], [0], [0], [1], [0, 0, 1, 1], [], []>} : vector<128x128xf32>, vector<128x16xf32>, vector<128x16xf32> -> vector<128x16xf32>
    %c0_21 = arith.constant 0 : index
    %c0_22 = arith.constant 0 : index
    %28 = vector.load %arg11[%c0_21, %c0_22] : memref<128x128xf32, #tpu.memory_space<vmem>>, vector<128x16xf32>
    tpu.vector_store %arg11[%c0_21, %c0_22], %27 {strides = array<i32>} : memref<128x128xf32, #tpu.memory_space<vmem>>, vector<128x16xf32>,
    %29 = vector.extract_strided_slice %8 {offsets = [0, 16], sizes = [128, 16], strides = [1, 1]} : vector<128x128xf32> to vector<128x16xf32>
    %30 = vector.extract_strided_slice %15 {offsets = [0, 16], sizes = [128, 16], strides = [1, 1]} : vector<128x128xf32> to vector<128x16xf32>
    %31 = vector.extract_strided_slice %22 {offsets = [0, 16], sizes = [128, 16], strides = [1, 1]} : vector<128x128xf32> to vector<128x16xf32>
    %cst_23 = arith.constant dense<0.000000e+00> : vector<128x128xf32>
    %32 = tpu.matmul %29, %30, %cst_23 {dimension_numbers = #tpu.dot_dimension_numbers<[1], [1], [0], [0], [0, 0, 1, 0], [], []>} : vector<128x16xf32>, vector<128x16xf32>, vector<128x128xf32> -> vector<128x128xf32>
    %cst_24 = arith.constant dense<0.000000e+00> : vector<128x16xf32>
    %33 = tpu.matmul %32, %31, %cst_24 {dimension_numbers = #tpu.dot_dimension_numbers<[1], [0], [0], [1], [0, 0, 1, 1], [], []>} : vector<128x128xf32>, vector<128x16xf32>, vector<128x16xf32> -> vector<128x16xf32>
    %c0_25 = arith.constant 0 : index
    %c16 = arith.constant 16 : index
    %34 = vector.load %arg11[%c0_25, %c16] : memref<128x128xf32, #tpu.memory_space<vmem>>, vector<128x16xf32>
    tpu.vector_store %arg11[%c0_25, %c16], %33 {strides = array<i32>} : memref<128x128xf32, #tpu.memory_space<vmem>>, vector<128x16xf32>,
    %35 = vector.extract_strided_slice %8 {offsets = [0, 32], sizes = [128, 16], strides = [1, 1]} : vector<128x128xf32> to vector<128x16xf32>
    %36 = vector.extract_strided_slice %15 {offsets = [0, 32], sizes = [128, 16], strides = [1, 1]} : vector<128x128xf32> to vector<128x16xf32>
    %37 = vector.extract_strided_slice %22 {offsets = [0, 32], sizes = [128, 16], strides = [1, 1]} : vector<128x128xf32> to vector<128x16xf32>
    %cst_26 = arith.constant dense<0.000000e+00> : vector<128x128xf32>
    %38 = tpu.matmul %35, %36, %cst_26 {dimension_numbers = #tpu.dot_dimension_numbers<[1], [1], [0], [0], [0, 0, 1, 0], [], []>} : vector<128x16xf32>, vector<128x16xf32>, vector<128x128xf32> -> vector<128x128xf32>
    %cst_27 = arith.constant dense<0.000000e+00> : vector<128x16xf32>
    %39 = tpu.matmul %38, %37, %cst_27 {dimension_numbers = #tpu.dot_dimension_numbers<[1], [0], [0], [1], [0, 0, 1, 1], [], []>} : vector<128x128xf32>, vector<128x16xf32>, vector<128x16xf32> -> vector<128x16xf32>
    %c0_28 = arith.constant 0 : index
    %c32 = arith.constant 32 : index
    %40 = vector.load %arg11[%c0_28, %c32] : memref<128x128xf32, #tpu.memory_space<vmem>>, vector<128x16xf32>
    tpu.vector_store %arg11[%c0_28, %c32], %39 {strides = array<i32>} : memref<128x128xf32, #tpu.memory_space<vmem>>, vector<128x16xf32>,
    %41 = vector.extract_strided_slice %8 {offsets = [0, 48], sizes = [128, 16], strides = [1, 1]} : vector<128x128xf32> to vector<128x16xf32>
    %42 = vector.extract_strided_slice %15 {offsets = [0, 48], sizes = [128, 16], strides = [1, 1]} : vector<128x128xf32> to vector<128x16xf32>
    %43 = vector.extract_strided_slice %22 {offsets = [0, 48], sizes = [128, 16], strides = [1, 1]} : vector<128x128xf32> to vector<128x16xf32>
    %cst_29 = arith.constant dense<0.000000e+00> : vector<128x128xf32>
    %44 = tpu.matmul %41, %42, %cst_29 {dimension_numbers = #tpu.dot_dimension_numbers<[1], [1], [0], [0], [0, 0, 1, 0], [], []>} : vector<128x16xf32>, vector<128x16xf32>, vector<128x128xf32> -> vector<128x128xf32>
    %cst_30 = arith.constant dense<0.000000e+00> : vector<128x16xf32>
    %45 = tpu.matmul %44, %43, %cst_30 {dimension_numbers = #tpu.dot_dimension_numbers<[1], [0], [0], [1], [0, 0, 1, 1], [], []>} : vector<128x128xf32>, vector<128x16xf32>, vector<128x16xf32> -> vector<128x16xf32>
    %c0_31 = arith.constant 0 : index
    %c48 = arith.constant 48 : index
    %46 = vector.load %arg11[%c0_31, %c48] : memref<128x128xf32, #tpu.memory_space<vmem>>, vector<128x16xf32>
    tpu.vector_store %arg11[%c0_31, %c48], %45 {strides = array<i32>} : memref<128x128xf32, #tpu.memory_space<vmem>>, vector<128x16xf32>,
    %47 = vector.extract_strided_slice %8 {offsets = [0, 64], sizes = [128, 16], strides = [1, 1]} : vector<128x128xf32> to vector<128x16xf32>
    %48 = vector.extract_strided_slice %15 {offsets = [0, 64], sizes = [128, 16], strides = [1, 1]} : vector<128x128xf32> to vector<128x16xf32>
    %49 = vector.extract_strided_slice %22 {offsets = [0, 64], sizes = [128, 16], strides = [1, 1]} : vector<128x128xf32> to vector<128x16xf32>
    %cst_32 = arith.constant dense<0.000000e+00> : vector<128x128xf32>
    %50 = tpu.matmul %47, %48, %cst_32 {dimension_numbers = #tpu.dot_dimension_numbers<[1], [1], [0], [0], [0, 0, 1, 0], [], []>} : vector<128x16xf32>, vector<128x16xf32>, vector<128x128xf32> -> vector<128x128xf32>
    %cst_33 = arith.constant dense<0.000000e+00> : vector<128x16xf32>
    %51 = tpu.matmul %50, %49, %cst_33 {dimension_numbers = #tpu.dot_dimension_numbers<[1], [0], [0], [1], [0, 0, 1, 1], [], []>} : vector<128x128xf32>, vector<128x16xf32>, vector<128x16xf32> -> vector<128x16xf32>
    %c0_34 = arith.constant 0 : index
    %c64 = arith.constant 64 : index
    %52 = vector.load %arg11[%c0_34, %c64] : memref<128x128xf32, #tpu.memory_space<vmem>>, vector<128x16xf32>
    tpu.vector_store %arg11[%c0_34, %c64], %51 {strides = array<i32>} : memref<128x128xf32, #tpu.memory_space<vmem>>, vector<128x16xf32>,
    %53 = vector.extract_strided_slice %8 {offsets = [0, 80], sizes = [128, 16], strides = [1, 1]} : vector<128x128xf32> to vector<128x16xf32>
    %54 = vector.extract_strided_slice %15 {offsets = [0, 80], sizes = [128, 16], strides = [1, 1]} : vector<128x128xf32> to vector<128x16xf32>
    %55 = vector.extract_strided_slice %22 {offsets = [0, 80], sizes = [128, 16], strides = [1, 1]} : vector<128x128xf32> to vector<128x16xf32>
    %cst_35 = arith.constant dense<0.000000e+00> : vector<128x128xf32>
    %56 = tpu.matmul %53, %54, %cst_35 {dimension_numbers = #tpu.dot_dimension_numbers<[1], [1], [0], [0], [0, 0, 1, 0], [], []>} : vector<128x16xf32>, vector<128x16xf32>, vector<128x128xf32> -> vector<128x128xf32>
    %cst_36 = arith.constant dense<0.000000e+00> : vector<128x16xf32>
    %57 = tpu.matmul %56, %55, %cst_36 {dimension_numbers = #tpu.dot_dimension_numbers<[1], [0], [0], [1], [0, 0, 1, 1], [], []>} : vector<128x128xf32>, vector<128x16xf32>, vector<128x16xf32> -> vector<128x16xf32>
    %c0_37 = arith.constant 0 : index
    %c80 = arith.constant 80 : index
    %58 = vector.load %arg11[%c0_37, %c80] : memref<128x128xf32, #tpu.memory_space<vmem>>, vector<128x16xf32>
    tpu.vector_store %arg11[%c0_37, %c80], %57 {strides = array<i32>} : memref<128x128xf32, #tpu.memory_space<vmem>>, vector<128x16xf32>,
    %59 = vector.extract_strided_slice %8 {offsets = [0, 96], sizes = [128, 16], strides = [1, 1]} : vector<128x128xf32> to vector<128x16xf32>
    %60 = vector.extract_strided_slice %15 {offsets = [0, 96], sizes = [128, 16], strides = [1, 1]} : vector<128x128xf32> to vector<128x16xf32>
    %61 = vector.extract_strided_slice %22 {offsets = [0, 96], sizes = [128, 16], strides = [1, 1]} : vector<128x128xf32> to vector<128x16xf32>
    %cst_38 = arith.constant dense<0.000000e+00> : vector<128x128xf32>
    %62 = tpu.matmul %59, %60, %cst_38 {dimension_numbers = #tpu.dot_dimension_numbers<[1], [1], [0], [0], [0, 0, 1, 0], [], []>} : vector<128x16xf32>, vector<128x16xf32>, vector<128x128xf32> -> vector<128x128xf32>
    %cst_39 = arith.constant dense<0.000000e+00> : vector<128x16xf32>
    %63 = tpu.matmul %62, %61, %cst_39 {dimension_numbers = #tpu.dot_dimension_numbers<[1], [0], [0], [1], [0, 0, 1, 1], [], []>} : vector<128x128xf32>, vector<128x16xf32>, vector<128x16xf32> -> vector<128x16xf32>
    %c0_40 = arith.constant 0 : index
    %c96 = arith.constant 96 : index
    %64 = vector.load %arg11[%c0_40, %c96] : memref<128x128xf32, #tpu.memory_space<vmem>>, vector<128x16xf32>
    tpu.vector_store %arg11[%c0_40, %c96], %63 {strides = array<i32>} : memref<128x128xf32, #tpu.memory_space<vmem>>, vector<128x16xf32>,
    %65 = vector.extract_strided_slice %8 {offsets = [0, 112], sizes = [128, 16], strides = [1, 1]} : vector<128x128xf32> to vector<128x16xf32>
    %66 = vector.extract_strided_slice %15 {offsets = [0, 112], sizes = [128, 16], strides = [1, 1]} : vector<128x128xf32> to vector<128x16xf32>
    %67 = vector.extract_strided_slice %22 {offsets = [0, 112], sizes = [128, 16], strides = [1, 1]} : vector<128x128xf32> to vector<128x16xf32>
    %cst_41 = arith.constant dense<0.000000e+00> : vector<128x128xf32>
    %68 = tpu.matmul %65, %66, %cst_41 {dimension_numbers = #tpu.dot_dimension_numbers<[1], [1], [0], [0], [0, 0, 1, 0], [], []>} : vector<128x16xf32>, vector<128x16xf32>, vector<128x128xf32> -> vector<128x128xf32>
    %cst_42 = arith.constant dense<0.000000e+00> : vector<128x16xf32>
    %69 = tpu.matmul %68, %67, %cst_42 {dimension_numbers = #tpu.dot_dimension_numbers<[1], [0], [0], [1], [0, 0, 1, 1], [], []>} : vector<128x128xf32>, vector<128x16xf32>, vector<128x16xf32> -> vector<128x16xf32>
    %c0_43 = arith.constant 0 : index
    %c112 = arith.constant 112 : index
    %70 = vector.load %arg11[%c0_43, %c112] : memref<128x128xf32, #tpu.memory_space<vmem>>, vector<128x16xf32>
    tpu.vector_store %arg11[%c0_43, %c112], %69 {strides = array<i32>} : memref<128x128xf32, #tpu.memory_space<vmem>>, vector<128x16xf32>,
    %c0_44 = arith.constant 0 : index
    %c0_45 = arith.constant 0 : index
    %71 = vector.load %arg11[%c0_44, %c0_45] : memref<128x128xf32, #tpu.memory_space<vmem>>, vector<128x128xf32>
    %cst_46 = arith.constant 0.000000e+00 : f32
    %72 = vector.broadcast %cst_46 : f32 to vector<128x128xf32>
    %73 = arith.maximumf %71, %72 : vector<128x128xf32>
    %c0_47 = arith.constant 0 : index
    %c0_48 = arith.constant 0 : index
    %74 = vector.load %arg8[%c0_47, %c0_48] : memref<128x128xf32, #tpu.memory_space<vmem>>, vector<128x128xf32>
    %cst_49 = arith.constant dense<0.000000e+00> : vector<128x128xf32>
    %75 = tpu.matmul %73, %74, %cst_49 {dimension_numbers = #tpu.dot_dimension_numbers<[1], [0], [0], [1], [0, 0, 1, 1], [], []>} : vector<128x128xf32>, vector<128x128xf32>, vector<128x128xf32> -> vector<128x128xf32>
    %c0_50 = arith.constant 0 : index
    %c0_51 = arith.constant 0 : index
    %76 = vector.load %arg9[%c0_50, %c0_51] : memref<1x128xf32, #tpu.memory_space<vmem>>, vector<1x128xf32>
    %77 = vector.broadcast %76 : vector<1x128xf32> to vector<128x128xf32>
    %78 = arith.addf %75, %77 : vector<128x128xf32>
    %cst_52 = arith.constant 0.000000e+00 : f32
    %79 = vector.broadcast %cst_52 : f32 to vector<128x128xf32>
    %80 = arith.maximumf %78, %79 : vector<128x128xf32>
    %c0_53 = arith.constant 0 : index
    %c0_54 = arith.constant 0 : index
    %c0_55 = arith.constant 0 : index
    %81 = vector.load %arg10[%c0_53, %c0_54, %c0_55] : memref<1x128x128xf32, #tpu.memory_space<vmem>>, vector<1x128x128xf32>
    %82 = vector.shape_cast %81 : vector<1x128x128xf32> to vector<128x128xf32>
    %83 = vector.shape_cast %80 : vector<128x128xf32> to vector<1x128x128xf32>
    tpu.vector_store %arg10[%c0_53, %c0_54, %c0_55], %83 {strides = array<i32>} : memref<1x128x128xf32, #tpu.memory_space<vmem>>, vector<1x128x128xf32>,
    return
  }
  func.func @transform_0(%arg0: i32) -> (i32, i32, i32) {
    %c0_i32 = arith.constant 0 : i32
    %c0_i32_0 = arith.constant 0 : i32
    %c0_i32_1 = arith.constant 0 : i32
    return %arg0, %c0_i32, %c0_i32_0 : i32, i32, i32
  }
  func.func @transform_1(%arg0: i32) -> (i32, i32) {
    %c0_i32 = arith.constant 0 : i32
    %c0_i32_0 = arith.constant 0 : i32
    %c0_i32_1 = arith.constant 0 : i32
    return %c0_i32, %c0_i32_0 : i32, i32
  }
  func.func @transform_2(%arg0: i32) -> (i32, i32) {
    %c0_i32 = arith.constant 0 : i32
    %c0_i32_0 = arith.constant 0 : i32
    %c0_i32_1 = arith.constant 0 : i32
    return %c0_i32, %c0_i32_0 : i32, i32
  }
  func.func @transform_3(%arg0: i32) -> (i32, i32) {
    %c0_i32 = arith.constant 0 : i32
    %c0_i32_0 = arith.constant 0 : i32
    %c0_i32_1 = arith.constant 0 : i32
    return %c0_i32, %c0_i32_0 : i32, i32
  }
  func.func @transform_4(%arg0: i32) -> (i32, i32) {
    %c0_i32 = arith.constant 0 : i32
    %c0_i32_0 = arith.constant 0 : i32
    %c0_i32_1 = arith.constant 0 : i32
    return %c0_i32, %c0_i32_0 : i32, i32
  }
  func.func @transform_5(%arg0: i32) -> (i32, i32) {
    %c0_i32 = arith.constant 0 : i32
    %c0_i32_0 = arith.constant 0 : i32
    %c0_i32_1 = arith.constant 0 : i32
    return %c0_i32, %c0_i32_0 : i32, i32
  }
  func.func @transform_6(%arg0: i32) -> (i32, i32) {
    %c0_i32 = arith.constant 0 : i32
    %c0_i32_0 = arith.constant 0 : i32
    %c0_i32_1 = arith.constant 0 : i32
    return %c0_i32, %c0_i32_0 : i32, i32
  }
  func.func @transform_7(%arg0: i32) -> (i32, i32) {
    %c0_i32 = arith.constant 0 : i32
    %c0_i32_0 = arith.constant 0 : i32
    %c0_i32_1 = arith.constant 0 : i32
    return %c0_i32, %c0_i32_0 : i32, i32
  }
  func.func @transform_8(%arg0: i32) -> (i32, i32) {
    %c0_i32 = arith.constant 0 : i32
    %c0_i32_0 = arith.constant 0 : i32
    %c0_i32_1 = arith.constant 0 : i32
    return %c0_i32, %c0_i32_0 : i32, i32
  }
  func.func @transform_9(%arg0: i32) -> (i32, i32, i32) {
    %c0_i32 = arith.constant 0 : i32
    %c0_i32_0 = arith.constant 0 : i32
    %c0_i32_1 = arith.constant 0 : i32
    return %arg0, %c0_i32, %c0_i32_0 : i32, i32, i32
  }
}

</mosaic_0001>

<bundles_post_ra>
// kernel: tpu_custom_call.1
= control target key start
LH: loop header
LB: loop body
LE: loop exit
PB: predicated region body
PF: predicated region fallthrough
CT: control target
= control target key end

     0   :  { %s11838_s0 = inlined_call_operand.hbm [shape: f32[2,128,128], index: 0, kind: input, shape index: {}]   ;;  %s11839_s1 = inlined_call_operand.hbm [shape: f32[128,128], index: 1, kind: input, shape index: {}]   ;;  %s11840_s2 = inlined_call_operand.vmem [shape: f32[1,128], index: 2, kind: input, shape index: {}]   ;;  %s11841_s3 = inlined_call_operand.hbm [shape: f32[128,128], index: 3, kind: input, shape index: {}]   ;;  %s11842_s4 = inlined_call_operand.vmem [shape: f32[1,128], index: 4, kind: input, shape index: {}]   ;;  %s11843_s5 = inlined_call_operand.hbm [shape: f32[128,128], index: 5, kind: input, shape index: {}]   ;;  %s11844_s6 = inlined_call_operand.vmem [shape: f32[1,128], index: 6, kind: input, shape index: {}]   ;;  %s11845_s7 = inlined_call_operand.hbm [shape: f32[128,128], index: 7, kind: input, shape index: {}]   ;;  %s11846_s8 = inlined_call_operand.vmem [shape: f32[1,128], index: 8, kind: input, shape index: {}]   ;;  %s11847_s9 = inlined_call_operand.hbm [shape: f32[2,128,128], index: 9, kind: output, shape index: {}]  }
   0x1   :  { %11903 = sst [smem:[#allocation110_spill]] %s11847_s9 }
   0x2   :  { %14 = vsyncpa [#allocation4], 0 }
   0x3   :  { %16 = vsyncpa [#allocation4 + $0x1], 0 }
   0x4   :  { %17 = vsyncpa [#allocation7], 0 }
   0x5   :  { %18 = vsyncpa [#allocation10], 0 }
   0x6   :  { %19 = vsyncpa [#allocation5], 0 }
   0x7   :  { %21 = vsyncpa [#allocation5 + $0x1], 0  ;;  %s9337_s30 = smov 0   ;;  %s9339_s10 = smov 0  }
   0x8   :  { %s9341_s11 = smov 0   ;;  %s9343_s12 = smov 0  }
   0x9 LB: > { %11904 = sst [smem:[#allocation17_spill]] %s9256_s30  ;;  %s9358_s13 = sadd.s32 4294967295, %s9268_s12   ;;  %s9268_s12 = sphi %s9343_s12, %s12188_s12   ;;  %s9264_s11 = sphi %s9341_s11, %s12187_s11   ;;  %s9260_s10 = sphi %s9339_s10, %s12186_s10   ;;  %s9256_s30 = sphi %s9337_s30, %s12185_s30  }
   0xa   : > { %s5582_s14 = sadd.s32 4294967294, %s9268_s12   ;;  %p47_p0 = scmp.ne.s32.totalorder %s9260_s10, %s9256_s30 }
   0xb   : > { %p11848_p1 = scmp.eq.s32.totalorder %s9358_s13, 0  ;;  %p245_p3 = scmp.eq.s32.totalorder %s5582_s14, 1 }
   0xc   : > { %p5583_p5 = scmp.ge.s32.totalorder %s9268_s12, 1  ;;  %p252_p7 = scmp.lt.s32.totalorder %s9268_s12, 3 }
   0xd   : > { %p9367_p4 = por %p11848_p1, %p47_p0  ;;  %p9372_p6 = por %p245_p3, %p47_p0 }
   0xe   : > { %p9377_p8 = pnand %p5583_p5, %p252_p7  ;;  %s9270_s18 = smov [#allocation6]  }
   0xf   : > { %s11905_s15 = scalar_select %p9367_p4, 1, 0 }
  0x10   : > { %s11906_s16 = scalar_select %p9372_p6, 1, 0 }
  0x11   : > { %s11908_s17 = scalar_select %p9377_p8, 1, 0 }
  0x12   : > { %11907 = sst [smem:[#allocation18_spill]] %s11906_s16  ;;  %s264_s19 = sshll.u32 %s9270_s18, 4  ;;  %s9381_s19 = int_to_ptr.vmem [resolvable:$true] %s264_s19 }
  0x13   : > { %p8414_p9 = pneg %p9377_p8  ;;  %s9271_s21 = smov [#allocation9]  }
  0x14   : > { %s296_s22 = sshll.u32 %s9271_s21, 4  ;;  %s9272_s23 = smov [#allocation8]   ;;  %s9392_s22 = int_to_ptr.vmem [resolvable:$true] %s296_s22 }
  0x15   : > { %p9388_p11 = pnand %p8414_p9, %p11848_p1  ;;  %s9394_s24 = sshll.u32 %s9272_s23, 4  ;;  %s281_s24 = int_to_ptr.vmem [resolvable:$true] %s9394_s24 }
  0x16   : > { %s9052_s27 = scalar_lea.hbm %s11839_s1, 2048 }
  0x17   : > { %p9053_p12 = scmp.ne.s32.totalorder %s11839_s1, %s9052_s27  ;;  %p9404_p13 = pneg %p9388_p11 }
  0x18   : > { %p9059_p5 = scmp.lt.u32.totalorder %s9052_s27, %s11839_s1 }
  0x19   : > { %p9055_p0 = pnand %p9404_p13, %p9053_p12 }
  0x1b   : > { %p9056_p3 = pneg %p9055_p0 }
  0x1d   : > { %p9061_p7 = pnand %p9059_p5, %p9056_p3 }
  0x1f   : > { %9064 = shalt.err (!%p9061_p7)
}
  0x20   : > { %s9065_s23 = scalar_lea.vmem %s9381_s19, 2048  ;;  %p9073_p2 = scmp.lt.s32.totalorder %s9381_s19, %s9381_s19 }
  0x21   : > { %p9066_p9 = scmp.ne.s32.totalorder %s9381_s19, %s9065_s23  ;;  %p9074_p6 = scmp.lt.s32.totalorder %s9065_s23, %s9065_s23 }
  0x23   : > { %p9068_p10 = pnand %p9066_p9, %p9404_p13  ;;  %p9075_p12 = por %p9074_p6, %p9073_p2 }
  0x25   : > { %p9069_p1 = pneg %p9068_p10 }
  0x27   : > { %p9076_p0 = pnand %p9075_p12, %p9069_p1 }
  0x29   : > { %9079 = shalt.err (!%p9076_p0)
}
  0x2a   : > { %s9273_s25 = smov 128   ;;  %s9274_s26 = smov 8  }
  0x2b   : > { %8417 = dma.hbm_to_vmem [thread:$0]  (!%p9388_p11), %s11839_s1, 2048, %s9381_s19, [#allocation7], %s9273_s25, %s9273_s25, %s9274_s26  }
  0x2c   : > { %s9080_s21 = scalar_lea.hbm %s11843_s5, 2048 }
  0x2d   : > { %p9081_p1 = scmp.ne.s32.totalorder %s11843_s5, %s9080_s21  ;;  %p9087_p10 = scmp.lt.u32.totalorder %s9080_s21, %s11843_s5 }
  0x2f   : > { %p9083_p2 = pnand %p9081_p1, %p9404_p13 }
  0x31   : > { %p9084_p6 = pneg %p9083_p2 }
  0x33   : > { %p9089_p3 = pnand %p9087_p10, %p9084_p6 }
  0x35   : > { %9092 = shalt.err (!%p9089_p3)
}
  0x36   : > { %s9093_s19 = scalar_lea.vmem %s9392_s22, 2048  ;;  %p9101_p12 = scmp.lt.s32.totalorder %s9392_s22, %s9392_s22 }
  0x37   : > { %p9094_p5 = scmp.ne.s32.totalorder %s9392_s22, %s9093_s19  ;;  %p9102_p0 = scmp.lt.s32.totalorder %s9093_s19, %s9093_s19 }
  0x39   : > { %p9096_p7 = pnand %p9094_p5, %p9404_p13  ;;  %p9103_p1 = por %p9102_p0, %p9101_p12 }
  0x3b   : > { %p9097_p9 = pneg %p9096_p7 }
  0x3d   : > { %p9104_p2 = pnand %p9103_p1, %p9097_p9 }
  0x3f   : > { %9107 = shalt.err (!%p9104_p2)
}
  0x40   : > { %8423 = dma.hbm_to_vmem [thread:$0]  (!%p9388_p11), %s11843_s5, 2048, %s9392_s22, [#allocation10], %s9273_s25, %s9273_s25, %s9274_s26  }
  0x41   : > { %s9108_s28 = scalar_lea.hbm %s11841_s3, 2048 }
  0x42   : > { %p9109_p6 = scmp.ne.s32.totalorder %s11841_s3, %s9108_s28  ;;  %p9115_p5 = scmp.lt.u32.totalorder %s9108_s28, %s11841_s3 }
  0x44   : > { %p9111_p10 = pnand %p9109_p6, %p9404_p13 }
  0x46   : > { %p9112_p3 = pneg %p9111_p10 }
  0x48   : > { %p9117_p7 = pnand %p9115_p5, %p9112_p3 }
  0x4a   : > { %9120 = shalt.err (!%p9117_p7)
}
  0x4b   : > { %s9121_s19 = scalar_lea.vmem %s281_s24, 2048  ;;  %p9129_p1 = scmp.lt.s32.totalorder %s281_s24, %s281_s24 }
  0x4c   : > { %p9122_p9 = scmp.ne.s32.totalorder %s281_s24, %s9121_s19  ;;  %p9130_p2 = scmp.lt.s32.totalorder %s9121_s19, %s9121_s19 }
  0x4e   : > { %p9124_p12 = pnand %p9122_p9, %p9404_p13  ;;  %p9131_p4 = por %p9130_p2, %p9129_p1 }
  0x50   : > { %p9125_p0 = pneg %p9124_p12 }
  0x52   : > { %p9132_p8 = pnand %p9131_p4, %p9125_p0 }
  0x54   : > { %9135 = shalt.err (!%p9132_p8)
}
  0x55   : > { %8420 = dma.hbm_to_vmem [thread:$0]  (!%p9388_p11), %s11841_s3, 2048, %s281_s24, [#allocation7], %s9273_s25, %s9273_s25, %s9274_s26  }
  0x56   : > { %s9275_s30 = smov [#allocation11]   ;;  %s9136_s29 = scalar_lea.hbm %s11845_s7, 2048 }
  0x57   : > { %s312_s16 = sshll.u32 %s9275_s30, 4  ;;  %p9137_p4 = scmp.ne.s32.totalorder %s11845_s7, %s9136_s29  ;;  %s313_s16 = int_to_ptr.vmem [resolvable:$true] %s312_s16 }
  0x58   : > { %p9143_p10 = scmp.lt.u32.totalorder %s9136_s29, %s11845_s7 }
  0x59   : > { %p9139_p8 = pnand %p9137_p4, %p9404_p13 }
  0x5b   : > { %p9140_p6 = pneg %p9139_p8 }
  0x5d   : > { %p9145_p3 = pnand %p9143_p10, %p9140_p6 }
  0x5f   : > { %9148 = shalt.err (!%p9145_p3)
}
  0x60   : > { %s9149_s24 = scalar_lea.vmem %s313_s16, 2048  ;;  %p9157_p12 = scmp.lt.s32.totalorder %s313_s16, %s313_s16 }
  0x61   : > { %p9150_p5 = scmp.ne.s32.totalorder %s313_s16, %s9149_s24  ;;  %p9158_p0 = scmp.lt.s32.totalorder %s9149_s24, %s9149_s24 }
  0x63   : > { %p9152_p7 = pnand %p9150_p5, %p9404_p13  ;;  %p9159_p1 = por %p9158_p0, %p9157_p12 }
  0x65   : > { %p9153_p9 = pneg %p9152_p7 }
  0x67   : > { %p9160_p2 = pnand %p9159_p1, %p9153_p9 }
  0x69   : > { %9163 = shalt.err (!%p9160_p2)
}
  0x6a   : > { %8426 = dma.hbm_to_vmem [thread:$0]  (!%p9388_p11), %s11845_s7, 2048, %s313_s16, [#allocation10], %s9273_s25, %s9273_s25, %s9274_s26  }
  0x6b   : > { %s9498_s14 = sadd.s32 1, %s9268_s12   ;;  %s34_s20 = sadd.s32 1, %s9264_s11 }
  0x6c   : > { %s31_s30 = ssub.s32 %s9268_s12, %s9498_s14  ;;  %p41_p13 = scmp.ne.s32.totalorder %s9264_s11, %s9260_s10 }
  0x6d   : > { %p32_p4 = scmp.eq.s32.totalorder %s31_s30, 0  ;;  %p42_p8 = scmp.eq.s32.totalorder %s9268_s12, 0 }
  0x6e   : > { %p11911_p6 = scmp.eq.s32.totalorder %s9358_s13, 1  ;;  %p8439_p3 = scmp.lt.s32.totalorder %s9268_s12, 2 }
  0x6f   : > { %s9514_s28 = scalar_select %p32_p4, %s9264_s11, %s34_s20  }
  0x70   : > { %p9508_p10 = por %p11911_p6, %p41_p13  ;;  %p43_p5 = por %p42_p8, %p41_p13 }
  0x71   : > { %s329_s29 = sand.u32 1, %s9264_s11   ;;  %s5864_s16 = sshll.u32 %s9268_s12, 11 }
  0x72   : > { %s5589_s18 = sshll.u32 %s329_s29, 7  ;;  %s9521_s19 = scalar_lea.hbm %s11838_s0, %s5864_s16 }
  0x73   : > { %s333_s24 = scalar_lea.vmem [#allocation3], %s5589_s18  ;;  %p9525_p11 = pnand %p8439_p3, %p43_p5 }
  0x74   : > { %s340_s22 = sshll.u32 %s333_s24, 4  ;;  %s9529_s20 = scalar_lea.sflag [#allocation4], %s329_s29  ;;  %s9523_s22 = int_to_ptr.vmem [resolvable:$true] %s340_s22 }
  0x75   : > { %s9164_s30 = scalar_lea.hbm %s9521_s19, 2048  ;;  %p9166_p9 = pneg %p9525_p11 }
  0x76   : > { %p9165_p7 = scmp.ne.s32.totalorder %s9521_s19, %s9164_s30  ;;  %s9169_s21 = scalar_lea.hbm %s11838_s0, 4096 }
  0x77   : > { %p9170_p1 = scmp.lt.u32.totalorder %s9521_s19, %s11838_s0  ;;  %p9171_p2 = scmp.lt.u32.totalorder %s9169_s21, %s9164_s30 }
  0x78   : > { %p9167_p12 = pnand %p9166_p9, %p9165_p7  ;;  %p9173_p4 = scmp.lt.u32.totalorder %s9164_s30, %s9521_s19 }
  0x79   : > { %p9172_p13 = por %p9171_p2, %p9170_p1 }
  0x7a   : > { %p9168_p0 = pneg %p9167_p12 }
  0x7b   : > { %p9174_p8 = por %p9173_p4, %p9172_p13 }
  0x7d   : > { %p9175_p6 = pnand %p9174_p8, %p9168_p0 }
  0x7f   : > { %9178 = shalt.err (!%p9175_p6)
}
  0x80   : > { %s9179_s29 = scalar_lea.vmem %s9523_s22, 2048  ;;  %s9276_s18 = smov [#allocation3]  }
  0x81   : > { %p9180_p3 = scmp.ne.s32.totalorder %s9523_s22, %s9179_s29  ;;  %s9184_s16 = sshll.u32 %s9276_s18, 4  ;;  %s9185_s16 = int_to_ptr.vmem [resolvable:$false] %s9184_s16 }
  0x82   : > { %s9186_s23 = scalar_lea.vmem %s9185_s16, 4096  ;;  %p9187_p12 = scmp.lt.s32.totalorder %s9523_s22, %s9185_s16 }
  0x83   : > { %p9182_p5 = pnand %p9180_p3, %p9166_p9  ;;  %p9188_p1 = scmp.lt.s32.totalorder %s9186_s23, %s9179_s29 }
  0x85   : > { %p9183_p7 = pneg %p9182_p5  ;;  %p9189_p2 = por %p9188_p1, %p9187_p12 }
  0x87   : > { %p9190_p13 = pnand %p9189_p2, %p9183_p7 }
  0x89   : > { %9193 = shalt.err (!%p9190_p13)
}
  0x8a   : > { %8430 = dma.hbm_to_vmem [thread:$0]  (!%p9525_p11), %s9521_s19, 2048, %s9523_s22, %s9529_s20, %s9273_s25, %s9273_s25, %s9274_s26  }
  0x8b   : > { %p11914_p9 = scmp.ne.s32.totalorder %s11908_s17, 0 }
  0x8d   : > { %352 = sbr.rel (%p11914_p9) target bundleno = 3240 (0xca8), region = 56 }
  0x94   : > { %s9563_s30 = sand.u32 1, %s9260_s10   ;;  %p11915_p0 = scmp.ne.s32.totalorder %s11905_s15, 0 }
  0x95   : > { %s5593_s21 = sshll.u32 %s9563_s30, 7  ;;  %s355_s24 = scalar_lea.sflag [#allocation4], %s9563_s30 }
  0x96   : > { %s9569_s9 = scalar_lea.vmem [#allocation3], %s5593_s21 }
  0x97   : > { %9239 = dma.done.wait (%p11915_p0), %s355_s24, 2048  }
  0x98   : > { %9241 = vsyncadd (%p11915_p0), %s355_s24, 4294965248  ;;  %p11916_p11 = scmp.eq.s32.totalorder %s9358_s13, 0 }
  0x9a   : > { %9243 = dma.done.wait (%p11916_p11), [#allocation7], 4096   ;;  %p11917_p4 = pmov %p11916_p11 }
  0x9c   : > { %9245 = vsyncadd (%p11917_p4), [#allocation7], 4294963200  ;;  %p11918_p8 = pmov %p11917_p4 }
  0x9d   : > { %p11919_p6 = pmov %p11917_p4 }
  0x9e   : > { %9247 = dma.done.wait (%p11918_p8), [#allocation10], 4096  }
  0x9f   : > { %9249 = vsyncadd (%p11919_p6), [#allocation10], 4294963200  ;;  %v609_v0 = vld [vmem:[#allocation8] sm:$0xff]  ;;  %v610_v1 = vld [vmem:[#allocation8 + $0x8] sm:$0xff]  ;;  %vm977_vm0 = vcmask 130048   ;;  %s9277_s19 = smov 112  }
  0xa0   : > { %v611_v2 = vld [vmem:[#allocation8 + $0x10] sm:$0xff]  ;;  %v7658_v3 = vpack.c.bf16 %v610_v1, %v609_v0  ;;  %v612_v4 = vld [vmem:[#allocation8 + $0x18] sm:$0xff]  ;;  %v613_v6 = vld [vmem:[#allocation8 + $0x20] sm:$0xff]  ;;  %s9278_s29 = smov 96   ;;  %s9279_s18 = smov 80   ;;  %vm1926_vm2 = vcmask 261248  }
  0xa1   : > { %v7662_v5 = vpack.c.bf16 %v612_v4, %v611_v2  ;;  %v614_v7 = vld [vmem:[#allocation8 + $0x28] sm:$0xff]  ;;  %v425_v8 = vld [vmem:[#allocation6] sm:$0xff]  ;;  %v427_v11 = vld [vmem:[#allocation6 + $0x10] sm:$0xff]  ;;  %s9280_s16 = smov 64   ;;  %s9281_s23 = smov 48   ;;  %vm2473_vm3 = vcmask 392448  }
  0xa2   : > { %7659 = vmatprep.subr.bf16.mxu1 %v7658_v3  ;;  %v426_v9 = vld [vmem:[#allocation6 + $0x8] sm:$0xff]  ;;  %v428_v12 = vld [vmem:[#allocation6 + $0x18] sm:$0xff]  ;;  %v7666_v13 = vpack.c.bf16 %v614_v7, %v613_v6  ;;  %v429_v15 = vld [vmem:[#allocation6 + $0x20] sm:$0xff]  ;;  %s9282_s24 = smov 32   ;;  %vm3020_vm4 = vcmask 523648   ;;  %vm3567_vm5 = vcmask 654848  }
  0xa3   : > { %7661 = vmatpush3.bf16.msra.mxu1 %v7658_v3  ;;  %v7626_v10 = vpack.c.bf16 %v426_v9, %v425_v8  ;;  %v7630_v14 = vpack.c.bf16 %v428_v12, %v427_v11  ;;  %v430_v16 = vld [vmem:[#allocation6 + $0x28] sm:$0xff]  ;;  %v615_v17 = vld [vmem:[#allocation8 + $0x30] sm:$0xff]  ;;  %v616_v18 = vld [vmem:[#allocation8 + $0x38] sm:$0xff]  ;;  %vm4114_vm6 = vcmask 786048   ;;  %vm4661_vm7 = vcmask 917248   ;;  %s11755_s25 = scalar_lea.vmem [#allocation12], %s5593_s21 }
  0xa4   : > { %7663 = vmatprep.subr.bf16.mxu1 %v7662_v5  ;;  %v7634_v19 = vpack.c.bf16 %v430_v16, %v429_v15  ;;  %v9584_v20 = vld [vmem:[%s9569_s9] sm:$0xff]  ;;  %v7670_v21 = vpack.c.bf16 %v616_v18, %v615_v17  ;;  %v431_v22 = vld [vmem:[#allocation6 + $0x30] sm:$0xff]  ;;  %v432_v23 = vld [vmem:[#allocation6 + $0x38] sm:$0xff]  ;;  %vm5208_vm8 = vcmask 1048448   ;;  %s5865_s21 = sshll.u32 %s9358_s13, 11  ;;  %s5471_s26 = sshll.u32 %s11755_s25, 4  ;;  %s11792_s26 = int_to_ptr.vmem [resolvable:$true] %s5471_s26 }
  0xa5   : > { %7627 = vmatprep.subr.bf16.mxu0 %v7626_v10  ;;  %6594 = vmatprep.mubr.f32.mxu1 %v9584_v20  ;;  %v617_v24 = vld [vmem:[#allocation8 + $0x40] sm:$0xff]  ;;  %v618_v25 = vld [vmem:[#allocation8 + $0x48] sm:$0xff]  ;;  %v7638_v26 = vpack.c.bf16 %v432_v23, %v431_v22  ;;  %v619_v30 = vld [vmem:[#allocation8 + $0x50] sm:$0xff]  ;;  %s12180_s20 = sld [smem:[#allocation110_spill]]  ;;  %s5458_s13 = scalar_lea.sflag [#allocation5], %s9563_s30 }
  0xa6   : > { %7629 = vmatpush3.bf16.msra.mxu0 %v7626_v10  ;;  %6538 = vmatprep.mubr.f32.mxu0 %v9584_v20  ;;  %v7674_v27 = vpack.c.bf16 %v618_v25, %v617_v24  ;;  %v433_v28 = vld [vmem:[#allocation6 + $0x40] sm:$0xff]  ;;  %v434_v29 = vld [vmem:[#allocation6 + $0x48] sm:$0xff]  ;;  %v620_v31 = vld [vmem:[#allocation8 + $0x58] sm:$0xff] }
  0xa7   : > { %7665 = vmatpush3.bf16.msra.mxu1 %v7662_v5  ;;  %7631 = vmatprep.subr.bf16.mxu0 %v7630_v14  ;;  %v7642_v32 = vpack.c.bf16 %v434_v29, %v433_v28  ;;  %v7678_v33 = vpack.c.bf16 %v620_v31, %v619_v30  ;;  %v435_v34 = vld [vmem:[#allocation6 + $0x50] sm:$0xff]  ;;  %v436_v35 = vld [vmem:[#allocation6 + $0x58] sm:$0xff]  ;;  %v621_v36 = vld [vmem:[#allocation8 + $0x60] sm:$0xff] }
  0xa8   : > { %7667 = vmatprep.subr.bf16.mxu1 %v7666_v13  ;;  %v622_v37 = vld [vmem:[#allocation8 + $0x68] sm:$0xff]  ;;  %v7646_v38 = vpack.c.bf16 %v436_v35, %v435_v34  ;;  %v437_v40 = vld [vmem:[#allocation6 + $0x60] sm:$0xff]  ;;  %v623_v42 = vld [vmem:[#allocation8 + $0x70] sm:$0xff] }
  0xa9   : > { %v7682_v39 = vpack.c.bf16 %v622_v37, %v621_v36  ;;  %v438_v41 = vld [vmem:[#allocation6 + $0x68] sm:$0xff]  ;;  %v624_v43 = vld [vmem:[#allocation8 + $0x78] sm:$0xff]  ;;  %v439_v46 = vld [vmem:[#allocation6 + $0x70] sm:$0xff] }
  0xaa   : > { %7633 = vmatpush3.bf16.msra.mxu0 %v7630_v14  ;;  %v7650_v44 = vpack.c.bf16 %v438_v41, %v437_v40  ;;  %v7686_v45 = vpack.c.bf16 %v624_v43, %v623_v42  ;;  %v440_v47 = vld [vmem:[#allocation6 + $0x78] sm:$0xff]  ;;  %v793_v49 = vld [vmem:[#allocation9] sm:$0xff]  ;;  %v794_v50 = vld [vmem:[#allocation9 + $0x8] sm:$0xff] }
  0xab   : > { %7669 = vmatpush3.bf16.msra.mxu1 %v7666_v13  ;;  %7635 = vmatprep.subr.bf16.mxu0 %v7634_v19  ;;  %v7654_v48 = vpack.c.bf16 %v440_v47, %v439_v46  ;;  %v9589_v51 = vld [vmem:[%s9569_s9 + $0x8] sm:$0xff]  ;;  %v7690_v52 = vpack.c.bf16 %v794_v50, %v793_v49  ;;  %v9592_v53 = vld [vmem:[%s9569_s9 + $0x10] sm:$0xff]  ;;  %v796_v55 = vld [vmem:[#allocation9 + $0x18] sm:$0xff] }
  0xac   : > { %7671 = vmatprep.subr.bf16.mxu1 %v7670_v21  ;;  %v795_v54 = vld [vmem:[#allocation9 + $0x10] sm:$0xff]  ;;  %v9597_v56 = vld [vmem:[%s9569_s9 + $0x18] sm:$0xff]  ;;  %v9600_v57 = vld [vmem:[%s9569_s9 + $0x20] sm:$0xff] }
  0xad   : > { %v7694_v58 = vpack.c.bf16 %v796_v55, %v795_v54  ;;  %v797_v59 = vld [vmem:[#allocation9 + $0x20] sm:$0xff]  ;;  %v798_v60 = vld [vmem:[#allocation9 + $0x28] sm:$0xff]  ;;  %v9610_v62 = vld [vmem:[%s9569_s9 + $0x30] sm:$0xff] }
  0xae   : > { %7637 = vmatpush3.bf16.msra.mxu0 %v7634_v19  ;;  %v9606_v61 = vld [vmem:[%s9569_s9 + $0x28] sm:$0xff]  ;;  %v7698_v63 = vpack.c.bf16 %v798_v60, %v797_v59  ;;  %v799_v0 = vld [vmem:[#allocation9 + $0x30] sm:$0xff]  ;;  %v800_v1 = vld [vmem:[#allocation9 + $0x38] sm:$0xff] }
  0xaf   : > { %7673 = vmatpush3.bf16.msra.mxu1 %v7670_v21  ;;  %7639 = vmatprep.subr.bf16.mxu0 %v7638_v26  ;;  %v416_v2 = vld [vmem:[%s9569_s9 + $0x38] sm:$0xff]  ;;  %v417_v3 = vld [vmem:[%s9569_s9 + $0x40] sm:$0xff]  ;;  %v7702_v4 = vpack.c.bf16 %v800_v1, %v799_v0  ;;  %v802_v6 = vld [vmem:[#allocation9 + $0x48] sm:$0xff] }
  0xb0   : > { %7675 = vmatprep.subr.bf16.mxu1 %v7674_v27  ;;  %v801_v5 = vld [vmem:[#allocation9 + $0x40] sm:$0xff]  ;;  %v418_v7 = vld [vmem:[%s9569_s9 + $0x48] sm:$0xff]  ;;  %v419_v8 = vld [vmem:[%s9569_s9 + $0x50] sm:$0xff] }
  0xb1   : > { %v7706_v9 = vpack.c.bf16 %v802_v6, %v801_v5  ;;  %v803_v10 = vld [vmem:[#allocation9 + $0x50] sm:$0xff]  ;;  %v804_v11 = vld [vmem:[#allocation9 + $0x58] sm:$0xff]  ;;  %v421_v13 = vld [vmem:[%s9569_s9 + $0x60] sm:$0xff] }
  0xb2   : > { %7641 = vmatpush3.bf16.msra.mxu0 %v7638_v26  ;;  %v420_v12 = vld [vmem:[%s9569_s9 + $0x58] sm:$0xff]  ;;  %v7710_v14 = vpack.c.bf16 %v804_v11, %v803_v10  ;;  %v805_v15 = vld [vmem:[#allocation9 + $0x60] sm:$0xff]  ;;  %v806_v16 = vld [vmem:[#allocation9 + $0x68] sm:$0xff] }
  0xb3   : > { %7677 = vmatpush3.bf16.msra.mxu1 %v7674_v27  ;;  %7643 = vmatprep.subr.bf16.mxu0 %v7642_v32  ;;  %v422_v17 = vld [vmem:[%s9569_s9 + $0x68] sm:$0xff]  ;;  %v423_v18 = vld [vmem:[%s9569_s9 + $0x70] sm:$0xff]  ;;  %v7714_v19 = vpack.c.bf16 %v806_v16, %v805_v15  ;;  %v808_v22 = vld [vmem:[#allocation9 + $0x78] sm:$0xff] }
  0xb4   : > { %7679 = vmatprep.subr.bf16.mxu1 %v7678_v33  ;;  %v807_v21 = vld [vmem:[#allocation9 + $0x70] sm:$0xff]  ;;  %v424_v23 = vld [vmem:[%s9569_s9 + $0x78] sm:$0xff]  ;;  %v9644_v29 = vld [vmem:[%s11840_s2] ss:$0 sm:$0xff]  ;;  %s9283_s9 = smov 16  }
  0xb5   : > { %v7718_v24 = vpack.c.bf16 %v808_v22, %v807_v21  ;;  %vm9651_vm1 = vmpackc.low %vm977_vm0, %vm977_vm0 }
  0xb6   : > { %7645 = vmatpush3.bf16.msra.mxu0 %v7642_v32 }
  0xb7   : > { %7681 = vmatpush3.bf16.msra.mxu1 %v7678_v33  ;;  %7647 = vmatprep.subr.bf16.mxu0 %v7646_v38 }
  0xb8   : > { %7683 = vmatprep.subr.bf16.mxu1 %v7682_v39 }
  0xba   : > { %7649 = vmatpush3.bf16.msra.mxu0 %v7646_v38 }
  0xbb   : > { %7685 = vmatpush3.bf16.msra.mxu1 %v7682_v39  ;;  %7651 = vmatprep.subr.bf16.mxu0 %v7650_v44 }
  0xbc   : > { %7687 = vmatprep.subr.bf16.mxu1 %v7686_v45 }
  0xbe   : > { %7653 = vmatpush3.bf16.msra.mxu0 %v7650_v44 }
  0xbf   : > { %7689 = vmatpush3.bf16.msra.mxu1 %v7686_v45  ;;  %7655 = vmatprep.subr.bf16.mxu0 %v7654_v48 }
  0xc2   : > { %6595 = vmatmul.mubr.f32.vlgmr.msra.gmra.mrb[0].mxu1 %v9589_v51  ;;  %7657 = vmatpush3.bf16.msra.mxu0 %v7654_v48 }
  0xc3   : > { %6597 = vmatprep.mubr.f32.mxu1 %v9592_v53  ;;  %7691 = vmatprep.subr.bf16.mxu0 %v7690_v52 }
  0xc5   : > { %6539 = vmatmul.mubr.f32.vlgmr.msra.gmra.mrb[0].mxu0 %v9589_v51 }
  0xc6   : > { %6598 = vmatmul.mubr.f32.gmra.mrb[2].mxu1 %v9597_v56  ;;  %7693 = vmatpush3.bf16.msra.mxu0 %v7690_v52 }
  0xc7   : > { %6600 = vmatprep.mubr.f32.mxu1 %v9600_v57  ;;  %6541 = vmatprep.mubr.f32.mxu0 %v9592_v53 }
  0xc8   : > { %7695 = vmatprep.subr.bf16.mxu0 %v7694_v58 }
  0xc9   : > { %6542 = vmatmul.mubr.f32.gmra.mrb[2].mxu0 %v9597_v56 }
  0xca   : > { %6601 = vmatmul.mubr.f32.gmra.mrb[4].mxu1 %v9606_v61  ;;  %7697 = vmatpush3.bf16.msra.mxu0 %v7694_v58 }
  0xcb   : > { %6603 = vmatprep.mubr.f32.mxu1 %v9610_v62  ;;  %6544 = vmatprep.mubr.f32.mxu0 %v9600_v57 }
  0xcc   : > { %7699 = vmatprep.subr.bf16.mxu0 %v7698_v63 }
  0xcd   : > { %6545 = vmatmul.mubr.f32.gmra.mrb[4].mxu0 %v9606_v61 }
  0xce   : > { %6604 = vmatmul.mubr.f32.gmra.mrb[6].mxu1 %v416_v2  ;;  %7701 = vmatpush3.bf16.msra.mxu0 %v7698_v63 }
  0xcf   : > { %6606 = vmatprep.mubr.f32.mxu1 %v417_v3  ;;  %6547 = vmatprep.mubr.f32.mxu0 %v9610_v62 }
  0xd0   : > { %7703 = vmatprep.subr.bf16.mxu0 %v7702_v4 }
  0xd1   : > { %6548 = vmatmul.mubr.f32.gmra.mrb[6].mxu0 %v416_v2 }
  0xd2   : > { %6607 = vmatmul.mubr.f32.gmra.mrb[8].mxu1 %v418_v7  ;;  %7705 = vmatpush3.bf16.msra.mxu0 %v7702_v4 }
  0xd3   : > { %6609 = vmatprep.mubr.f32.mxu1 %v419_v8  ;;  %6550 = vmatprep.mubr.f32.mxu0 %v417_v3 }
  0xd4   : > { %7707 = vmatprep.subr.bf16.mxu0 %v7706_v9 }
  0xd5   : > { %6551 = vmatmul.mubr.f32.gmra.mrb[8].mxu0 %v418_v7 }
  0xd6   : > { %6610 = vmatmul.mubr.f32.gmra.mrb[10].mxu1 %v420_v12  ;;  %7709 = vmatpush3.bf16.msra.mxu0 %v7706_v9 }
  0xd7   : > { %6612 = vmatprep.mubr.f32.mxu1 %v421_v13  ;;  %6553 = vmatprep.mubr.f32.mxu0 %v419_v8 }
  0xd8   : > { %7711 = vmatprep.subr.bf16.mxu0 %v7710_v14 }
  0xd9   : > { %6554 = vmatmul.mubr.f32.gmra.mrb[10].mxu0 %v420_v12 }
  0xda   : > { %6613 = vmatmul.mubr.f32.gmra.mrb[12].mxu1 %v422_v17  ;;  %7713 = vmatpush3.bf16.msra.mxu0 %v7710_v14 }
  0xdb   : > { %6615 = vmatprep.mubr.f32.mxu1 %v423_v18  ;;  %6556 = vmatprep.mubr.f32.mxu0 %v421_v13 }
  0xdc   : > { %7715 = vmatprep.subr.bf16.mxu0 %v7714_v19 }
  0xdd   : > { %6557 = vmatmul.mubr.f32.gmra.mrb[12].mxu0 %v422_v17 }
  0xde   : > { %6616 = vmatmul.mubr.f32.gmra.mrb[14].mxu1 %v424_v23  ;;  %7717 = vmatpush3.bf16.msra.mxu0 %v7714_v19 }
  0xdf   : > { %6559 = vmatprep.mubr.f32.mxu0 %v423_v18  ;;  %7719 = vmatprep.subr.bf16.mxu0 %v7718_v24 }
  0xe1   : > { %6560 = vmatmul.mubr.f32.gmra.mrb[14].mxu0 %v424_v23 }
  0xe2   : > { %7721 = vmatpush3.bf16.msra.mxu0 %v7718_v24  ;;  %6650 = vmatprep.mubr.f32.mxu0 %v9584_v20  ;;  %v9637_v20 = vld [vmem:[%s11842_s4] ss:$0 sm:$0xff] }
  0xe5   : > { %6651 = vmatmul.mubr.f32.vlgmr.msra.gmra.mrb[16].mxu0 %v9589_v51 }
  0xe6   : > { %6653 = vmatprep.mubr.f32.mxu0 %v9592_v53 }
  0xe9   : > { %6654 = vmatmul.mubr.f32.gmra.mrb[18].mxu0 %v9597_v56 }
  0xea   : > { %6656 = vmatprep.mubr.f32.mxu0 %v9600_v57 }
  0xed   : > { %6657 = vmatmul.mubr.f32.gmra.mrb[20].mxu0 %v9606_v61 }
  0xee   : > { %6659 = vmatprep.mubr.f32.mxu0 %v9610_v62 }
  0xf1   : > { %6660 = vmatmul.mubr.f32.gmra.mrb[22].mxu0 %v416_v2 }
  0xf2   : > { %6662 = vmatprep.mubr.f32.mxu0 %v417_v3 }
  0xf5   : > { %6663 = vmatmul.mubr.f32.gmra.mrb[24].mxu0 %v418_v7 }
  0xf6   : > { %6665 = vmatprep.mubr.f32.mxu0 %v419_v8 }
  0xf9   : > { %6666 = vmatmul.mubr.f32.gmra.mrb[26].mxu0 %v420_v12 }
  0xfa   : > { %6668 = vmatprep.mubr.f32.mxu0 %v421_v13 }
  0xfd   : > { %6669 = vmatmul.mubr.f32.gmra.mrb[28].mxu0 %v422_v17 }
  0xfe   : > { %6671 = vmatprep.mubr.f32.mxu0 %v423_v18 }
 0x101   : > { %6672 = vmatmul.mubr.f32.gmra.mrb[30].mxu0 %v424_v23 }
 0x195   : > { %v6596_v25 = vpop.f32.mrb[0].mxu1 }
 0x196   : > { %v704_v26 = vadd.f32 %v6596_v25, %v9637_v20  ;;  %v698_v27 = vpop.f32.mrb[1].mxu1 }
 0x197   : > { %v699_v28 = vadd.f32 %v9637_v20, %v698_v27 }
 0x198   : > { %v778_v30 = vmax.f32 %v704_v26, 0.0  ;;  %v9646_v31 = vpop.f32.mrb[0].mxu0 }
 0x199   : > { %v777_v32 = vmax.f32 %v699_v28, 0.0  ;;  %v6599_v33 = vpop.f32.mrb[2].mxu1  ;;  %v514_v34 = vpop.f32.mrb[1].mxu0 }
 0x19a   : > { %v714_v35 = vadd.f32 %v6599_v33, %v9637_v20  ;;  %v708_v36 = vpop.f32.mrb[3].mxu1  ;;  %v515_v38 = vadd.f32 %v9644_v29, %v514_v34 }
 0x19b   : > { %v709_v39 = vadd.f32 %v9637_v20, %v708_v36  ;;  %v9657_v40 = vpack.i.bf16 %v778_v30, %v777_v32  ;;  %v7722_v41 = vpack.c.bf16 %v778_v30, %v777_v32 }
 0x19c   : > { %v780_v42 = vmax.f32 %v714_v35, 0.0  ;;  %v9659_v43 = vmax.f32 %v515_v38, 0.0  ;;  %v9661_v44 = vpop.f32.mrb[2].mxu0 }
 0x19d   : > { %v779_v45 = vmax.f32 %v709_v39, 0.0  ;;  %8493 = vrot.lane.b32.xlu0 %v9657_v40, %s9277_s19  ;;  %7724 = vmatprep.subr.msk.bf16.mxu1 %vm9651_vm1, %v7722_v41  ;;  %v6602_v46 = vpop.f32.mrb[4].mxu1  ;;  %v9667_v47 = vpop.f32.mrb[3].mxu0 }
 0x19e   : > { %7727 = vmatpush3.bf16.xpose.msk.msra.mxu1 %vm9651_vm1, %v7722_v41  ;;  %v724_v48 = vadd.f32 %v6602_v46, %v9637_v20  ;;  %v718_v49 = vpop.f32.mrb[5].mxu1  ;;  %6706 = vmatprep.mubr.msk.f32.mxu1 %vm977_vm0, %v9659_v43  ;;  %v520_v41 = vadd.f32 %v9646_v31, %v9644_v29  ;;  %v530_v31 = vadd.f32 %v9661_v44, %v9644_v29 }
 0x19f   : > { %v9674_v50 = vpack.i.bf16 %v780_v42, %v779_v45  ;;  %v7728_v51 = vpack.c.bf16 %v780_v42, %v779_v45  ;;  %v719_v52 = vadd.f32 %v9637_v20, %v718_v49 }
 0x1a0   : > { %v782_v53 = vmax.f32 %v724_v48, 0.0  ;;  %v9677_v54 = vpop.f32.mrb[4].mxu0 }
 0x1a1   : > { %8498 = vrot.lane.b32.xlu0 %v9674_v50, %s9277_s19  ;;  %7730 = vmatprep.subr.msk.bf16.mxu1 %vm9651_vm1, %v7728_v51  ;;  %v781_v55 = vmax.f32 %v719_v52, 0.0  ;;  %v6605_v56 = vpop.f32.mrb[6].mxu1  ;;  %v9683_v57 = vpop.f32.mrb[5].mxu0  ;;  %v525_v52 = vadd.f32 %v9644_v29, %v9667_v47 }
 0x1a2   : > { %v734_v58 = vadd.f32 %v6605_v56, %v9637_v20  ;;  %v728_v59 = vpop.f32.mrb[7].mxu1 }
 0x1a3   : > { %v729_v60 = vadd.f32 %v9637_v20, %v728_v59  ;;  %v9687_v61 = vpack.i.bf16 %v782_v53, %v781_v55  ;;  %v7734_v62 = vpack.c.bf16 %v782_v53, %v781_v55  ;;  %v9751_v55 = vmax.f32 %v520_v41, 0.0 }
 0x1a4   : > { %v784_v63 = vmax.f32 %v734_v58, 0.0  ;;  %v9689_v0 = vpop.f32.mrb[6].mxu0  ;;  %v535_v58 = vadd.f32 %v9644_v29, %v9683_v57 }
 0x1a5   : > { %v783_v1 = vmax.f32 %v729_v60, 0.0  ;;  %v6608_v2 = vpop.f32.mrb[8].mxu1  ;;  %8503 = vrot.lane.b32.xlu1 %v9687_v61, %s9277_s19  ;;  %v9693_v3 = vpop.f32.mrb[7].mxu0  ;;  %v9770_v60 = vmax.f32 %v525_v52, 0.0 }
 0x1a6   : > { %7733 = vmatpush3.bf16.xpose.msk.msra.mxu1 %vm9651_vm1, %v7728_v51  ;;  %v744_v4 = vadd.f32 %v6608_v2, %v9637_v20  ;;  %v738_v5 = vpop.f32.mrb[9].mxu1 }
 0x1a7   : > { %v739_v6 = vadd.f32 %v9637_v20, %v738_v5  ;;  %7736 = vmatprep.subr.msk.bf16.mxu1 %vm9651_vm1, %v7734_v62  ;;  %v9701_v7 = vpack.i.bf16 %v784_v63, %v783_v1  ;;  %v7740_v8 = vpack.c.bf16 %v784_v63, %v783_v1  ;;  %v9782_v1 = vmax.f32 %v530_v31, 0.0 }
 0x1a8   : > { %v786_v9 = vmax.f32 %v744_v4, 0.0  ;;  %v9703_v10 = vpop.f32.mrb[8].mxu0  ;;  %v540_v5 = vadd.f32 %v9677_v54, %v9644_v29 }
 0x1a9   : > { %v785_v11 = vmax.f32 %v739_v6, 0.0  ;;  %v6611_v12 = vpop.f32.mrb[10].mxu1  ;;  %8508 = vrot.lane.b32.xlu1 %v9701_v7, %s9277_s19  ;;  %v9707_v13 = vpop.f32.mrb[9].mxu0  ;;  %v9788_v6 = vmax.f32 %v535_v58, 0.0 }
 0x1aa   : > { %v754_v14 = vadd.f32 %v6611_v12, %v9637_v20  ;;  %v748_v15 = vpop.f32.mrb[11].mxu1 }
 0x1ab   : > { %v749_v16 = vadd.f32 %v9637_v20, %v748_v15  ;;  %v9711_v17 = vpack.i.bf16 %v786_v9, %v785_v11  ;;  %v7746_v18 = vpack.c.bf16 %v786_v9, %v785_v11 }
 0x1ac   : > { %v788_v19 = vmax.f32 %v754_v14, 0.0  ;;  %v9713_v21 = vpop.f32.mrb[10].mxu0 }
 0x1ad   : > { %v787_v22 = vmax.f32 %v749_v16, 0.0  ;;  %v6614_v23 = vpop.f32.mrb[12].mxu1  ;;  %8513 = vrot.lane.b32.xlu0 %v9711_v17, %s9277_s19  ;;  %v9717_v24 = vpop.f32.mrb[11].mxu0 }
 0x1ae   : > { %v764_v25 = vadd.f32 %v6614_v23, %v9637_v20  ;;  %v758_v26 = vpop.f32.mrb[13].mxu1  ;;  %7739 = vmatpush3.bf16.xpose.msk.msra.mxu1 %vm9651_vm1, %v7734_v62 }
 0x1af   : > { %v759_v27 = vadd.f32 %v9637_v20, %v758_v26  ;;  %7742 = vmatprep.subr.msk.bf16.mxu1 %vm9651_vm1, %v7740_v8  ;;  %v9725_v28 = vpack.i.bf16 %v788_v19, %v787_v22  ;;  %v9727_v30 = vpack.c.bf16 %v788_v19, %v787_v22  ;;  %v555_v22 = vadd.f32 %v9644_v29, %v9707_v13 }
 0x1b0   : > { %v790_v32 = vmax.f32 %v764_v25, 0.0  ;;  %v9729_v33 = vpop.f32.mrb[12].mxu0 }
 0x1b1   : > { %v789_v34 = vmax.f32 %v759_v27, 0.0  ;;  %v6617_v35 = vpop.f32.mrb[14].mxu1  ;;  %8518 = vrot.lane.b32.xlu1 %v9725_v28, %s9277_s19  ;;  %v9733_v36 = vpop.f32.mrb[13].mxu0 }
 0x1b2   : > { %v774_v38 = vadd.f32 %v6617_v35, %v9637_v20  ;;  %v768_v39 = vpop.f32.mrb[15].mxu1  ;;  %v560_v35 = vadd.f32 %v9703_v10, %v9644_v29 }
 0x1b3   : > { %v769_v42 = vadd.f32 %v9637_v20, %v768_v39  ;;  %v9739_v45 = vpack.i.bf16 %v790_v32, %v789_v34  ;;  %v9741_v46 = vpack.c.bf16 %v790_v32, %v789_v34  ;;  %v9758_v20 = vld [vmem:[%s11844_s6] ss:$0 sm:$0xff]  ;;  %v565_v39 = vadd.f32 %v9644_v29, %v9717_v24 }
 0x1b4   : > { %v792_v48 = vmax.f32 %v774_v38, 0.0  ;;  %v9743_v49 = vpop.f32.mrb[14].mxu0  ;;  %v9841_v38 = vmax.f32 %v555_v22, 0.0  ;;  %v570_v24 = vadd.f32 %v9713_v21, %v9644_v29  ;;  %v9869_v31 = vmax.f32 %v560_v35, 0.0 }
 0x1b5   : > { %v791_v51 = vmax.f32 %v769_v42, 0.0  ;;  %8523 = vrot.lane.b32.xlu0 %v9739_v45, %s9277_s19  ;;  %v9749_v53 = vpop.f32.mrb[15].mxu0  ;;  %v9871_v58 = vmax.f32 %v565_v39, 0.0 }
 0x1b6   : > { %7745 = vmatpush3.bf16.xpose.msk.msra.mxu1 %vm9651_vm1, %v7740_v8  ;;  %v545_v8 = vadd.f32 %v9644_v29, %v9693_v3  ;;  %v550_v3 = vadd.f32 %v9689_v0, %v9644_v29  ;;  %v585_v22 = vadd.f32 %v9644_v29, %v9749_v53 }
 0x1b7   : > { %v9762_v56 = vpack.i.bf16 %v792_v48, %v791_v51  ;;  %7748 = vmatprep.subr.msk.bf16.mxu1 %vm9651_vm1, %v7746_v18  ;;  %v9766_v47 = vpack.c.bf16 %v792_v48, %v791_v51 }
 0x1b8   : > { %v6652_v59 = vpop.f32.mrb[16].mxu0  ;;  %v9817_v19 = vmax.f32 %v545_v8, 0.0  ;;  %v9835_v27 = vmax.f32 %v550_v3, 0.0  ;;  %v9887_v8 = vmax.f32 %v570_v24, 0.0  ;;  %v9912_v24 = vmax.f32 %v585_v22, 0.0 }
 0x1b9   : > { %8528 = vrot.lane.b32.xlu1 %v9762_v56, %s9277_s19  ;;  %1380 = vrot.lane.b32.xlu0 %v9659_v43, %s9277_s19  ;;  %v9777_v44 = vadd.f32 %v6652_v59, %v9758_v20  ;;  %v882_v62 = vpop.f32.mrb[17].mxu0  ;;  %v575_v59 = vadd.f32 %v9644_v29, %v9733_v36  ;;  %v580_v36 = vadd.f32 %v9729_v33, %v9644_v29 }
 0x1ba   : > { %v9780_v63 = vadd.f32 %v9758_v20, %v882_v62 }
 0x1bb   : > { %v962_v57 = vmax.f32 %v9777_v44, 0.0  ;;  %v9908_v53 = vmax.f32 %v580_v36, 0.0 }
 0x1bc   : > { %v961_v2 = vmax.f32 %v9780_v63, 0.0  ;;  %v6655_v4 = vpop.f32.mrb[18].mxu0 }
 0x1bd   : > { %1382 = vrot.lane.b32.xlu1 %v9751_v55, %s9277_s19  ;;  %1384 = vrot.lane.b32.xlu0 %v9770_v60, %s9277_s19  ;;  %v9797_v9 = vadd.f32 %v6655_v4, %v9758_v20  ;;  %v892_v11 = vpop.f32.mrb[19].mxu0 }
 0x1be   : > { %7751 = vmatpush3.bf16.xpose.msk.msra.mxu1 %vm9651_vm1, %v7746_v18  ;;  %v9802_v54 = vadd.f32 %v9758_v20, %v892_v11  ;;  %v7770_v12 = vpack.c.bf16 %v962_v57, %v961_v2  ;;  %v9815_v18 = vmax.f32 %v540_v5, 0.0 }
 0x1bf   : > { %7754 = vmatprep.subr.msk.bf16.mxu1 %vm9651_vm1, %v9727_v30  ;;  %v964_v14 = vmax.f32 %v9797_v9, 0.0 }
 0x1c0   : > { %v963_v15 = vmax.f32 %v9802_v54, 0.0  ;;  %v6658_v16 = vpop.f32.mrb[20].mxu0  ;;  %7771 = vmatprep.subr.bf16.mxu0 %v7770_v12 }
 0x1c1   : > { %1386 = vrot.lane.b32.xlu1 %v9782_v1, %s9277_s19  ;;  %1388 = vrot.lane.b32.xlu0 %v9788_v6, %s9277_s19  ;;  %v9826_v0 = vadd.f32 %v6658_v16, %v9758_v20  ;;  %v902_v23 = vpop.f32.mrb[21].mxu0  ;;  %v9892_v16 = vmax.f32 %v575_v59, 0.0 }
 0x1c2   : > { %v9829_v25 = vadd.f32 %v9758_v20, %v902_v23  ;;  %7773 = vmatpush3.bf16.msra.mxu0 %v7770_v12  ;;  %v7774_v26 = vpack.c.bf16 %v964_v14, %v963_v15  ;;  %v9945_v44 = vpack.i.bf16 %v964_v14, %v963_v15 }
 0x1c3   : > { %v966_v32 = vmax.f32 %v9826_v0, 0.0 }
 0x1c4   : > { %v965_v34 = vmax.f32 %v9829_v25, 0.0  ;;  %v6661_v13 = vpop.f32.mrb[22].mxu0  ;;  %7775 = vmatprep.subr.bf16.mxu0 %v7774_v26 }
 0x1c5   : > { %1390 = vrot.lane.b32.xlu1 %v9815_v18, %s9277_s19  ;;  %1392 = vrot.lane.b32.xlu0 %v9817_v19, %s9277_s19  ;;  %v9850_v41 = vadd.f32 %v6661_v13, %v9758_v20  ;;  %v912_v42 = vpop.f32.mrb[23].mxu0 }
 0x1c6   : > { %7757 = vmatpush3.bf16.xpose.msk.msra.mxu1 %vm9651_vm1, %v9727_v30  ;;  %v9856_v10 = vadd.f32 %v9758_v20, %v912_v42  ;;  %7777 = vmatpush3.bf16.msra.mxu0 %v7774_v26  ;;  %v7778_v48 = vpack.c.bf16 %v966_v32, %v965_v34 }
 0x1c7   : > { %7760 = vmatprep.subr.msk.bf16.mxu1 %vm9651_vm1, %v9741_v46  ;;  %v968_v51 = vmax.f32 %v9850_v41, 0.0 }
 0x1c8   : > { %v967_v30 = vmax.f32 %v9856_v10, 0.0  ;;  %v6664_v52 = vpop.f32.mrb[24].mxu0  ;;  %7779 = vmatprep.subr.bf16.mxu0 %v7778_v48 }
 0x1c9   : > { %1394 = vrot.lane.b32.xlu1 %v9835_v27, %s9277_s19  ;;  %1396 = vrot.lane.b32.xlu0 %v9841_v38, %s9277_s19  ;;  %v9880_v21 = vadd.f32 %v6664_v52, %v9758_v20  ;;  %v922_v62 = vpop.f32.mrb[25].mxu0 }
 0x1ca   : > { %v923_v4 = vadd.f32 %v9758_v20, %v922_v62  ;;  %7781 = vmatpush3.bf16.msra.mxu0 %v7778_v48  ;;  %v7782_v5 = vpack.c.bf16 %v968_v51, %v967_v30  ;;  %v590_v48 = vadd.f32 %v9743_v49, %v9644_v29  ;;  %v9930_v49 = vpack.i.bf16 %v962_v57, %v961_v2 }
 0x1cb   : > { %v970_v11 = vmax.f32 %v9880_v21, 0.0  ;;  %v9961_v63 = vpack.i.bf16 %v968_v51, %v967_v30 }
 0x1cc   : > { %v969_v12 = vmax.f32 %v923_v4, 0.0  ;;  %v6667_v3 = vpop.f32.mrb[26].mxu0  ;;  %7783 = vmatprep.subr.bf16.mxu0 %v7782_v5  ;;  %v9920_v29 = vmax.f32 %v590_v48, 0.0 }
 0x1cd   : > { %1398 = vrot.lane.b32.xlu1 %v9869_v31, %s9277_s19  ;;  %1400 = vrot.lane.b32.xlu0 %v9871_v58, %s9277_s19  ;;  %v938_v23 = vadd.f32 %v6667_v3, %v9758_v20  ;;  %v932_v26 = vpop.f32.mrb[27].mxu0 }
 0x1ce   : > { %7763 = vmatpush3.bf16.xpose.msk.msra.mxu1 %vm9651_vm1, %v9741_v46  ;;  %v933_v33 = vadd.f32 %v9758_v20, %v932_v26  ;;  %7785 = vmatpush3.bf16.msra.mxu0 %v7782_v5  ;;  %v7786_v13 = vpack.c.bf16 %v970_v11, %v969_v12  ;;  %v9963_v57 = vpack.i.bf16 %v970_v11, %v969_v12 }
 0x1cf   : > { %7766 = vmatprep.subr.msk.bf16.mxu1 %vm9651_vm1, %v9766_v47  ;;  %v972_v35 = vmax.f32 %v938_v23, 0.0 }
 0x1d0   : > { %v971_v39 = vmax.f32 %v933_v33, 0.0  ;;  %v6670_v42 = vpop.f32.mrb[28].mxu0  ;;  %7787 = vmatprep.subr.bf16.mxu0 %v7786_v13 }
 0x1d1   : > { %1402 = vrot.lane.b32.xlu1 %v9887_v8, %s9277_s19  ;;  %1404 = vrot.lane.b32.xlu0 %v9892_v16, %s9277_s19  ;;  %v948_v46 = vadd.f32 %v6670_v42, %v9758_v20  ;;  %v942_v52 = vpop.f32.mrb[29].mxu0 }
 0x1d2   : > { %v943_v59 = vadd.f32 %v9758_v20, %v942_v52  ;;  %7789 = vmatpush3.bf16.msra.mxu0 %v7786_v13  ;;  %v7790_v21 = vpack.c.bf16 %v972_v35, %v971_v39  ;;  %v9973_v2 = vpack.i.bf16 %v972_v35, %v971_v39 }
 0x1d3   : > { %v974_v62 = vmax.f32 %v948_v46, 0.0 }
 0x1d4   : > { %v973_v4 = vmax.f32 %v943_v59, 0.0  ;;  %v6673_v5 = vpop.f32.mrb[30].mxu0  ;;  %7791 = vmatprep.subr.bf16.mxu0 %v7790_v21 }
 0x1d5   : > { %1406 = vrot.lane.b32.xlu1 %v9908_v53, %s9277_s19  ;;  %1408 = vrot.lane.b32.xlu0 %v9912_v24, %s9277_s19  ;;  %v958_v3 = vadd.f32 %v6673_v5, %v9758_v20  ;;  %v952_v36 = vpop.f32.mrb[31].mxu0 }
 0x1d6   : > { %7769 = vmatpush3.bf16.xpose.msk.msra.mxu1 %vm9651_vm1, %v9766_v47  ;;  %v953_v22 = vadd.f32 %v9758_v20, %v952_v36  ;;  %7793 = vmatpush3.bf16.msra.mxu0 %v7790_v21  ;;  %v7794_v23 = vpack.c.bf16 %v974_v62, %v973_v4  ;;  %v9951_v20 = vpack.i.bf16 %v966_v32, %v965_v34 }
 0x1d7   : > { %v976_v26 = vmax.f32 %v958_v3, 0.0  ;;  %v9975_v9 = vpack.i.bf16 %v974_v62, %v973_v4 }
 0x1d8   : > { %v975_v33 = vmax.f32 %v953_v22, 0.0  ;;  %7795 = vmatprep.subr.bf16.mxu0 %v7794_v23 }
 0x1d9   : > { %1410 = vrot.lane.b32.xlu1 %v9920_v29, %s9277_s19  ;;  %8533 = vrot.lane.b32.xlu0 %v9930_v49, %s9277_s19 }
 0x1da   : > { %7797 = vmatpush3.bf16.msra.mxu0 %v7794_v23  ;;  %v7798_v47 = vpack.c.bf16 %v976_v26, %v975_v33  ;;  %v9985_v54 = vpack.i.bf16 %v976_v26, %v975_v33 }
 0x1dc   : > { %7799 = vmatprep.subr.bf16.mxu0 %v7798_v47 }
 0x1dd   : > { %8538 = vrot.lane.b32.xlu1 %v9945_v44, %s9277_s19  ;;  %8543 = vrot.lane.b32.xlu0 %v9951_v20, %s9277_s19 }
 0x1de   : > { %6707 = vmatmul.mubr.msk.f32.vlgmr.msra.gmra.mrb[16].mxu1 %vm977_vm0, %v9751_v55  ;;  %7801 = vmatpush3.bf16.msra.mxu0 %v7798_v47 }
 0x1df   : > { %6709 = vmatprep.mubr.msk.f32.mxu1 %vm977_vm0, %v9770_v60 }
 0x1e1   : > { %8548 = vrot.lane.b32.xlu1 %v9961_v63, %s9277_s19  ;;  %8553 = vrot.lane.b32.xlu0 %v9963_v57, %s9277_s19 }
 0x1e2   : > { %6710 = vmatmul.mubr.msk.f32.gmra.mrb[18].mxu1 %vm977_vm0, %v9782_v1 }
 0x1e3   : > { %6712 = vmatprep.mubr.msk.f32.mxu1 %vm977_vm0, %v9788_v6 }
 0x1e5   : > { %8558 = vrot.lane.b32.xlu1 %v9973_v2, %s9277_s19  ;;  %8563 = vrot.lane.b32.xlu0 %v9975_v9, %s9277_s19 }
 0x1e6   : > { %6713 = vmatmul.mubr.msk.f32.gmra.mrb[20].mxu1 %vm977_vm0, %v9815_v18 }
 0x1e7   : > { %6715 = vmatprep.mubr.msk.f32.mxu1 %vm977_vm0, %v9817_v19 }
 0x1e9   : > { %8568 = vrot.lane.b32.xlu1 %v9985_v54, %s9277_s19  ;;  %8573 = vrot.lane.b32.xlu0 %v9657_v40, %s9278_s29 }
 0x1ea   : > { %6716 = vmatmul.mubr.msk.f32.gmra.mrb[22].mxu1 %vm977_vm0, %v9835_v27 }
 0x1eb   : > { %6718 = vmatprep.mubr.msk.f32.mxu1 %vm977_vm0, %v9841_v38 }
 0x1ed   : > { %8578 = vrot.lane.b32.xlu1 %v9674_v50, %s9278_s29  ;;  %8583 = vrot.lane.b32.xlu0 %v9687_v61, %s9278_s29 }
 0x1ee   : > { %6719 = vmatmul.mubr.msk.f32.gmra.mrb[24].mxu1 %vm977_vm0, %v9869_v31 }
 0x1ef   : > { %6721 = vmatprep.mubr.msk.f32.mxu1 %vm977_vm0, %v9871_v58 }
 0x1f1   : > { %8588 = vrot.lane.b32.xlu1 %v9701_v7, %s9278_s29  ;;  %8593 = vrot.lane.b32.xlu0 %v9711_v17, %s9278_s29 }
 0x1f2   : > { %6722 = vmatmul.mubr.msk.f32.gmra.mrb[26].mxu1 %vm977_vm0, %v9887_v8 }
 0x1f3   : > { %6724 = vmatprep.mubr.msk.f32.mxu1 %vm977_vm0, %v9892_v16 }
 0x1f5   : > { %8598 = vrot.lane.b32.xlu1 %v9725_v28, %s9278_s29  ;;  %8603 = vrot.lane.b32.xlu0 %v9739_v45, %s9278_s29 }
 0x1f6   : > { %6725 = vmatmul.mubr.msk.f32.gmra.mrb[28].mxu1 %vm977_vm0, %v9908_v53 }
 0x1f7   : > { %6727 = vmatprep.mubr.msk.f32.mxu1 %vm977_vm0, %v9912_v24 }
 0x1f9   : > { %8608 = vrot.lane.b32.xlu1 %v9762_v56, %s9278_s29  ;;  %1943 = vrot.lane.b32.xlu0 %v9659_v43, %s9278_s29 }
 0x1fa   : > { %6728 = vmatmul.mubr.msk.f32.gmra.mrb[30].mxu1 %vm977_vm0, %v9920_v29 }
 0x1fd   : > { %1945 = vrot.lane.b32.xlu1 %v9751_v55, %s9278_s29  ;;  %1947 = vrot.lane.b32.xlu0 %v9770_v60, %s9278_s29 }
 0x201   : > { %1949 = vrot.lane.b32.xlu1 %v9782_v1, %s9278_s29  ;;  %1951 = vrot.lane.b32.xlu0 %v9788_v6, %s9278_s29 }
 0x205   : > { %1953 = vrot.lane.b32.xlu1 %v9815_v18, %s9278_s29  ;;  %1955 = vrot.lane.b32.xlu0 %v9817_v19, %s9278_s29 }
 0x209   : > { %1957 = vrot.lane.b32.xlu1 %v9835_v27, %s9278_s29  ;;  %1959 = vrot.lane.b32.xlu0 %v9841_v38, %s9278_s29 }
 0x20d   : > { %1961 = vrot.lane.b32.xlu1 %v9869_v31, %s9278_s29  ;;  %1963 = vrot.lane.b32.xlu0 %v9871_v58, %s9278_s29 }
 0x20f   : > { %v8494_v14 = vpop.permute.xlu0 %8493 }
 0x210   : > { %v8496_v15 = vunpack.i.h.bf16 %v8494_v14  ;;  %v8495_v0 = vunpack.i.l.bf16 %v8494_v14 }
 0x211   : > { %1965 = vrot.lane.b32.xlu1 %v9887_v8, %s9278_s29  ;;  %1967 = vrot.lane.b32.xlu0 %v9892_v16, %s9278_s29 }
 0x212   : > { %v10053_v25 = vpack.c.bf16 %v8496_v15, %v8495_v0 }
 0x213   : > { %v10068_v34 = vpop.permute.xlu0 %8498 }
 0x214   : > { %7804 = vmatprep.subr.msk.bf16.mxu0 %vm9651_vm1, %v10053_v25 }
 0x215   : > { %1969 = vrot.lane.b32.xlu1 %v9908_v53, %s9278_s29  ;;  %1971 = vrot.lane.b32.xlu0 %v9912_v24, %s9278_s29 }
 0x217   : > { %v10066_v32 = vpop.permute.xlu1 %8503 }
 0x219   : > { %1973 = vrot.lane.b32.xlu1 %v9920_v29, %s9278_s29  ;;  %8613 = vrot.lane.b32.xlu0 %v9930_v49, %s9278_s29 }
 0x21b   : > { %v10074_v41 = vpop.permute.xlu1 %8508 }
 0x21d   : > { %8618 = vrot.lane.b32.xlu1 %v9945_v44, %s9278_s29  ;;  %8623 = vrot.lane.b32.xlu0 %v9951_v20, %s9278_s29 }
 0x21f   : > { %v10080_v10 = vpop.permute.xlu0 %8513 }
 0x221   : > { %8628 = vrot.lane.b32.xlu1 %v9961_v63, %s9278_s29  ;;  %8633 = vrot.lane.b32.xlu0 %v9963_v57, %s9278_s29 }
 0x223   : > { %v10086_v51 = vpop.permute.xlu1 %8518 }
 0x225   : > { %8638 = vrot.lane.b32.xlu1 %v9973_v2, %s9278_s29  ;;  %8643 = vrot.lane.b32.xlu0 %v9975_v9, %s9278_s29 }
 0x227   : > { %v10088_v30 = vpop.permute.xlu0 %8523 }
 0x229   : > { %8648 = vrot.lane.b32.xlu1 %v9985_v54, %s9278_s29  ;;  %8653 = vrot.lane.b32.xlu0 %v9657_v40, %s9279_s18 }
 0x22b   : > { %v10094_v11 = vpop.permute.xlu1 %8528  ;;  %v10096_v12 = vpop.permute.xlu0 %1380 }
 0x22d   : > { %8658 = vrot.lane.b32.xlu1 %v9674_v50, %s9279_s18  ;;  %8663 = vrot.lane.b32.xlu0 %v9687_v61, %s9279_s18 }
 0x22f   : > { %v10102_v13 = vpop.permute.xlu1 %1382  ;;  %v10104_v35 = vpop.permute.xlu0 %1384 }
 0x231   : > { %8668 = vrot.lane.b32.xlu1 %v9701_v7, %s9279_s18  ;;  %8673 = vrot.lane.b32.xlu0 %v9711_v17, %s9279_s18 }
 0x233   : > { %v10110_v39 = vpop.permute.xlu1 %1386  ;;  %v10112_v42 = vpop.permute.xlu0 %1388 }
 0x235   : > { %8678 = vrot.lane.b32.xlu1 %v9725_v28, %s9279_s18  ;;  %8683 = vrot.lane.b32.xlu0 %v9739_v45, %s9279_s18 }
 0x237   : > { %v10118_v48 = vpop.permute.xlu1 %1390  ;;  %v10120_v46 = vpop.permute.xlu0 %1392 }
 0x239   : > { %8688 = vrot.lane.b32.xlu1 %v9762_v56, %s9279_s18  ;;  %2490 = vrot.lane.b32.xlu0 %v9659_v43, %s9279_s18 }
 0x23b   : > { %v10126_v52 = vpop.permute.xlu1 %1394  ;;  %v10128_v59 = vpop.permute.xlu0 %1396 }
 0x23c   : > { %11922 = vst [vmem:[#allocation19_spill] sm:$0xff] %v10128_v59 }
 0x23d   : > { %2492 = vrot.lane.b32.xlu1 %v9751_v55, %s9279_s18  ;;  %2494 = vrot.lane.b32.xlu0 %v9770_v60, %s9279_s18 }
 0x23f   : > { %v10134_v21 = vpop.permute.xlu1 %1398  ;;  %v10136_v62 = vpop.permute.xlu0 %1400 }
 0x240   : > { %11923 = vst [vmem:[#allocation20_spill] sm:$0xff] %v10134_v21  ;;  %11924 = vst [vmem:[#allocation21_spill] sm:$0xff] %v10136_v62 }
 0x241   : > { %2496 = vrot.lane.b32.xlu1 %v9782_v1, %s9279_s18  ;;  %2498 = vrot.lane.b32.xlu0 %v9788_v6, %s9279_s18 }
 0x243   : > { %v10142_v4 = vpop.permute.xlu1 %1402  ;;  %v10144_v5 = vpop.permute.xlu0 %1404 }
 0x244   : > { %11925 = vst [vmem:[#allocation22_spill] sm:$0xff] %v10142_v4  ;;  %11926 = vst [vmem:[#allocation23_spill] sm:$0xff] %v10144_v5 }
 0x245   : > { %2500 = vrot.lane.b32.xlu1 %v9815_v18, %s9279_s18  ;;  %2502 = vrot.lane.b32.xlu0 %v9817_v19, %s9279_s18 }
 0x247   : > { %v10150_v3 = vpop.permute.xlu1 %1406  ;;  %v10152_v36 = vpop.permute.xlu0 %1408 }
 0x248   : > { %11927 = vst [vmem:[#allocation24_spill] sm:$0xff] %v10150_v3  ;;  %11928 = vst [vmem:[#allocation25_spill] sm:$0xff] %v10152_v36 }
 0x249   : > { %2504 = vrot.lane.b32.xlu1 %v9835_v27, %s9279_s18  ;;  %2506 = vrot.lane.b32.xlu0 %v9841_v38, %s9279_s18 }
 0x24b   : > { %v10158_v22 = vpop.permute.xlu1 %1410  ;;  %v8534_v23 = vpop.permute.xlu0 %8533 }
 0x24c   : > { %11929 = vst [vmem:[#allocation26_spill] sm:$0xff] %v10158_v22  ;;  %v8536_v26 = vunpack.i.h.bf16 %v8534_v23  ;;  %v8535_v33 = vunpack.i.l.bf16 %v8534_v23 }
 0x24d   : > { %2508 = vrot.lane.b32.xlu1 %v9869_v31, %s9279_s18  ;;  %2510 = vrot.lane.b32.xlu0 %v9871_v58, %s9279_s18 }
 0x24e   : > { %v7850_v47 = vpack.c.bf16 %v8536_v26, %v8535_v33 }
 0x24f   : > { %v8539_v14 = vpop.permute.xlu1 %8538  ;;  %v8544_v15 = vpop.permute.xlu0 %8543 }
 0x250   : > { %v8541_v0 = vunpack.i.h.bf16 %v8539_v14  ;;  %v8540_v36 = vunpack.i.l.bf16 %v8539_v14  ;;  %v8546_v3 = vunpack.i.h.bf16 %v8544_v15  ;;  %v8545_v5 = vunpack.i.l.bf16 %v8544_v15  ;;  %7851 = vmatprep.subr.bf16.mxu1 %v7850_v47 }
 0x251   : > { %2512 = vrot.lane.b32.xlu1 %v9887_v8, %s9279_s18  ;;  %2514 = vrot.lane.b32.xlu0 %v9892_v16, %s9279_s18 }
 0x252   : > { %7853 = vmatpush3.bf16.msra.mxu1 %v7850_v47  ;;  %v7854_v23 = vpack.c.bf16 %v8541_v0, %v8540_v36  ;;  %v7858_v62 = vpack.c.bf16 %v8546_v3, %v8545_v5 }
 0x253   : > { %v8549_v22 = vpop.permute.xlu1 %8548  ;;  %v8554_v4 = vpop.permute.xlu0 %8553 }
 0x254   : > { %v8551_v21 = vunpack.i.h.bf16 %v8549_v22  ;;  %v8550_v26 = vunpack.i.l.bf16 %v8549_v22  ;;  %7855 = vmatprep.subr.bf16.mxu1 %v7854_v23  ;;  %v8556_v33 = vunpack.i.h.bf16 %v8554_v4  ;;  %v8555_v14 = vunpack.i.l.bf16 %v8554_v4 }
 0x255   : > { %2516 = vrot.lane.b32.xlu1 %v9908_v53, %s9279_s18  ;;  %2518 = vrot.lane.b32.xlu0 %v9912_v24, %s9279_s18 }
 0x256   : > { %7857 = vmatpush3.bf16.msra.mxu1 %v7854_v23  ;;  %v7862_v47 = vpack.c.bf16 %v8551_v21, %v8550_v26  ;;  %v7866_v0 = vpack.c.bf16 %v8556_v33, %v8555_v14 }
 0x257   : > { %v8559_v15 = vpop.permute.xlu1 %8558  ;;  %v8564_v59 = vpop.permute.xlu0 %8563  ;;  %7859 = vmatprep.subr.bf16.mxu1 %v7858_v62 }
 0x258   : > { %v8561_v5 = vunpack.i.h.bf16 %v8559_v15  ;;  %v8560_v3 = vunpack.i.l.bf16 %v8559_v15  ;;  %v8566_v21 = vunpack.i.h.bf16 %v8564_v59  ;;  %v8565_v4 = vunpack.i.l.bf16 %v8564_v59 }
 0x259   : > { %2520 = vrot.lane.b32.xlu1 %v9920_v29, %s9279_s18  ;;  %8693 = vrot.lane.b32.xlu0 %v9930_v49, %s9279_s18 }
 0x25a   : > { %7861 = vmatpush3.bf16.msra.mxu1 %v7858_v62  ;;  %v7870_v62 = vpack.c.bf16 %v8561_v5, %v8560_v3  ;;  %v7874_v59 = vpack.c.bf16 %v8566_v21, %v8565_v4 }
 0x25b   : > { %v8569_v36 = vpop.permute.xlu1 %8568  ;;  %v8574_v22 = vpop.permute.xlu0 %8573  ;;  %7863 = vmatprep.subr.bf16.mxu1 %v7862_v47 }
 0x25c   : > { %v8571_v33 = vunpack.i.h.bf16 %v8569_v36  ;;  %v8570_v14 = vunpack.i.l.bf16 %v8569_v36  ;;  %v8576_v36 = vunpack.i.h.bf16 %v8574_v22 }
 0x25d   : > { %8698 = vrot.lane.b32.xlu1 %v9945_v44, %s9279_s18  ;;  %8703 = vrot.lane.b32.xlu0 %v9951_v20, %s9279_s18 }
 0x25e   : > { %7865 = vmatpush3.bf16.msra.mxu1 %v7862_v47 }
 0x25f   : > { %v10180_v23 = vpop.permute.xlu1 %8578  ;;  %v10182_v26 = vpop.permute.xlu0 %8583  ;;  %7867 = vmatprep.subr.bf16.mxu1 %v7866_v0 }
 0x260   : > { %11930 = vst [vmem:[#allocation27_spill] sm:$0xff] %v10180_v23  ;;  %11931 = vst [vmem:[#allocation28_spill] sm:$0xff] %v10182_v26  ;;  %v8575_v26 = vunpack.i.l.bf16 %v8574_v22 }
 0x261   : > { %8708 = vrot.lane.b32.xlu1 %v9961_v63, %s9279_s18  ;;  %8713 = vrot.lane.b32.xlu0 %v9963_v57, %s9279_s18 }
 0x262   : > { %7869 = vmatpush3.bf16.msra.mxu1 %v7866_v0  ;;  %v7878_v0 = vpack.c.bf16 %v8571_v33, %v8570_v14 }
 0x263   : > { %v10188_v15 = vpop.permute.xlu1 %8588  ;;  %v10190_v47 = vpop.permute.xlu0 %8593  ;;  %7871 = vmatprep.subr.bf16.mxu1 %v7870_v62 }
 0x264   : > { %11932 = vst [vmem:[#allocation29_spill] sm:$0xff] %v10188_v15  ;;  %11933 = vst [vmem:[#allocation30_spill] sm:$0xff] %v10190_v47 }
 0x265   : > { %8718 = vrot.lane.b32.xlu1 %v9973_v2, %s9279_s18  ;;  %8723 = vrot.lane.b32.xlu0 %v9975_v9, %s9279_s18 }
 0x266   : > { %7873 = vmatpush3.bf16.msra.mxu1 %v7870_v62  ;;  %v10208_v62 = vpack.c.bf16 %v8576_v36, %v8575_v26 }
 0x267   : > { %v10196_v5 = vpop.permute.xlu1 %8598  ;;  %v10198_v3 = vpop.permute.xlu0 %8603  ;;  %7875 = vmatprep.subr.bf16.mxu1 %v7874_v59 }
 0x268   : > { %11934 = vst [vmem:[#allocation31_spill] sm:$0xff] %v10196_v5  ;;  %11935 = vst [vmem:[#allocation32_spill] sm:$0xff] %v10198_v3  ;;  %v8500_v3 = vunpack.i.l.bf16 %v10068_v34 }
 0x269   : > { %8728 = vrot.lane.b32.xlu1 %v9985_v54, %s9279_s18  ;;  %8733 = vrot.lane.b32.xlu0 %v9657_v40, %s9280_s16  ;;  %11938 = vst [vmem:[#allocation35_spill] sm:$0xff] %v10208_v62 }
 0x26a   : > { %7877 = vmatpush3.bf16.msra.mxu1 %v7874_v59 }
 0x26b   : > { %v10204_v21 = vpop.permute.xlu1 %8608  ;;  %v10206_v4 = vpop.permute.xlu0 %1943  ;;  %7879 = vmatprep.subr.bf16.mxu1 %v7878_v0 }
 0x26c   : > { %11936 = vst [vmem:[#allocation33_spill] sm:$0xff] %v10204_v21  ;;  %11937 = vst [vmem:[#allocation34_spill] sm:$0xff] %v10206_v4  ;;  %v8501_v21 = vunpack.i.h.bf16 %v10068_v34 }
 0x26d   : > { %8738 = vrot.lane.b32.xlu1 %v9674_v50, %s9280_s16  ;;  %8743 = vrot.lane.b32.xlu0 %v9687_v61, %s9280_s16 }
 0x26e   : > { %7881 = vmatpush3.bf16.msra.mxu1 %v7878_v0 }
 0x26f   : > { %7884 = vmatprep.subr.msk.bf16.mxu1 %vm9651_vm1, %v10208_v62  ;;  %v10217_v22 = vpop.permute.xlu1 %1945  ;;  %v10219_v33 = vpop.permute.xlu0 %1947  ;;  %v7808_v62 = vpack.c.bf16 %v8501_v21, %v8500_v3 }
 0x270   : > { %11939 = vst [vmem:[#allocation36_spill] sm:$0xff] %v10217_v22  ;;  %11940 = vst [vmem:[#allocation37_spill] sm:$0xff] %v10219_v33 }
 0x271   : > { %8748 = vrot.lane.b32.xlu1 %v9701_v7, %s9280_s16  ;;  %8753 = vrot.lane.b32.xlu0 %v9711_v17, %s9280_s16 }
 0x273   : > { %v10225_v26 = vpop.permute.xlu1 %1949  ;;  %v10231_v14 = vpop.permute.xlu0 %1951 }
 0x274   : > { %11941 = vst [vmem:[#allocation38_spill] sm:$0xff] %v10225_v26  ;;  %11942 = vst [vmem:[#allocation39_spill] sm:$0xff] %v10231_v14 }
 0x275   : > { %8758 = vrot.lane.b32.xlu1 %v9725_v28, %s9280_s16  ;;  %8763 = vrot.lane.b32.xlu0 %v9739_v45, %s9280_s16 }
 0x277   : > { %v10237_v59 = vpop.permute.xlu1 %1953  ;;  %v10239_v0 = vpop.permute.xlu0 %1955 }
 0x278   : > { %11943 = vst [vmem:[#allocation40_spill] sm:$0xff] %v10237_v59  ;;  %11944 = vst [vmem:[#allocation41_spill] sm:$0xff] %v10239_v0 }
 0x279   : > { %8768 = vrot.lane.b32.xlu1 %v9762_v56, %s9280_s16  ;;  %3037 = vrot.lane.b32.xlu0 %v9659_v43, %s9280_s16 }
 0x27b   : > { %v10245_v36 = vpop.permute.xlu1 %1957  ;;  %v10251_v14 = vpop.permute.xlu0 %1959 }
 0x27c   : > { %11945 = vst [vmem:[#allocation42_spill] sm:$0xff] %v10245_v36  ;;  %11946 = vst [vmem:[#allocation43_spill] sm:$0xff] %v10251_v14 }
 0x27d   : > { %3039 = vrot.lane.b32.xlu1 %v9751_v55, %s9280_s16  ;;  %3041 = vrot.lane.b32.xlu0 %v9770_v60, %s9280_s16 }
 0x27f   : > { %v10257_v0 = vpop.permute.xlu1 %1961  ;;  %v10259_v59 = vpop.permute.xlu0 %1963 }
 0x280   : > { %11947 = vst [vmem:[#allocation44_spill] sm:$0xff] %v10257_v0  ;;  %11948 = vst [vmem:[#allocation45_spill] sm:$0xff] %v10259_v59 }
 0x281   : > { %3043 = vrot.lane.b32.xlu1 %v9782_v1, %s9280_s16  ;;  %3045 = vrot.lane.b32.xlu0 %v9788_v6, %s9280_s16 }
 0x283   : > { %v10265_v36 = vpop.permute.xlu1 %1965  ;;  %v10271_v14 = vpop.permute.xlu0 %1967 }
 0x284   : > { %11949 = vst [vmem:[#allocation46_spill] sm:$0xff] %v10265_v36  ;;  %11950 = vst [vmem:[#allocation47_spill] sm:$0xff] %v10271_v14 }
 0x285   : > { %3047 = vrot.lane.b32.xlu1 %v9815_v18, %s9280_s16  ;;  %3049 = vrot.lane.b32.xlu0 %v9817_v19, %s9280_s16 }
 0x287   : > { %v10277_v59 = vpop.permute.xlu1 %1969  ;;  %v10279_v0 = vpop.permute.xlu0 %1971 }
 0x288   : > { %11951 = vst [vmem:[#allocation48_spill] sm:$0xff] %v10277_v59  ;;  %11952 = vst [vmem:[#allocation49_spill] sm:$0xff] %v10279_v0 }
 0x289   : > { %3051 = vrot.lane.b32.xlu1 %v9835_v27, %s9280_s16  ;;  %3053 = vrot.lane.b32.xlu0 %v9841_v38, %s9280_s16 }
 0x28b   : > { %v10285_v36 = vpop.permute.xlu1 %1973  ;;  %v10291_v14 = vpop.permute.xlu0 %8613 }
 0x28c   : > { %11953 = vst [vmem:[#allocation50_spill] sm:$0xff] %v10285_v36 }
 0x28d   : > { %3055 = vrot.lane.b32.xlu1 %v9869_v31, %s9280_s16  ;;  %3057 = vrot.lane.b32.xlu0 %v9871_v58, %s9280_s16 }
 0x28f   : > { %v10297_v0 = vpop.permute.xlu1 %8618  ;;  %v10299_v59 = vpop.permute.xlu0 %8623 }
 0x291   : > { %3059 = vrot.lane.b32.xlu1 %v9887_v8, %s9280_s16  ;;  %3061 = vrot.lane.b32.xlu0 %v9892_v16, %s9280_s16 }
 0x293   : > { %v10305_v36 = vpop.permute.xlu1 %8628  ;;  %v10311_v26 = vpop.permute.xlu0 %8633 }
 0x295   : > { %3063 = vrot.lane.b32.xlu1 %v9908_v53, %s9280_s16  ;;  %3065 = vrot.lane.b32.xlu0 %v9912_v24, %s9280_s16 }
 0x297   : > { %v10317_v33 = vpop.permute.xlu1 %8638  ;;  %v10319_v22 = vpop.permute.xlu0 %8643 }
 0x299   : > { %3067 = vrot.lane.b32.xlu1 %v9920_v29, %s9280_s16  ;;  %8773 = vrot.lane.b32.xlu0 %v9930_v49, %s9280_s16 }
 0x29b   : > { %v10327_v4 = vpop.permute.xlu1 %8648  ;;  %v10333_v15 = vpop.permute.xlu0 %8653 }
 0x29c   : > { %11954 = vst [vmem:[#allocation51_spill] sm:$0xff] %v10327_v4  ;;  %11955 = vst [vmem:[#allocation52_spill] sm:$0xff] %v10333_v15 }
 0x29d   : > { %8778 = vrot.lane.b32.xlu1 %v9945_v44, %s9280_s16  ;;  %8783 = vrot.lane.b32.xlu0 %v9951_v20, %s9280_s16 }
 0x29f   : > { %v10340_v23 = vpop.permute.xlu1 %8658 }
 0x2a0   : > { %11956 = vst [vmem:[#allocation53_spill] sm:$0xff] %v10340_v23 }
 0x2a1   : > { %8788 = vrot.lane.b32.xlu1 %v9961_v63, %s9280_s16  ;;  %8793 = vrot.lane.b32.xlu0 %v9963_v57, %s9280_s16 }
 0x2a3   : > { %v10354_v4 = vpop.permute.xlu1 %8668 }
 0x2a4   : > { %11957 = vst [vmem:[#allocation54_spill] sm:$0xff] %v10354_v4 }
 0x2a5   : > { %8798 = vrot.lane.b32.xlu1 %v9973_v2, %s9280_s16  ;;  %8803 = vrot.lane.b32.xlu0 %v9975_v9, %s9280_s16 }
 0x2a9   : > { %8808 = vrot.lane.b32.xlu1 %v9985_v54, %s9280_s16  ;;  %8813 = vrot.lane.b32.xlu0 %v9657_v40, %s9281_s23 }
 0x2ad   : > { %8818 = vrot.lane.b32.xlu1 %v9674_v50, %s9281_s23  ;;  %8823 = vrot.lane.b32.xlu0 %v9687_v61, %s9281_s23 }
 0x2b1   : > { %v6708_v5 = vpop.f32.mrb[16].mxu1  ;;  %8828 = vrot.lane.b32.xlu1 %v9701_v7, %s9281_s23  ;;  %8833 = vrot.lane.b32.xlu0 %v9711_v17, %s9281_s23 }
 0x2b2   : > { %v1140_v47 = vpop.f32.mrb[17].mxu1 }
 0x2b3   : > { %6762 = vmatprep.mubr.f32.mxu0 %v1140_v47  ;;  %v8506_v47 = vunpack.i.h.bf16 %v10066_v32 }
 0x2b4   : > { %6763 = vmatmul.mubr.f32.vlgmr.msra.gmra.mrb[32].mxu0 %v6708_v5  ;;  %v8505_v5 = vunpack.i.l.bf16 %v10066_v32 }
 0x2b5   : > { %7807 = vmatpush3.bf16.xpose.msk.msra.mxu0 %vm9651_vm1, %v10053_v25  ;;  %v6711_v34 = vpop.f32.mrb[18].mxu1  ;;  %8838 = vrot.lane.b32.xlu1 %v9725_v28, %s9281_s23  ;;  %v10348_v25 = vpop.permute.xlu0 %8663 }
 0x2b6   : > { %7810 = vmatprep.subr.msk.bf16.mxu0 %vm9651_vm1, %v7808_v62  ;;  %8843 = vrot.lane.b32.xlu0 %v9739_v45, %s9281_s23  ;;  %v1150_v15 = vpop.f32.mrb[19].mxu1  ;;  %v7814_v23 = vpack.c.bf16 %v8506_v47, %v8505_v5  ;;  %v8511_v47 = vunpack.i.h.bf16 %v10074_v41  ;;  %v8510_v5 = vunpack.i.l.bf16 %v10074_v41 }
 0x2b7   : > { %6765 = vmatprep.mubr.f32.mxu0 %v1150_v15 }
 0x2b8   : > { %6766 = vmatmul.mubr.f32.gmra.mrb[34].mxu0 %v6711_v34  ;;  %v7820_v4 = vpack.c.bf16 %v8511_v47, %v8510_v5  ;;  %v8515_v47 = vunpack.i.l.bf16 %v10080_v10 }
 0x2b9   : > { %v6714_v3 = vpop.f32.mrb[20].mxu1  ;;  %8848 = vrot.lane.b32.xlu1 %v9762_v56, %s9281_s23  ;;  %v10364_v34 = vpop.permute.xlu0 %8673 }
 0x2ba   : > { %3584 = vrot.lane.b32.xlu0 %v9659_v43, %s9281_s23  ;;  %v1160_v21 = vpop.f32.mrb[21].mxu1  ;;  %11958 = vst [vmem:[#allocation55_spill] sm:$0xff] %v10364_v34 }
 0x2bb   : > { %6768 = vmatprep.mubr.f32.mxu0 %v1160_v21 }
 0x2bc   : > { %6769 = vmatmul.mubr.f32.gmra.mrb[36].mxu0 %v6714_v3  ;;  %v10370_v3 = vpop.permute.xlu1 %8678 }
 0x2bd   : > { %7813 = vmatpush3.bf16.xpose.msk.msra.mxu0 %vm9651_vm1, %v7808_v62  ;;  %v6717_v32 = vpop.f32.mrb[22].mxu1  ;;  %3586 = vrot.lane.b32.xlu1 %v9751_v55, %s9281_s23  ;;  %v10374_v34 = vpop.permute.xlu0 %8683 }
 0x2be   : > { %7816 = vmatprep.subr.msk.bf16.mxu0 %vm9651_vm1, %v7814_v23  ;;  %3588 = vrot.lane.b32.xlu0 %v9770_v60, %s9281_s23  ;;  %v1170_v15 = vpop.f32.mrb[23].mxu1  ;;  %11959 = vst [vmem:[#allocation56_spill] sm:$0xff] %v10374_v34 }
 0x2bf   : > { %6771 = vmatprep.mubr.f32.mxu0 %v1170_v15  ;;  %v8516_v15 = vunpack.i.h.bf16 %v10080_v10 }
 0x2c0   : > { %6772 = vmatmul.mubr.f32.gmra.mrb[38].mxu0 %v6717_v32  ;;  %v10386_v5 = vpop.permute.xlu1 %8688 }
 0x2c1   : > { %v6720_v62 = vpop.f32.mrb[24].mxu1  ;;  %3590 = vrot.lane.b32.xlu1 %v9782_v1, %s9281_s23  ;;  %v7826_v34 = vpack.c.bf16 %v8516_v15, %v8515_v47  ;;  %v8521_v15 = vunpack.i.h.bf16 %v10086_v51  ;;  %v8520_v47 = vunpack.i.l.bf16 %v10086_v51 }
 0x2c2   : > { %3592 = vrot.lane.b32.xlu0 %v9788_v6, %s9281_s23  ;;  %v1180_v21 = vpop.f32.mrb[25].mxu1 }
 0x2c3   : > { %6774 = vmatprep.mubr.f32.mxu0 %v1180_v21  ;;  %v10392_v21 = vpop.permute.xlu0 %2490 }
 0x2c4   : > { %6775 = vmatmul.mubr.f32.gmra.mrb[40].mxu0 %v6720_v62 }
 0x2c5   : > { %7819 = vmatpush3.bf16.xpose.msk.msra.mxu0 %vm9651_vm1, %v7814_v23  ;;  %v6723_v41 = vpop.f32.mrb[26].mxu1  ;;  %3594 = vrot.lane.b32.xlu1 %v9815_v18, %s9281_s23 }
 0x2c6   : > { %7822 = vmatprep.subr.msk.bf16.mxu0 %vm9651_vm1, %v7820_v4  ;;  %3596 = vrot.lane.b32.xlu0 %v9817_v19, %s9281_s23  ;;  %v1190_v32 = vpop.f32.mrb[27].mxu1 }
 0x2c7   : > { %6777 = vmatprep.mubr.f32.mxu0 %v1190_v32 }
 0x2c8   : > { %6778 = vmatmul.mubr.f32.gmra.mrb[42].mxu0 %v6723_v41  ;;  %v10398_v41 = vpop.permute.xlu1 %2492 }
 0x2c9   : > { %v6726_v23 = vpop.f32.mrb[28].mxu1  ;;  %3598 = vrot.lane.b32.xlu1 %v9835_v27, %s9281_s23 }
 0x2ca   : > { %3600 = vrot.lane.b32.xlu0 %v9841_v38, %s9281_s23  ;;  %v1200_v62 = vpop.f32.mrb[29].mxu1 }
 0x2cb   : > { %6780 = vmatprep.mubr.f32.mxu0 %v1200_v62 }
 0x2cc   : > { %6781 = vmatmul.mubr.f32.gmra.mrb[44].mxu0 %v6726_v23  ;;  %v7832_v23 = vpack.c.bf16 %v8521_v15, %v8520_v47  ;;  %v10414_v62 = vpop.permute.xlu1 %2496  ;;  %v8530_v47 = vunpack.i.l.bf16 %v10094_v11 }
 0x2cd   : > { %7825 = vmatpush3.bf16.xpose.msk.msra.mxu0 %vm9651_vm1, %v7820_v4  ;;  %v6729_v10 = vpop.f32.mrb[30].mxu1  ;;  %3602 = vrot.lane.b32.xlu1 %v9869_v31, %s9281_s23  ;;  %v10406_v4 = vpop.permute.xlu0 %2494 }
 0x2ce   : > { %7828 = vmatprep.subr.msk.bf16.mxu0 %vm9651_vm1, %v7826_v34  ;;  %3604 = vrot.lane.b32.xlu0 %v9871_v58, %s9281_s23  ;;  %v1210_v32 = vpop.f32.mrb[31].mxu1 }
 0x2cf   : > { %6783 = vmatprep.mubr.f32.mxu0 %v1210_v32 }
 0x2d0   : > { %6784 = vmatmul.mubr.f32.gmra.mrb[46].mxu0 %v6729_v10  ;;  %v8525_v10 = vunpack.i.l.bf16 %v10088_v30  ;;  %v10430_v32 = vpop.permute.xlu1 %2500 }
 0x2d1   : > { %6818 = vmatprep.mubr.msk.f32.mxu0 %vm977_vm0, %v10096_v12  ;;  %3606 = vrot.lane.b32.xlu1 %v9887_v8, %s9281_s23  ;;  %v10424_v51 = vpop.permute.xlu0 %2498  ;;  %v8526_v12 = vunpack.i.h.bf16 %v10088_v30  ;;  %11960 = vst [vmem:[#allocation57_spill] sm:$0xff] %v10430_v32  ;;  %v8531_v30 = vunpack.i.h.bf16 %v10094_v11  ;;  %v8615_v11 = vunpack.i.l.bf16 %v10291_v14 }
 0x2d2   : > { %3608 = vrot.lane.b32.xlu0 %v9892_v16, %s9281_s23 }
 0x2d4   : > { %v10446_v32 = vpop.permute.xlu1 %2504 }
 0x2d5   : > { %7831 = vmatpush3.bf16.xpose.msk.msra.mxu0 %vm9651_vm1, %v7826_v34  ;;  %3610 = vrot.lane.b32.xlu1 %v9908_v53, %s9281_s23  ;;  %v7838_v34 = vpack.c.bf16 %v8526_v12, %v8525_v10  ;;  %v10434_v15 = vpop.permute.xlu0 %2502  ;;  %11961 = vst [vmem:[#allocation58_spill] sm:$0xff] %v10446_v32  ;;  %v7844_v12 = vpack.c.bf16 %v8531_v30, %v8530_v47  ;;  %v8616_v10 = vunpack.i.h.bf16 %v10291_v14  ;;  %v8621_v14 = vunpack.i.h.bf16 %v10297_v0 }
 0x2d6   : > { %7834 = vmatprep.subr.msk.bf16.mxu0 %vm9651_vm1, %v7832_v23  ;;  %3612 = vrot.lane.b32.xlu0 %v9912_v24, %s9281_s23  ;;  %v8620_v47 = vunpack.i.l.bf16 %v10297_v0  ;;  %v8631_v0 = vunpack.i.h.bf16 %v10305_v36 }
 0x2d8   : > { %v10460_v32 = vpop.permute.xlu1 %2508 }
 0x2d9   : > { %3614 = vrot.lane.b32.xlu1 %v9920_v29, %s9281_s23  ;;  %11963 = vst [vmem:[#allocation60_spill] sm:$0xff] %v10460_v32 }
 0x2da   : > { %8853 = vrot.lane.b32.xlu0 %v9930_v49, %s9281_s23 }
 0x2dc   : > { %v10472_v30 = vpop.permute.xlu1 %2512 }
 0x2dd   : > { %7837 = vmatpush3.bf16.xpose.msk.msra.mxu0 %vm9651_vm1, %v7832_v23  ;;  %8858 = vrot.lane.b32.xlu1 %v9945_v44, %s9281_s23  ;;  %v10452_v23 = vpop.permute.xlu0 %2506  ;;  %11965 = vst [vmem:[#allocation62_spill] sm:$0xff] %v10472_v30  ;;  %v7934_v30 = vpack.c.bf16 %v8621_v14, %v8620_v47 }
 0x2de   : > { %7840 = vmatprep.subr.msk.bf16.mxu0 %vm9651_vm1, %v7838_v34  ;;  %8863 = vrot.lane.b32.xlu0 %v9951_v20, %s9281_s23  ;;  %11962 = vst [vmem:[#allocation59_spill] sm:$0xff] %v10452_v23 }
 0x2e1   : > { %8868 = vrot.lane.b32.xlu1 %v9961_v63, %s9281_s23  ;;  %v10466_v23 = vpop.permute.xlu0 %2510 }
 0x2e2   : > { %8873 = vrot.lane.b32.xlu0 %v9963_v57, %s9281_s23  ;;  %11964 = vst [vmem:[#allocation61_spill] sm:$0xff] %v10466_v23 }
 0x2e5   : > { %7843 = vmatpush3.bf16.xpose.msk.msra.mxu0 %vm9651_vm1, %v7838_v34  ;;  %8878 = vrot.lane.b32.xlu1 %v9973_v2, %s9281_s23  ;;  %v7930_v34 = vpack.c.bf16 %v8616_v10, %v8615_v11  ;;  %v10482_v23 = vpop.permute.xlu0 %2514  ;;  %v10486_v10 = vpop.permute.xlu1 %2516  ;;  %v8625_v11 = vunpack.i.l.bf16 %v10299_v59 }
 0x2e6   : > { %7846 = vmatprep.subr.msk.bf16.mxu0 %vm9651_vm1, %v7844_v12  ;;  %8883 = vrot.lane.b32.xlu0 %v9975_v9, %s9281_s23 }
 0x2e9   : > { %8888 = vrot.lane.b32.xlu1 %v9985_v54, %s9281_s23  ;;  %v10494_v32 = vpop.permute.xlu0 %2518  ;;  %v10504_v47 = vpop.permute.xlu1 %2520 }
 0x2ea   : > { %8893 = vrot.lane.b32.xlu0 %v9657_v40, %s9282_s24 }
 0x2ed   : > { %7849 = vmatpush3.bf16.xpose.msk.msra.mxu0 %vm9651_vm1, %v7844_v12  ;;  %8898 = vrot.lane.b32.xlu1 %v9674_v50, %s9282_s24  ;;  %v8626_v12 = vunpack.i.h.bf16 %v10299_v59  ;;  %v8630_v59 = vunpack.i.l.bf16 %v10305_v36  ;;  %v10516_v36 = vpop.permute.xlu0 %8693 }
 0x2ee   : > { %8903 = vrot.lane.b32.xlu0 %v9687_v61, %s9282_s24  ;;  %7931 = vmatprep.subr.bf16.mxu0 %v7930_v34 }
 0x2ef   : > { %v7938_v14 = vpack.c.bf16 %v8626_v12, %v8625_v11  ;;  %v8646_v12 = vunpack.i.h.bf16 %v10319_v22 }
 0x2f1   : > { %8908 = vrot.lane.b32.xlu1 %v9701_v7, %s9282_s24 }
 0x2f2   : > { %8913 = vrot.lane.b32.xlu0 %v9711_v17, %s9282_s24 }
 0x2f4   : > { %6819 = vmatmul.mubr.msk.f32.vlgmr.msra.gmra.mrb[48].mxu0 %vm977_vm0, %v10102_v13  ;;  %v8636_v13 = vunpack.i.h.bf16 %v10311_v26 }
 0x2f5   : > { %6821 = vmatprep.mubr.msk.f32.mxu0 %vm977_vm0, %v10104_v35  ;;  %7933 = vmatpush3.bf16.msra.mxu0 %v7930_v34  ;;  %v8635_v35 = vunpack.i.l.bf16 %v10311_v26  ;;  %v7942_v34 = vpack.c.bf16 %v8631_v0, %v8630_v59  ;;  %v8640_v26 = vunpack.i.l.bf16 %v10317_v33  ;;  %v11968_v59 = vld [vmem:[#allocation21_spill] sm:$0xff] }
 0x2f6   : > { %8918 = vrot.lane.b32.xlu1 %v9725_v28, %s9282_s24  ;;  %8923 = vrot.lane.b32.xlu0 %v9739_v45, %s9282_s24 }
 0x2f7   : > { %7935 = vmatprep.subr.bf16.mxu0 %v7934_v30 }
 0x2f8   : > { %6822 = vmatmul.mubr.msk.f32.gmra.mrb[50].mxu0 %vm977_vm0, %v10110_v39  ;;  %v10522_v39 = vpop.permute.xlu1 %8698 }
 0x2f9   : > { %6824 = vmatprep.mubr.msk.f32.mxu0 %vm977_vm0, %v10112_v42  ;;  %7937 = vmatpush3.bf16.msra.mxu0 %v7934_v30  ;;  %v8641_v42 = vunpack.i.h.bf16 %v10317_v33  ;;  %v7946_v30 = vpack.c.bf16 %v8636_v13, %v8635_v35  ;;  %v8645_v33 = vunpack.i.l.bf16 %v10319_v22 }
 0x2fa   : > { %8928 = vrot.lane.b32.xlu1 %v9762_v56, %s9282_s24  ;;  %4131 = vrot.lane.b32.xlu0 %v9659_v43, %s9282_s24 }
 0x2fb   : > { %7939 = vmatprep.subr.bf16.mxu0 %v7938_v14  ;;  %v7950_v11 = vpack.c.bf16 %v8641_v42, %v8640_v26  ;;  %v11970_v42 = vld [vmem:[#allocation22_spill] sm:$0xff]  ;;  %v11971_v26 = vld [vmem:[#allocation23_spill] sm:$0xff] }
 0x2fc   : > { %6825 = vmatmul.mubr.msk.f32.gmra.mrb[52].mxu0 %vm977_vm0, %v10118_v48  ;;  %v10532_v48 = vpop.permute.xlu0 %8703  ;;  %v10542_v0 = vpop.permute.xlu1 %8708 }
 0x2fd   : > { %6827 = vmatprep.mubr.msk.f32.mxu0 %vm977_vm0, %v10120_v46  ;;  %7941 = vmatpush3.bf16.msra.mxu0 %v7938_v14  ;;  %v11966_v46 = vld [vmem:[#allocation19_spill] sm:$0xff] }
 0x2fe   : > { %4133 = vrot.lane.b32.xlu1 %v9751_v55, %s9282_s24  ;;  %4135 = vrot.lane.b32.xlu0 %v9770_v60, %s9282_s24  ;;  %v11969_v14 = vld [vmem:[#allocation51_spill] sm:$0xff] }
 0x2ff   : > { %7943 = vmatprep.subr.bf16.mxu0 %v7942_v34  ;;  %v8651_v13 = vunpack.i.h.bf16 %v11969_v14  ;;  %v8650_v22 = vunpack.i.l.bf16 %v11969_v14 }
 0x300   : > { %6828 = vmatmul.mubr.msk.f32.gmra.mrb[54].mxu0 %vm977_vm0, %v10126_v52  ;;  %v11967_v52 = vld [vmem:[#allocation20_spill] sm:$0xff]  ;;  %v10554_v35 = vpop.permute.xlu0 %8713 }
 0x301   : > { %6830 = vmatprep.mubr.msk.f32.mxu0 %vm977_vm0, %v11966_v46  ;;  %7945 = vmatpush3.bf16.msra.mxu0 %v7942_v34  ;;  %v7954_v34 = vpack.c.bf16 %v8646_v12, %v8645_v33  ;;  %v7958_v46 = vpack.c.bf16 %v8651_v13, %v8650_v22  ;;  %v11973_v33 = vld [vmem:[#allocation24_spill] sm:$0xff] }
 0x302   : > { %4137 = vrot.lane.b32.xlu1 %v9782_v1, %s9282_s24  ;;  %4139 = vrot.lane.b32.xlu0 %v9788_v6, %s9282_s24 }
 0x303   : > { %7947 = vmatprep.subr.bf16.mxu0 %v7946_v30 }
 0x304   : > { %6831 = vmatmul.mubr.msk.f32.gmra.mrb[56].mxu0 %vm977_vm0, %v11967_v52  ;;  %v11972_v52 = vld [vmem:[#allocation52_spill] sm:$0xff]  ;;  %v10570_v14 = vpop.permute.xlu0 %8723 }
 0x305   : > { %6833 = vmatprep.mubr.msk.f32.mxu0 %vm977_vm0, %v11968_v59  ;;  %7949 = vmatpush3.bf16.msra.mxu0 %v7946_v30  ;;  %v10560_v30 = vpop.permute.xlu1 %8718  ;;  %v8656_v59 = vunpack.i.h.bf16 %v11972_v52  ;;  %v8655_v12 = vunpack.i.l.bf16 %v11972_v52 }
 0x306   : > { %4141 = vrot.lane.b32.xlu1 %v9815_v18, %s9282_s24  ;;  %4143 = vrot.lane.b32.xlu0 %v9817_v19, %s9282_s24 }
 0x307   : > { %7951 = vmatprep.subr.bf16.mxu0 %v7950_v11  ;;  %v10578_v13 = vpack.c.bf16 %v8656_v59, %v8655_v12 }
 0x308   : > { %6834 = vmatmul.mubr.msk.f32.gmra.mrb[58].mxu0 %vm977_vm0, %v11970_v42  ;;  %v11975_v42 = vld [vmem:[#allocation26_spill] sm:$0xff] }
 0x309   : > { %6836 = vmatprep.mubr.msk.f32.mxu0 %vm977_vm0, %v11971_v26  ;;  %7953 = vmatpush3.bf16.msra.mxu0 %v7950_v11  ;;  %v11974_v11 = vld [vmem:[#allocation25_spill] sm:$0xff]  ;;  %v10580_v22 = vpop.permute.xlu1 %8728 }
 0x30a   : > { %4145 = vrot.lane.b32.xlu1 %v9835_v27, %s9282_s24  ;;  %4147 = vrot.lane.b32.xlu0 %v9841_v38, %s9282_s24 }
 0x30b   : > { %7955 = vmatprep.subr.bf16.mxu0 %v7954_v34 }
 0x30c   : > { %6837 = vmatmul.mubr.msk.f32.gmra.mrb[60].mxu0 %vm977_vm0, %v11973_v33 }
 0x30d   : > { %6839 = vmatprep.mubr.msk.f32.mxu0 %vm977_vm0, %v11974_v11  ;;  %7957 = vmatpush3.bf16.msra.mxu0 %v7954_v34  ;;  %v10589_v34 = vpop.permute.xlu0 %8733  ;;  %v10593_v26 = vpop.permute.xlu1 %8738 }
 0x30e   : > { %4149 = vrot.lane.b32.xlu1 %v9869_v31, %s9282_s24  ;;  %4151 = vrot.lane.b32.xlu0 %v9871_v58, %s9282_s24 }
 0x30f   : > { %7959 = vmatprep.subr.bf16.mxu0 %v7958_v46 }
 0x310   : > { %6840 = vmatmul.mubr.msk.f32.gmra.mrb[62].mxu0 %vm977_vm0, %v11975_v42 }
 0x311   : > { %7961 = vmatpush3.bf16.msra.mxu0 %v7958_v46  ;;  %v10599_v46 = vpop.permute.xlu0 %8743  ;;  %v10605_v52 = vpop.permute.xlu1 %8748 }
 0x312   : > { %7964 = vmatprep.subr.msk.bf16.mxu0 %vm9651_vm1, %v10578_v13  ;;  %4153 = vrot.lane.b32.xlu1 %v9887_v8, %s9282_s24 }
 0x313   : > { %4155 = vrot.lane.b32.xlu0 %v9892_v16, %s9282_s24 }
 0x315   : > { %v10609_v59 = vpop.permute.xlu0 %8753  ;;  %v10613_v12 = vpop.permute.xlu1 %8758 }
 0x316   : > { %4157 = vrot.lane.b32.xlu1 %v9908_v53, %s9282_s24  ;;  %11976 = vst [vmem:[#allocation19_spill] sm:$0xff] %v10613_v12 }
 0x317   : > { %4159 = vrot.lane.b32.xlu0 %v9912_v24, %s9282_s24 }
 0x319   : > { %v10619_v33 = vpop.permute.xlu0 %8763  ;;  %v10625_v11 = vpop.permute.xlu1 %8768 }
 0x31a   : > { %4161 = vrot.lane.b32.xlu1 %v9920_v29, %s9282_s24  ;;  %11977 = vst [vmem:[#allocation20_spill] sm:$0xff] %v10619_v33  ;;  %11978 = vst [vmem:[#allocation21_spill] sm:$0xff] %v10625_v11 }
 0x31b   : > { %8933 = vrot.lane.b32.xlu0 %v9930_v49, %s9282_s24 }
 0x31d   : > { %v10629_v42 = vpop.permute.xlu0 %3037  ;;  %v10633_v12 = vpop.permute.xlu1 %3039 }
 0x31e   : > { %8938 = vrot.lane.b32.xlu1 %v9945_v44, %s9282_s24 }
 0x31f   : > { %8943 = vrot.lane.b32.xlu0 %v9951_v20, %s9282_s24 }
 0x321   : > { %v10639_v33 = vpop.permute.xlu0 %3041  ;;  %v10645_v11 = vpop.permute.xlu1 %3043 }
 0x322   : > { %8948 = vrot.lane.b32.xlu1 %v9961_v63, %s9282_s24 }
 0x323   : > { %8953 = vrot.lane.b32.xlu0 %v9963_v57, %s9282_s24 }
 0x326   : > { %8958 = vrot.lane.b32.xlu1 %v9973_v2, %s9282_s24 }
 0x327   : > { %8963 = vrot.lane.b32.xlu0 %v9975_v9, %s9282_s24 }
 0x32a   : > { %8968 = vrot.lane.b32.xlu1 %v9985_v54, %s9282_s24 }
 0x32b   : > { %8973 = vrot.lane.b32.xlu0 %v9657_v40, %s9283_s9  ;;  %v10649_v40 = vpop.permute.xlu0 %3045 }
 0x32e   : > { %8978 = vrot.lane.b32.xlu1 %v9674_v50, %s9283_s9  ;;  %v10653_v50 = vpop.permute.xlu1 %3047 }
 0x32f   : > { %8983 = vrot.lane.b32.xlu0 %v9687_v61, %s9283_s9  ;;  %v10659_v61 = vpop.permute.xlu0 %3049 }
 0x332   : > { %8988 = vrot.lane.b32.xlu1 %v9701_v7, %s9283_s9  ;;  %v10665_v7 = vpop.permute.xlu1 %3051 }
 0x333   : > { %8993 = vrot.lane.b32.xlu0 %v9711_v17, %s9283_s9  ;;  %v10669_v17 = vpop.permute.xlu0 %3053 }
 0x336   : > { %8998 = vrot.lane.b32.xlu1 %v9725_v28, %s9283_s9  ;;  %v10673_v28 = vpop.permute.xlu1 %3055 }
 0x337   : > { %9003 = vrot.lane.b32.xlu0 %v9739_v45, %s9283_s9 }
 0x33a   : > { %9008 = vrot.lane.b32.xlu1 %v9762_v56, %s9283_s9  ;;  %v10685_v45 = vpop.permute.xlu1 %3059 }
 0x33b   : > { %4678 = vrot.lane.b32.xlu0 %v9659_v43, %s9283_s9  ;;  %v10679_v43 = vpop.permute.xlu0 %3057 }
 0x33e   : > { %4680 = vrot.lane.b32.xlu1 %v9751_v55, %s9283_s9  ;;  %v10693_v56 = vpop.permute.xlu1 %3063 }
 0x33f   : > { %4682 = vrot.lane.b32.xlu0 %v9770_v60, %s9283_s9  ;;  %v10689_v55 = vpop.permute.xlu0 %3061 }
 0x342   : > { %4684 = vrot.lane.b32.xlu1 %v9782_v1, %s9283_s9  ;;  %v10705_v1 = vpop.permute.xlu1 %3067 }
 0x343   : > { %4686 = vrot.lane.b32.xlu0 %v9788_v6, %s9283_s9  ;;  %v10699_v60 = vpop.permute.xlu0 %3065  ;;  %11980 = vst [vmem:[#allocation22_spill] sm:$0xff] %v10705_v1 }
 0x344   : > { %11979 = vst [vmem:[#allocation51_spill] sm:$0xff] %v10699_v60 }
 0x346   : > { %4688 = vrot.lane.b32.xlu1 %v9815_v18, %s9283_s9  ;;  %v10713_v18 = vpop.permute.xlu1 %8778 }
 0x347   : > { %4690 = vrot.lane.b32.xlu0 %v9817_v19, %s9283_s9  ;;  %v10709_v6 = vpop.permute.xlu0 %8773 }
 0x34a   : > { %4692 = vrot.lane.b32.xlu1 %v9835_v27, %s9283_s9  ;;  %v10725_v27 = vpop.permute.xlu1 %8788 }
 0x34b   : > { %4694 = vrot.lane.b32.xlu0 %v9841_v38, %s9283_s9  ;;  %v10719_v19 = vpop.permute.xlu0 %8783 }
 0x34e   : > { %4696 = vrot.lane.b32.xlu1 %v9869_v31, %s9283_s9  ;;  %v10733_v31 = vpop.permute.xlu1 %8798 }
 0x34f   : > { %4698 = vrot.lane.b32.xlu0 %v9871_v58, %s9283_s9  ;;  %v10729_v38 = vpop.permute.xlu0 %8793 }
 0x352   : > { %4700 = vrot.lane.b32.xlu1 %v9887_v8, %s9283_s9 }
 0x353   : > { %4702 = vrot.lane.b32.xlu0 %v9892_v16, %s9283_s9 }
 0x356   : > { %4704 = vrot.lane.b32.xlu1 %v9908_v53, %s9283_s9 }
 0x357   : > { %4706 = vrot.lane.b32.xlu0 %v9912_v24, %s9283_s9 }
 0x35a   : > { %4708 = vrot.lane.b32.xlu1 %v9920_v29, %s9283_s9 }
 0x35b   : > { %9013 = vrot.lane.b32.xlu0 %v9930_v49, %s9283_s9 }
 0x35e   : > { %9018 = vrot.lane.b32.xlu1 %v9945_v44, %s9283_s9 }
 0x35f   : > { %9023 = vrot.lane.b32.xlu0 %v9951_v20, %s9283_s9 }
 0x362   : > { %9028 = vrot.lane.b32.xlu1 %v9961_v63, %s9283_s9 }
 0x363   : > { %9033 = vrot.lane.b32.xlu0 %v9963_v57, %s9283_s9 }
 0x366   : > { %9038 = vrot.lane.b32.xlu1 %v9973_v2, %s9283_s9 }
 0x367   : > { %9043 = vrot.lane.b32.xlu0 %v9975_v9, %s9283_s9 }
 0x36a   : > { %9048 = vrot.lane.b32.xlu1 %v9985_v54, %s9283_s9 }
 0x387   : > { %v6764_v58 = vpop.f32.mrb[32].mxu0 }
 0x388   : > { %1365 = vst.msk [vmem:[#allocation2 + $0x8] sm:$0xff] %vm977_vm0, %v6764_v58  ;;  %v1285_v8 = vpop.f32.mrb[33].mxu0 }
 0x389   : > { %1364 = vst.msk [vmem:[#allocation2] sm:$0xff] %vm977_vm0, %v1285_v8 }
 0x38b   : > { %v6767_v16 = vpop.f32.mrb[34].mxu0 }
 0x38c   : > { %1367 = vst.msk [vmem:[#allocation2 + $0x18] sm:$0xff] %vm977_vm0, %v6767_v16  ;;  %v1295_v53 = vpop.f32.mrb[35].mxu0  ;;  %v11981_v16 = vld [vmem:[#allocation27_spill] sm:$0xff] }
 0x38d   : > { %1366 = vst.msk [vmem:[#allocation2 + $0x10] sm:$0xff] %vm977_vm0, %v1295_v53  ;;  %v8581_v53 = vunpack.i.h.bf16 %v11981_v16 }
 0x38f   : > { %v6770_v24 = vpop.f32.mrb[36].mxu0 }
 0x390   : > { %1369 = vst.msk [vmem:[#allocation2 + $0x28] sm:$0xff] %vm977_vm0, %v6770_v24  ;;  %v1305_v29 = vpop.f32.mrb[37].mxu0  ;;  %v8580_v24 = vunpack.i.l.bf16 %v11981_v16 }
 0x391   : > { %1368 = vst.msk [vmem:[#allocation2 + $0x20] sm:$0xff] %vm977_vm0, %v1305_v29 }
 0x393   : > { %v6773_v49 = vpop.f32.mrb[38].mxu0 }
 0x394   : > { %1371 = vst.msk [vmem:[#allocation2 + $0x38] sm:$0xff] %vm977_vm0, %v6773_v49  ;;  %v1315_v44 = vpop.f32.mrb[39].mxu0 }
 0x395   : > { %1370 = vst.msk [vmem:[#allocation2 + $0x30] sm:$0xff] %vm977_vm0, %v1315_v44  ;;  %v7888_v44 = vpack.c.bf16 %v8581_v53, %v8580_v24 }
 0x397   : > { %v6776_v20 = vpop.f32.mrb[40].mxu0 }
 0x398   : > { %1373 = vst.msk [vmem:[#allocation2 + $0x48] sm:$0xff] %vm977_vm0, %v6776_v20  ;;  %v1325_v63 = vpop.f32.mrb[41].mxu0  ;;  %v11982_v20 = vld [vmem:[#allocation35_spill] sm:$0xff] }
 0x399   : > { %1372 = vst.msk [vmem:[#allocation2 + $0x40] sm:$0xff] %vm977_vm0, %v1325_v63 }
 0x39b   : > { %v6779_v57 = vpop.f32.mrb[42].mxu0 }
 0x39c   : > { %1375 = vst.msk [vmem:[#allocation2 + $0x58] sm:$0xff] %vm977_vm0, %v6779_v57  ;;  %v1335_v2 = vpop.f32.mrb[43].mxu0 }
 0x39d   : > { %1374 = vst.msk [vmem:[#allocation2 + $0x50] sm:$0xff] %vm977_vm0, %v1335_v2  ;;  %v11983_v2 = vld [vmem:[#allocation28_spill] sm:$0xff] }
 0x39f   : > { %v6782_v9 = vpop.f32.mrb[44].mxu0 }
 0x3a0   : > { %1377 = vst.msk [vmem:[#allocation2 + $0x68] sm:$0xff] %vm977_vm0, %v6782_v9  ;;  %v1345_v54 = vpop.f32.mrb[45].mxu0  ;;  %v8586_v9 = vunpack.i.h.bf16 %v11983_v2 }
 0x3a1   : > { %1376 = vst.msk [vmem:[#allocation2 + $0x60] sm:$0xff] %vm977_vm0, %v1345_v54  ;;  %v8585_v54 = vunpack.i.l.bf16 %v11983_v2 }
 0x3a3   : > { %v6785_v58 = vpop.f32.mrb[46].mxu0  ;;  %v7894_v16 = vpack.c.bf16 %v8586_v9, %v8585_v54  ;;  %v11985_v54 = vld [vmem:[#allocation30_spill] sm:$0xff] }
 0x3a4   : > { %1379 = vst.msk [vmem:[#allocation2 + $0x78] sm:$0xff] %vm977_vm0, %v6785_v58  ;;  %v1355_v8 = vpop.f32.mrb[47].mxu0 }
 0x3a5   : > { %1378 = vst.msk [vmem:[#allocation2 + $0x70] sm:$0xff] %vm977_vm0, %v1355_v8 }
 0x3c7   : > { %v6820_v29 = vpop.f32.mrb[48].mxu0 }
 0x3c8   : > { %v1574_v49 = vpop.f32.mrb[49].mxu0 }
 0x3c9   : > { %6874 = vmatprep.mubr.f32.mxu1 %v1574_v49 }
 0x3ca   : > { %6875 = vmatmul.mubr.f32.vlgmr.msra.gmra.mrb[32].mxu1 %v6820_v29  ;;  %v11984_v29 = vld [vmem:[#allocation29_spill] sm:$0xff] }
 0x3cb   : > { %7887 = vmatpush3.bf16.xpose.msk.msra.mxu1 %vm9651_vm1, %v11982_v20  ;;  %v6823_v63 = vpop.f32.mrb[50].mxu0  ;;  %v8591_v49 = vunpack.i.h.bf16 %v11984_v29  ;;  %v8590_v20 = vunpack.i.l.bf16 %v11984_v29 }
 0x3cc   : > { %7890 = vmatprep.subr.msk.bf16.mxu1 %vm9651_vm1, %v7888_v44  ;;  %v1584_v57 = vpop.f32.mrb[51].mxu0 }
 0x3cd   : > { %6877 = vmatprep.mubr.f32.mxu1 %v1584_v57  ;;  %v7900_v2 = vpack.c.bf16 %v8591_v49, %v8590_v20  ;;  %v11986_v20 = vld [vmem:[#allocation31_spill] sm:$0xff] }
 0x3ce   : > { %6878 = vmatmul.mubr.f32.gmra.mrb[34].mxu1 %v6823_v63 }
 0x3cf   : > { %v6826_v58 = vpop.f32.mrb[52].mxu0 }
 0x3d0   : > { %v1594_v8 = vpop.f32.mrb[53].mxu0 }
 0x3d1   : > { %6880 = vmatprep.mubr.f32.mxu1 %v1594_v8  ;;  %v8595_v8 = vunpack.i.l.bf16 %v11985_v54 }
 0x3d2   : > { %6881 = vmatmul.mubr.f32.gmra.mrb[36].mxu1 %v6826_v58  ;;  %v8596_v58 = vunpack.i.h.bf16 %v11985_v54  ;;  %v10784_v54 = vpop.permute.xlu1 %8808 }
 0x3d3   : > { %7893 = vmatpush3.bf16.xpose.msk.msra.mxu1 %vm9651_vm1, %v7888_v44  ;;  %v6829_v53 = vpop.f32.mrb[54].mxu0 }
 0x3d4   : > { %7896 = vmatprep.subr.msk.bf16.mxu1 %vm9651_vm1, %v7894_v16  ;;  %v1604_v24 = vpop.f32.mrb[55].mxu0  ;;  %v7906_v29 = vpack.c.bf16 %v8596_v58, %v8595_v8  ;;  %v11988_v58 = vld [vmem:[#allocation32_spill] sm:$0xff] }
 0x3d5   : > { %6883 = vmatprep.mubr.f32.mxu1 %v1604_v24  ;;  %v8606_v8 = vunpack.i.h.bf16 %v11988_v58 }
 0x3d6   : > { %6884 = vmatmul.mubr.f32.gmra.mrb[38].mxu1 %v6829_v53 }
 0x3d7   : > { %v6832_v63 = vpop.f32.mrb[56].mxu0 }
 0x3d8   : > { %v1614_v57 = vpop.f32.mrb[57].mxu0 }
 0x3d9   : > { %6886 = vmatprep.mubr.f32.mxu1 %v1614_v57  ;;  %v8600_v57 = vunpack.i.l.bf16 %v11986_v20 }
 0x3da   : > { %6887 = vmatmul.mubr.f32.gmra.mrb[40].mxu1 %v6832_v63  ;;  %v8601_v63 = vunpack.i.h.bf16 %v11986_v20 }
 0x3db   : > { %7899 = vmatpush3.bf16.xpose.msk.msra.mxu1 %vm9651_vm1, %v7894_v16  ;;  %v6835_v44 = vpop.f32.mrb[58].mxu0 }
 0x3dc   : > { %7902 = vmatprep.subr.msk.bf16.mxu1 %vm9651_vm1, %v7900_v2  ;;  %v1624_v9 = vpop.f32.mrb[59].mxu0 }
 0x3dd   : > { %6889 = vmatprep.mubr.f32.mxu1 %v1624_v9  ;;  %v7912_v9 = vpack.c.bf16 %v8601_v63, %v8600_v57 }
 0x3de   : > { %6890 = vmatmul.mubr.f32.gmra.mrb[42].mxu1 %v6835_v44  ;;  %v11987_v44 = vld [vmem:[#allocation34_spill] sm:$0xff] }
 0x3df   : > { %v6838_v53 = vpop.f32.mrb[60].mxu0 }
 0x3e0   : > { %v1634_v24 = vpop.f32.mrb[61].mxu0 }
 0x3e1   : > { %6892 = vmatprep.mubr.f32.mxu1 %v1634_v24 }
 0x3e2   : > { %6893 = vmatmul.mubr.f32.gmra.mrb[44].mxu1 %v6838_v53  ;;  %v8605_v53 = vunpack.i.l.bf16 %v11988_v58 }
 0x3e3   : > { %7905 = vmatpush3.bf16.xpose.msk.msra.mxu1 %vm9651_vm1, %v7900_v2  ;;  %v6841_v16 = vpop.f32.mrb[62].mxu0  ;;  %v10788_v2 = vpop.permute.xlu0 %8803 }
 0x3e4   : > { %7908 = vmatprep.subr.msk.bf16.mxu1 %vm9651_vm1, %v7906_v29  ;;  %v1644_v49 = vpop.f32.mrb[63].mxu0  ;;  %v7918_v24 = vpack.c.bf16 %v8606_v8, %v8605_v53  ;;  %v8695_v8 = vunpack.i.l.bf16 %v10516_v36 }
 0x3e5   : > { %6895 = vmatprep.mubr.f32.mxu1 %v1644_v49 }
 0x3e6   : > { %6896 = vmatmul.mubr.f32.gmra.mrb[46].mxu1 %v6841_v16  ;;  %v10792_v16 = vpop.permute.xlu1 %8818 }
 0x3e7   : > { %6930 = vmatprep.mubr.msk.f32.mxu1 %vm977_vm0, %v11987_v44  ;;  %11989 = vst [vmem:[#allocation23_spill] sm:$0xff] %v10792_v16  ;;  %v10794_v49 = vpop.permute.xlu0 %8813 }
 0x3ea   : > { %v10802_v57 = vpop.permute.xlu1 %8828 }
 0x3eb   : > { %7911 = vmatpush3.bf16.xpose.msk.msra.mxu1 %vm9651_vm1, %v7906_v29  ;;  %v11990_v29 = vld [vmem:[#allocation33_spill] sm:$0xff]  ;;  %11991 = vst [vmem:[#allocation52_spill] sm:$0xff] %v10802_v57  ;;  %v10804_v44 = vpop.permute.xlu0 %8823 }
 0x3ec   : > { %7914 = vmatprep.subr.msk.bf16.mxu1 %vm9651_vm1, %v7912_v9  ;;  %v8611_v20 = vunpack.i.h.bf16 %v11990_v29  ;;  %v8610_v63 = vunpack.i.l.bf16 %v11990_v29  ;;  %11992 = vst [vmem:[#allocation24_spill] sm:$0xff] %v10804_v44  ;;  %v8706_v44 = vunpack.i.h.bf16 %v10532_v48 }
 0x3ee   : > { %v7924_v58 = vpack.c.bf16 %v8611_v20, %v8610_v63  ;;  %v10812_v53 = vpop.permute.xlu1 %8838  ;;  %v8700_v63 = vunpack.i.l.bf16 %v10522_v39 }
 0x3ef   : > { %11993 = vst [vmem:[#allocation25_spill] sm:$0xff] %v10812_v53  ;;  %v10814_v16 = vpop.permute.xlu0 %8833 }
 0x3f0   : > { %11994 = vst [vmem:[#allocation26_spill] sm:$0xff] %v10814_v16  ;;  %v11998_v16 = vld [vmem:[#allocation36_spill] sm:$0xff] }
 0x3f2   : > { %v10818_v57 = vpop.permute.xlu1 %8848 }
 0x3f3   : > { %7917 = vmatpush3.bf16.xpose.msk.msra.mxu1 %vm9651_vm1, %v7912_v9  ;;  %v8696_v9 = vunpack.i.h.bf16 %v10516_v36  ;;  %11995 = vst [vmem:[#allocation27_spill] sm:$0xff] %v10818_v57  ;;  %v10820_v20 = vpop.permute.xlu0 %8843  ;;  %v8705_v36 = vunpack.i.l.bf16 %v10532_v48  ;;  %v8711_v57 = vunpack.i.h.bf16 %v10542_v0 }
 0x3f4   : > { %7920 = vmatprep.subr.msk.bf16.mxu1 %vm9651_vm1, %v7918_v24  ;;  %11996 = vst [vmem:[#allocation35_spill] sm:$0xff] %v10820_v20  ;;  %v12001_v20 = vld [vmem:[#allocation38_spill] sm:$0xff] }
 0x3f5   : > { %v8010_v29 = vpack.c.bf16 %v8696_v9, %v8695_v8  ;;  %v12000_v8 = vld [vmem:[#allocation37_spill] sm:$0xff]  ;;  %v8018_v48 = vpack.c.bf16 %v8706_v44, %v8705_v36  ;;  %v8721_v44 = vunpack.i.h.bf16 %v10560_v30  ;;  %v12008_v36 = vld [vmem:[#allocation42_spill] sm:$0xff] }
 0x3f6   : > { %v10826_v53 = vpop.permute.xlu1 %3586 }
 0x3f7   : > { %11997 = vst [vmem:[#allocation28_spill] sm:$0xff] %v10826_v53  ;;  %v12002_v53 = vld [vmem:[#allocation39_spill] sm:$0xff] }
 0x3fb   : > { %7923 = vmatpush3.bf16.xpose.msk.msra.mxu1 %vm9651_vm1, %v7918_v24  ;;  %v8701_v24 = vunpack.i.h.bf16 %v10522_v39  ;;  %v8710_v39 = vunpack.i.l.bf16 %v10542_v0 }
 0x3fc   : > { %7926 = vmatprep.subr.msk.bf16.mxu1 %vm9651_vm1, %v7924_v58 }
 0x3fd   : > { %v8014_v9 = vpack.c.bf16 %v8701_v24, %v8700_v63  ;;  %v8715_v63 = vunpack.i.l.bf16 %v10554_v35  ;;  %v8022_v0 = vpack.c.bf16 %v8711_v57, %v8710_v39  ;;  %v8726_v57 = vunpack.i.h.bf16 %v10570_v14  ;;  %v12011_v39 = vld [vmem:[#allocation44_spill] sm:$0xff] }
 0x403   : > { %7929 = vmatpush3.bf16.xpose.msk.msra.mxu1 %vm9651_vm1, %v7924_v58  ;;  %v10830_v58 = vpop.permute.xlu0 %3584 }
 0x404   : > { %8011 = vmatprep.subr.bf16.mxu1 %v8010_v29  ;;  %11999 = vst [vmem:[#allocation29_spill] sm:$0xff] %v10830_v58  ;;  %v12006_v58 = vld [vmem:[#allocation41_spill] sm:$0xff] }
 0x407   : > { %v10842_v24 = vpop.permute.xlu0 %3588 }
 0x408   : > { %12004 = vst [vmem:[#allocation31_spill] sm:$0xff] %v10842_v24 }
 0x40a   : > { %6931 = vmatmul.mubr.msk.f32.vlgmr.msra.gmra.mrb[48].mxu1 %vm977_vm0, %v11998_v16  ;;  %v10840_v16 = vpop.permute.xlu1 %3590 }
 0x40b   : > { %6933 = vmatprep.mubr.msk.f32.mxu1 %vm977_vm0, %v12000_v8  ;;  %8013 = vmatpush3.bf16.msra.mxu1 %v8010_v29  ;;  %12003 = vst [vmem:[#allocation30_spill] sm:$0xff] %v10840_v16  ;;  %v8716_v29 = vunpack.i.h.bf16 %v10554_v35  ;;  %v12005_v8 = vld [vmem:[#allocation40_spill] sm:$0xff]  ;;  %v10856_v35 = vpop.permute.xlu0 %3592  ;;  %v12010_v16 = vld [vmem:[#allocation43_spill] sm:$0xff] }
 0x40c   : > { %8015 = vmatprep.subr.bf16.mxu1 %v8014_v9  ;;  %12009 = vst [vmem:[#allocation32_spill] sm:$0xff] %v10856_v35 }
 0x40e   : > { %6934 = vmatmul.mubr.msk.f32.gmra.mrb[50].mxu1 %vm977_vm0, %v12001_v20  ;;  %v10852_v20 = vpop.permute.xlu1 %3594 }
 0x40f   : > { %6936 = vmatprep.mubr.msk.f32.mxu1 %vm977_vm0, %v12002_v53  ;;  %8017 = vmatpush3.bf16.msra.mxu1 %v8014_v9  ;;  %v8720_v53 = vunpack.i.l.bf16 %v10560_v30  ;;  %12007 = vst [vmem:[#allocation34_spill] sm:$0xff] %v10852_v20  ;;  %v8026_v9 = vpack.c.bf16 %v8716_v29, %v8715_v63  ;;  %v10868_v63 = vpop.permute.xlu0 %3596 }
 0x410   : > { %8019 = vmatprep.subr.bf16.mxu1 %v8018_v48  ;;  %12014 = vst [vmem:[#allocation36_spill] sm:$0xff] %v10868_v63 }
 0x411   : > { %v8030_v30 = vpack.c.bf16 %v8721_v44, %v8720_v53  ;;  %v8736_v44 = vunpack.i.h.bf16 %v10589_v34  ;;  %v8735_v53 = vunpack.i.l.bf16 %v10589_v34 }
 0x412   : > { %6937 = vmatmul.mubr.msk.f32.gmra.mrb[52].mxu1 %vm977_vm0, %v12005_v8  ;;  %v10866_v29 = vpop.permute.xlu1 %3598  ;;  %v8730_v8 = vunpack.i.l.bf16 %v10580_v22 }
 0x413   : > { %6939 = vmatprep.mubr.msk.f32.mxu1 %vm977_vm0, %v12006_v58  ;;  %8021 = vmatpush3.bf16.msra.mxu1 %v8018_v48  ;;  %v8725_v58 = vunpack.i.l.bf16 %v10570_v14  ;;  %v12012_v48 = vld [vmem:[#allocation45_spill] sm:$0xff]  ;;  %12013 = vst [vmem:[#allocation33_spill] sm:$0xff] %v10866_v29 }
 0x414   : > { %8023 = vmatprep.subr.bf16.mxu1 %v8022_v0  ;;  %v12020_v29 = vld [vmem:[#allocation49_spill] sm:$0xff] }
 0x415   : > { %v8034_v14 = vpack.c.bf16 %v8726_v57, %v8725_v58  ;;  %v10886_v57 = vpack.c.bf16 %v8736_v44, %v8735_v53  ;;  %v12021_v58 = vld [vmem:[#allocation50_spill] sm:$0xff] }
 0x416   : > { %6940 = vmatmul.mubr.msk.f32.gmra.mrb[54].mxu1 %vm977_vm0, %v12008_v36  ;;  %v12016_v36 = vld [vmem:[#allocation47_spill] sm:$0xff] }
 0x417   : > { %6942 = vmatprep.mubr.msk.f32.mxu1 %vm977_vm0, %v12010_v16  ;;  %8025 = vmatpush3.bf16.msra.mxu1 %v8022_v0  ;;  %v8731_v16 = vunpack.i.h.bf16 %v10580_v22  ;;  %v12015_v0 = vld [vmem:[#allocation46_spill] sm:$0xff]  ;;  %v10882_v22 = vpop.permute.xlu0 %3600 }
 0x418   : > { %8027 = vmatprep.subr.bf16.mxu1 %v8026_v9  ;;  %12019 = vst [vmem:[#allocation38_spill] sm:$0xff] %v10882_v22 }
 0x41a   : > { %6943 = vmatmul.mubr.msk.f32.gmra.mrb[56].mxu1 %vm977_vm0, %v12011_v39  ;;  %v12018_v39 = vld [vmem:[#allocation48_spill] sm:$0xff] }
 0x41b   : > { %6945 = vmatprep.mubr.msk.f32.mxu1 %vm977_vm0, %v12012_v48  ;;  %8029 = vmatpush3.bf16.msra.mxu1 %v8026_v9  ;;  %v10878_v9 = vpop.permute.xlu1 %3602  ;;  %v8038_v48 = vpack.c.bf16 %v8731_v16, %v8730_v8 }
 0x41c   : > { %8031 = vmatprep.subr.bf16.mxu1 %v8030_v30  ;;  %12017 = vst [vmem:[#allocation37_spill] sm:$0xff] %v10878_v9 }
 0x41e   : > { %6946 = vmatmul.mubr.msk.f32.gmra.mrb[58].mxu1 %vm977_vm0, %v12015_v0 }
 0x41f   : > { %6948 = vmatprep.mubr.msk.f32.mxu1 %vm977_vm0, %v12016_v36  ;;  %8033 = vmatpush3.bf16.msra.mxu1 %v8030_v30  ;;  %v10890_v34 = vpop.permute.xlu1 %3606  ;;  %v10895_v30 = vpop.permute.xlu0 %3604 }
 0x420   : > { %8035 = vmatprep.subr.bf16.mxu1 %v8034_v14  ;;  %12022 = vst [vmem:[#allocation39_spill] sm:$0xff] %v10890_v34  ;;  %12023 = vst [vmem:[#allocation40_spill] sm:$0xff] %v10895_v30 }
 0x422   : > { %6949 = vmatmul.mubr.msk.f32.gmra.mrb[60].mxu1 %vm977_vm0, %v12018_v39 }
 0x423   : > { %6951 = vmatprep.mubr.msk.f32.mxu1 %vm977_vm0, %v12020_v29  ;;  %8037 = vmatpush3.bf16.msra.mxu1 %v8034_v14  ;;  %v10897_v16 = vpop.permute.xlu1 %3610  ;;  %v10899_v8 = vpop.permute.xlu0 %3608 }
 0x424   : > { %8039 = vmatprep.subr.bf16.mxu1 %v8038_v48  ;;  %12024 = vst [vmem:[#allocation41_spill] sm:$0xff] %v10897_v16  ;;  %12025 = vst [vmem:[#allocation42_spill] sm:$0xff] %v10899_v8 }
 0x426   : > { %6952 = vmatmul.mubr.msk.f32.gmra.mrb[62].mxu1 %vm977_vm0, %v12021_v58 }
 0x427   : > { %8041 = vmatpush3.bf16.msra.mxu1 %v8038_v48  ;;  %v10901_v29 = vpop.permute.xlu1 %3614  ;;  %v10903_v0 = vpop.permute.xlu0 %3612 }
 0x428   : > { %8044 = vmatprep.subr.msk.bf16.mxu1 %vm9651_vm1, %v10886_v57  ;;  %12026 = vst [vmem:[#allocation43_spill] sm:$0xff] %v10901_v29  ;;  %12027 = vst [vmem:[#allocation44_spill] sm:$0xff] %v10903_v0 }
 0x42b   : > { %v10905_v14 = vpop.permute.xlu1 %8858  ;;  %v10907_v36 = vpop.permute.xlu0 %8853 }
 0x42f   : > { %v10909_v44 = vpop.permute.xlu1 %8868  ;;  %v10911_v53 = vpop.permute.xlu0 %8863 }
 0x433   : > { %v10913_v39 = vpop.permute.xlu1 %8878  ;;  %v10915_v48 = vpop.permute.xlu0 %8873 }
 0x437   : > { %v10917_v58 = vpop.permute.xlu1 %8888  ;;  %v10919_v16 = vpop.permute.xlu0 %8883 }
 0x43b   : > { %v10921_v8 = vpop.permute.xlu1 %8898  ;;  %v10923_v29 = vpop.permute.xlu0 %8893 }
 0x43c   : > { %12028 = vst [vmem:[#allocation45_spill] sm:$0xff] %v10921_v8 }
 0x43f   : > { %v10925_v0 = vpop.permute.xlu1 %8908  ;;  %v10927_v34 = vpop.permute.xlu0 %8903 }
 0x440   : > { %12029 = vst [vmem:[#allocation46_spill] sm:$0xff] %v10925_v0  ;;  %12030 = vst [vmem:[#allocation47_spill] sm:$0xff] %v10927_v34 }
 0x443   : > { %v10929_v30 = vpop.permute.xlu1 %8918  ;;  %v10931_v9 = vpop.permute.xlu0 %8913 }
 0x444   : > { %12031 = vst [vmem:[#allocation48_spill] sm:$0xff] %v10929_v30  ;;  %12032 = vst [vmem:[#allocation49_spill] sm:$0xff] %v10931_v9 }
 0x447   : > { %v10933_v22 = vpop.permute.xlu1 %8928  ;;  %v10935_v63 = vpop.permute.xlu0 %8923 }
 0x448   : > { %12033 = vst [vmem:[#allocation50_spill] sm:$0xff] %v10933_v22  ;;  %12034 = vst [vmem:[#allocation63_spill] sm:$0xff] %v10935_v63 }
 0x44b   : > { %v10937_v20 = vpop.permute.xlu1 %4133  ;;  %v10939_v35 = vpop.permute.xlu0 %4131 }
 0x44c   : > { %12035 = vst [vmem:[#allocation64_spill] sm:$0xff] %v10937_v20  ;;  %12036 = vst [vmem:[#allocation65_spill] sm:$0xff] %v10939_v35 }
 0x44f   : > { %v10941_v24 = vpop.permute.xlu1 %4137  ;;  %v10943_v8 = vpop.permute.xlu0 %4135 }
 0x450   : > { %12037 = vst [vmem:[#allocation66_spill] sm:$0xff] %v10941_v24  ;;  %12038 = vst [vmem:[#allocation67_spill] sm:$0xff] %v10943_v8 }
 0x453   : > { %v10945_v1 = vpop.permute.xlu1 %4141  ;;  %v10947_v0 = vpop.permute.xlu0 %4139 }
 0x454   : > { %12039 = vst [vmem:[#allocation68_spill] sm:$0xff] %v10945_v1  ;;  %12040 = vst [vmem:[#allocation69_spill] sm:$0xff] %v10947_v0 }
 0x457   : > { %v10949_v34 = vpop.permute.xlu1 %4145  ;;  %v10951_v30 = vpop.permute.xlu0 %4143 }
 0x458   : > { %12041 = vst [vmem:[#allocation70_spill] sm:$0xff] %v10949_v34  ;;  %12042 = vst [vmem:[#allocation71_spill] sm:$0xff] %v10951_v30 }
 0x45b   : > { %v10953_v9 = vpop.permute.xlu1 %4149  ;;  %v10955_v22 = vpop.permute.xlu0 %4147 }
 0x45c   : > { %12043 = vst [vmem:[#allocation72_spill] sm:$0xff] %v10953_v9  ;;  %12044 = vst [vmem:[#allocation73_spill] sm:$0xff] %v10955_v22 }
 0x45f   : > { %v10957_v63 = vpop.permute.xlu1 %4153  ;;  %v10959_v20 = vpop.permute.xlu0 %4151 }
 0x460   : > { %12045 = vst [vmem:[#allocation74_spill] sm:$0xff] %v10957_v63  ;;  %12046 = vst [vmem:[#allocation75_spill] sm:$0xff] %v10959_v20 }
 0x463   : > { %v10961_v35 = vpop.permute.xlu1 %4157  ;;  %v10963_v24 = vpop.permute.xlu0 %4155 }
 0x464   : > { %12047 = vst [vmem:[#allocation76_spill] sm:$0xff] %v10961_v35  ;;  %12048 = vst [vmem:[#allocation77_spill] sm:$0xff] %v10963_v24 }
 0x467   : > { %v10965_v8 = vpop.permute.xlu1 %4161  ;;  %v10967_v1 = vpop.permute.xlu0 %4159 }
 0x468   : > { %12049 = vst [vmem:[#allocation78_spill] sm:$0xff] %v10965_v8  ;;  %12050 = vst [vmem:[#allocation79_spill] sm:$0xff] %v10967_v1 }
 0x46b   : > { %v10969_v0 = vpop.permute.xlu1 %8938  ;;  %v10971_v34 = vpop.permute.xlu0 %8933 }
 0x46c   : > { %12051 = vst [vmem:[#allocation80_spill] sm:$0xff] %v10969_v0  ;;  %12052 = vst [vmem:[#allocation81_spill] sm:$0xff] %v10971_v34 }
 0x46f   : > { %v10975_v63 = vpop.permute.xlu1 %8948  ;;  %v10977_v20 = vpop.permute.xlu0 %8943 }
 0x470   : > { %12053 = vst [vmem:[#allocation82_spill] sm:$0xff] %v10975_v63  ;;  %12054 = vst [vmem:[#allocation83_spill] sm:$0xff] %v10977_v20 }
 0x473   : > { %v10981_v1 = vpop.permute.xlu1 %8958  ;;  %v10983_v0 = vpop.permute.xlu0 %8953 }
 0x474   : > { %12055 = vst [vmem:[#allocation84_spill] sm:$0xff] %v10981_v1  ;;  %12056 = vst [vmem:[#allocation85_spill] sm:$0xff] %v10983_v0 }
 0x477   : > { %v10989_v63 = vpop.permute.xlu1 %8968 }
 0x478   : > { %12057 = vst [vmem:[#allocation86_spill] sm:$0xff] %v10989_v63 }
 0x49d   : > { %v6876_v30 = vpop.f32.mrb[32].mxu1 }
 0x49e   : > { %1880 = vrot.lane.b32.xlu1 %v6876_v30, %s9283_s9  ;;  %v1783_v9 = vpop.f32.mrb[33].mxu1 }
 0x49f   : > { %1878 = vrot.lane.b32.xlu0 %v1783_v9, %s9283_s9 }
 0x4a1   : > { %v6879_v35 = vpop.f32.mrb[34].mxu1 }
 0x4a2   : > { %v1793_v24 = vpop.f32.mrb[35].mxu1 }
 0x4a3   : > { %1884 = vrot.lane.b32.xlu0 %v6879_v35, %s9283_s9  ;;  %1882 = vrot.lane.b32.xlu1 %v1793_v24, %s9283_s9  ;;  %v10991_v35 = vpop.permute.xlu0 %8963 }
 0x4a4   : > { %12058 = vst [vmem:[#allocation87_spill] sm:$0xff] %v10991_v35 }
 0x4a5   : > { %v6882_v8 = vpop.f32.mrb[36].mxu1 }
 0x4a6   : > { %v1803_v22 = vpop.f32.mrb[37].mxu1 }
 0x4a7   : > { %1888 = vrot.lane.b32.xlu0 %v6882_v8, %s9283_s9  ;;  %1886 = vrot.lane.b32.xlu1 %v1803_v22, %s9283_s9  ;;  %v10995_v8 = vpop.permute.xlu1 %8978  ;;  %v10997_v0 = vpop.permute.xlu0 %8973 }
 0x4a8   : > { %12059 = vst [vmem:[#allocation88_spill] sm:$0xff] %v10995_v8  ;;  %12060 = vst [vmem:[#allocation89_spill] sm:$0xff] %v10997_v0 }
 0x4a9   : > { %v6885_v9 = vpop.f32.mrb[38].mxu1 }
 0x4aa   : > { %v1813_v30 = vpop.f32.mrb[39].mxu1 }
 0x4ab   : > { %1892 = vrot.lane.b32.xlu0 %v6885_v9, %s9283_s9  ;;  %1890 = vrot.lane.b32.xlu1 %v1813_v30, %s9283_s9  ;;  %v11003_v63 = vpop.permute.xlu1 %8988 }
 0x4ac   : > { %12061 = vst [vmem:[#allocation90_spill] sm:$0xff] %v11003_v63 }
 0x4ad   : > { %v6888_v24 = vpop.f32.mrb[40].mxu1 }
 0x4ae   : > { %v1823_v20 = vpop.f32.mrb[41].mxu1 }
 0x4af   : > { %1896 = vrot.lane.b32.xlu0 %v6888_v24, %s9283_s9  ;;  %1894 = vrot.lane.b32.xlu1 %v1823_v20, %s9283_s9  ;;  %v11005_v24 = vpop.permute.xlu0 %8983  ;;  %v11009_v8 = vpop.permute.xlu1 %8998 }
 0x4b0   : > { %12062 = vst [vmem:[#allocation91_spill] sm:$0xff] %v11005_v24  ;;  %12063 = vst [vmem:[#allocation92_spill] sm:$0xff] %v11009_v8 }
 0x4b1   : > { %v6891_v1 = vpop.f32.mrb[42].mxu1 }
 0x4b2   : > { %v1833_v22 = vpop.f32.mrb[43].mxu1 }
 0x4b3   : > { %1900 = vrot.lane.b32.xlu0 %v6891_v1, %s9283_s9  ;;  %1898 = vrot.lane.b32.xlu1 %v1833_v22, %s9283_s9  ;;  %v11011_v1 = vpop.permute.xlu0 %8993  ;;  %v11013_v22 = vpop.permute.xlu1 %9008 }
 0x4b4   : > { %12064 = vst [vmem:[#allocation93_spill] sm:$0xff] %v11011_v1  ;;  %12065 = vst [vmem:[#allocation94_spill] sm:$0xff] %v11013_v22 }
 0x4b5   : > { %v6894_v9 = vpop.f32.mrb[44].mxu1 }
 0x4b6   : > { %v1843_v30 = vpop.f32.mrb[45].mxu1 }
 0x4b7   : > { %1904 = vrot.lane.b32.xlu0 %v6894_v9, %s9283_s9  ;;  %1902 = vrot.lane.b32.xlu1 %v1843_v30, %s9283_s9  ;;  %v11015_v0 = vpop.permute.xlu0 %9003  ;;  %v11017_v9 = vpop.permute.xlu1 %4680 }
 0x4b8   : > { %12066 = vst [vmem:[#allocation95_spill] sm:$0xff] %v11015_v0  ;;  %12067 = vst [vmem:[#allocation96_spill] sm:$0xff] %v11017_v9 }
 0x4b9   : > { %v6897_v20 = vpop.f32.mrb[46].mxu1 }
 0x4ba   : > { %v1853_v35 = vpop.f32.mrb[47].mxu1 }
 0x4bb   : > { %1908 = vrot.lane.b32.xlu0 %v6897_v20, %s9283_s9  ;;  %1906 = vrot.lane.b32.xlu1 %v1853_v35, %s9283_s9  ;;  %v11019_v30 = vpop.permute.xlu0 %4678  ;;  %v11021_v63 = vpop.permute.xlu1 %4684  ;;  %v12073_v35 = vld [vmem:[#allocation53_spill] sm:$0xff] }
 0x4bc   : > { %12068 = vst [vmem:[#allocation97_spill] sm:$0xff] %v11019_v30  ;;  %12069 = vst [vmem:[#allocation98_spill] sm:$0xff] %v11021_v63  ;;  %v8661_v8 = vunpack.i.h.bf16 %v12073_v35  ;;  %v8660_v1 = vunpack.i.l.bf16 %v12073_v35 }
 0x4be   : > { %v7968_v30 = vpack.c.bf16 %v8661_v8, %v8660_v1 }
 0x4bf   : > { %v11023_v24 = vpop.permute.xlu0 %4682  ;;  %v11025_v34 = vpop.permute.xlu1 %4688 }
 0x4c0   : > { %12070 = vst [vmem:[#allocation99_spill] sm:$0xff] %v11023_v24  ;;  %12071 = vst [vmem:[#allocation100_spill] sm:$0xff] %v11025_v34 }
 0x4c3   : > { %v11027_v20 = vpop.permute.xlu0 %4686  ;;  %v11031_v60 = vpop.permute.xlu1 %4692 }
 0x4c4   : > { %12072 = vst [vmem:[#allocation101_spill] sm:$0xff] %v11027_v20  ;;  %12074 = vst [vmem:[#allocation53_spill] sm:$0xff] %v11031_v60  ;;  %v8666_v60 = vunpack.i.h.bf16 %v10348_v25 }
 0x4c7   : > { %v11033_v22 = vpop.permute.xlu0 %4690  ;;  %v11038_v63 = vpop.permute.xlu1 %4696 }
 0x4c8   : > { %12075 = vst [vmem:[#allocation102_spill] sm:$0xff] %v11033_v22  ;;  %12076 = vst [vmem:[#allocation103_spill] sm:$0xff] %v11038_v63 }
 0x4cb   : > { %v11042_v20 = vpop.permute.xlu0 %4694 }
 0x4cc   : > { %12077 = vst [vmem:[#allocation104_spill] sm:$0xff] %v11042_v20 }
 0x4cf   : > { %v11048_v63 = vpop.permute.xlu0 %4698 }
 0x4d0   : > { %12079 = vst [vmem:[#allocation106_spill] sm:$0xff] %v11048_v63 }
 0x4dd   : > { %v6932_v0 = vpop.f32.mrb[48].mxu1 }
 0x4de   : > { %v2137_v9 = vpop.f32.mrb[49].mxu1 }
 0x4df   : > { %6986 = vmatprep.mubr.f32.mxu0 %v2137_v9  ;;  %v8665_v9 = vunpack.i.l.bf16 %v10348_v25  ;;  %v12080_v25 = vld [vmem:[#allocation54_spill] sm:$0xff] }
 0x4e0   : > { %6987 = vmatmul.mubr.f32.vlgmr.msra.gmra.mrb[64].mxu0 %v6932_v0  ;;  %v8670_v20 = vunpack.i.l.bf16 %v12080_v25 }
 0x4e1   : > { %7967 = vmatpush3.bf16.xpose.msk.msra.mxu0 %vm9651_vm1, %v10578_v13  ;;  %v6935_v34 = vpop.f32.mrb[50].mxu1  ;;  %v7974_v1 = vpack.c.bf16 %v8666_v60, %v8665_v9  ;;  %v11046_v13 = vpop.permute.xlu1 %4700 }
 0x4e2   : > { %7970 = vmatprep.subr.msk.bf16.mxu0 %vm9651_vm1, %v7968_v30  ;;  %v2147_v35 = vpop.f32.mrb[51].mxu1  ;;  %12078 = vst [vmem:[#allocation105_spill] sm:$0xff] %v11046_v13 }
 0x4e3   : > { %6989 = vmatprep.mubr.f32.mxu0 %v2147_v35 }
 0x4e4   : > { %6990 = vmatmul.mubr.f32.gmra.mrb[66].mxu0 %v6935_v34  ;;  %v8671_v34 = vunpack.i.h.bf16 %v12080_v25  ;;  %v12083_v25 = vld [vmem:[#allocation55_spill] sm:$0xff] }
 0x4e5   : > { %v6938_v0 = vpop.f32.mrb[52].mxu1  ;;  %v11056_v9 = vpop.permute.xlu1 %4704  ;;  %v8675_v63 = vunpack.i.l.bf16 %v12083_v25 }
 0x4e6   : > { %v2157_v8 = vpop.f32.mrb[53].mxu1  ;;  %12081 = vst [vmem:[#allocation54_spill] sm:$0xff] %v11056_v9  ;;  %v7980_v13 = vpack.c.bf16 %v8671_v34, %v8670_v20 }
 0x4e7   : > { %6992 = vmatprep.mubr.f32.mxu0 %v2157_v8  ;;  %v11058_v8 = vpop.permute.xlu0 %4702 }
 0x4e8   : > { %6993 = vmatmul.mubr.f32.gmra.mrb[68].mxu0 %v6938_v0  ;;  %12082 = vst [vmem:[#allocation107_spill] sm:$0xff] %v11058_v8 }
 0x4e9   : > { %7973 = vmatpush3.bf16.xpose.msk.msra.mxu0 %vm9651_vm1, %v7968_v30  ;;  %v6941_v22 = vpop.f32.mrb[54].mxu1  ;;  %v11066_v9 = vpop.permute.xlu1 %4708 }
 0x4ea   : > { %7976 = vmatprep.subr.msk.bf16.mxu0 %vm9651_vm1, %v7974_v1  ;;  %v2167_v35 = vpop.f32.mrb[55].mxu1  ;;  %12084 = vst [vmem:[#allocation55_spill] sm:$0xff] %v11066_v9  ;;  %v8680_v9 = vunpack.i.l.bf16 %v10370_v3 }
 0x4eb   : > { %6995 = vmatprep.mubr.f32.mxu0 %v2167_v35  ;;  %v11068_v8 = vpop.permute.xlu0 %4706 }
 0x4ec   : > { %6996 = vmatmul.mubr.f32.gmra.mrb[70].mxu0 %v6941_v22  ;;  %v8676_v22 = vunpack.i.h.bf16 %v12083_v25  ;;  %12085 = vst [vmem:[#allocation108_spill] sm:$0xff] %v11068_v8 }
 0x4ed   : > { %v6944_v60 = vpop.f32.mrb[56].mxu1 }
 0x4ee   : > { %v2177_v0 = vpop.f32.mrb[57].mxu1 }
 0x4ef   : > { %6998 = vmatprep.mubr.f32.mxu0 %v2177_v0  ;;  %v11072_v0 = vpop.permute.xlu1 %9018  ;;  %v11076_v25 = vpop.permute.xlu0 %9013 }
 0x4f0   : > { %6999 = vmatmul.mubr.f32.gmra.mrb[72].mxu0 %v6944_v60  ;;  %v7986_v60 = vpack.c.bf16 %v8676_v22, %v8675_v63 }
 0x4f1   : > { %7979 = vmatpush3.bf16.xpose.msk.msra.mxu0 %vm9651_vm1, %v7974_v1  ;;  %v6947_v30 = vpop.f32.mrb[58].mxu1 }
 0x4f2   : > { %7982 = vmatprep.subr.msk.bf16.mxu0 %vm9651_vm1, %v7980_v13  ;;  %v2187_v35 = vpop.f32.mrb[59].mxu1 }
 0x4f3   : > { %7001 = vmatprep.mubr.f32.mxu0 %v2187_v35  ;;  %v11084_v22 = vpop.permute.xlu0 %9023 }
 0x4f4   : > { %7002 = vmatmul.mubr.f32.gmra.mrb[74].mxu0 %v6947_v30  ;;  %v8681_v30 = vunpack.i.h.bf16 %v10370_v3 }
 0x4f5   : > { %v6950_v20 = vpop.f32.mrb[60].mxu1 }
 0x4f6   : > { %v2197_v34 = vpop.f32.mrb[61].mxu1  ;;  %v7992_v63 = vpack.c.bf16 %v8681_v30, %v8680_v9  ;;  %v8691_v9 = vunpack.i.h.bf16 %v10386_v5 }
 0x4f7   : > { %7004 = vmatprep.mubr.f32.mxu0 %v2197_v34 }
 0x4f8   : > { %7005 = vmatmul.mubr.f32.gmra.mrb[76].mxu0 %v6950_v20  ;;  %v12086_v20 = vld [vmem:[#allocation56_spill] sm:$0xff] }
 0x4f9   : > { %7985 = vmatpush3.bf16.xpose.msk.msra.mxu0 %vm9651_vm1, %v7980_v13  ;;  %v6953_v1 = vpop.f32.mrb[62].mxu1  ;;  %v11082_v13 = vpop.permute.xlu1 %9028  ;;  %v8686_v34 = vunpack.i.h.bf16 %v12086_v20 }
 0x4fa   : > { %7988 = vmatprep.subr.msk.bf16.mxu0 %vm9651_vm1, %v7986_v60  ;;  %v2207_v35 = vpop.f32.mrb[63].mxu1 }
 0x4fb   : > { %7007 = vmatprep.mubr.f32.mxu0 %v2207_v35  ;;  %v8685_v35 = vunpack.i.l.bf16 %v12086_v20 }
 0x4fc   : > { %7008 = vmatmul.mubr.f32.gmra.mrb[78].mxu0 %v6953_v1  ;;  %v11094_v1 = vpop.permute.xlu0 %9033 }
 0x4fd   : > { %7042 = vmatprep.mubr.msk.f32.mxu0 %vm977_vm0, %v10392_v21  ;;  %v11092_v3 = vpop.permute.xlu1 %9038  ;;  %v7998_v21 = vpack.c.bf16 %v8686_v34, %v8685_v35  ;;  %v8775_v34 = vunpack.i.l.bf16 %v10709_v6 }
 0x500   : > { %v11104_v8 = vpop.permute.xlu0 %9043 }
 0x501   : > { %7991 = vmatpush3.bf16.xpose.msk.msra.mxu0 %vm9651_vm1, %v7986_v60  ;;  %v8690_v60 = vunpack.i.l.bf16 %v10386_v5  ;;  %v11102_v30 = vpop.permute.xlu1 %9048  ;;  %12088 = vst [vmem:[#allocation109_spill] sm:$0xff] %v11104_v8  ;;  %v8776_v5 = vunpack.i.h.bf16 %v10709_v6  ;;  %v8780_v6 = vunpack.i.l.bf16 %v10713_v18 }
 0x502   : > { %7994 = vmatprep.subr.msk.bf16.mxu0 %vm9651_vm1, %v7992_v63  ;;  %12087 = vst [vmem:[#allocation56_spill] sm:$0xff] %v11102_v30 }
 0x503   : > { %v8004_v20 = vpack.c.bf16 %v8691_v9, %v8690_v60  ;;  %v8090_v9 = vpack.c.bf16 %v8776_v5, %v8775_v34  ;;  %v8781_v60 = vunpack.i.h.bf16 %v10713_v18 }
 0x505   : > { %v8094_v5 = vpack.c.bf16 %v8781_v60, %v8780_v6  ;;  %v8801_v60 = vunpack.i.h.bf16 %v10733_v31  ;;  %v8800_v6 = vunpack.i.l.bf16 %v10733_v31  ;;  %v12092_v31 = vld [vmem:[#allocation60_spill] sm:$0xff] }
 0x509   : > { %7997 = vmatpush3.bf16.xpose.msk.msra.mxu0 %vm9651_vm1, %v7992_v63 }
 0x50a   : > { %8000 = vmatprep.subr.msk.bf16.mxu0 %vm9651_vm1, %v7998_v21 }
 0x510   : > { %v1881_v24 = vpop.permute.xlu1 %1880 }
 0x511   : > { %8003 = vmatpush3.bf16.xpose.msk.msra.mxu0 %vm9651_vm1, %v7998_v21  ;;  %1928 = vst.msk [vmem:[#allocation2 + $0x8] sm:$0xff] %vm1926_vm2, %v1881_v24  ;;  %v1879_v63 = vpop.permute.xlu0 %1878 }
 0x512   : > { %8006 = vmatprep.subr.msk.bf16.mxu0 %vm9651_vm1, %v8004_v20  ;;  %1927 = vst.msk [vmem:[#allocation2] sm:$0xff] %vm1926_vm2, %v1879_v63 }
 0x515   : > { %v1885_v35 = vpop.permute.xlu0 %1884  ;;  %v1883_v30 = vpop.permute.xlu1 %1882 }
 0x516   : > { %1930 = vst.msk [vmem:[#allocation2 + $0x18] sm:$0xff] %vm1926_vm2, %v1885_v35  ;;  %1929 = vst.msk [vmem:[#allocation2 + $0x10] sm:$0xff] %vm1926_vm2, %v1883_v30  ;;  %v8786_v30 = vunpack.i.h.bf16 %v10719_v19  ;;  %v8790_v35 = vunpack.i.l.bf16 %v10725_v27 }
 0x519   : > { %8009 = vmatpush3.bf16.xpose.msk.msra.mxu0 %vm9651_vm1, %v8004_v20  ;;  %v1889_v24 = vpop.permute.xlu0 %1888  ;;  %v1887_v21 = vpop.permute.xlu1 %1886  ;;  %v8785_v20 = vunpack.i.l.bf16 %v10719_v19 }
 0x51a   : > { %8091 = vmatprep.subr.bf16.mxu0 %v8090_v9  ;;  %1932 = vst.msk [vmem:[#allocation2 + $0x28] sm:$0xff] %vm1926_vm2, %v1889_v24  ;;  %1931 = vst.msk [vmem:[#allocation2 + $0x20] sm:$0xff] %vm1926_vm2, %v1887_v21  ;;  %v8795_v24 = vunpack.i.l.bf16 %v10729_v38 }
 0x51d   : > { %v1893_v63 = vpop.permute.xlu0 %1892  ;;  %v1891_v8 = vpop.permute.xlu1 %1890 }
 0x51e   : > { %1934 = vst.msk [vmem:[#allocation2 + $0x38] sm:$0xff] %vm1926_vm2, %v1893_v63  ;;  %1933 = vst.msk [vmem:[#allocation2 + $0x30] sm:$0xff] %vm1926_vm2, %v1891_v8  ;;  %v8791_v8 = vunpack.i.h.bf16 %v10725_v27  ;;  %v12089_v27 = vld [vmem:[#allocation57_spill] sm:$0xff] }
 0x520   : > { %7043 = vmatmul.mubr.msk.f32.vlgmr.msra.gmra.mrb[80].mxu0 %vm977_vm0, %v10398_v41  ;;  %v8098_v41 = vpack.c.bf16 %v8786_v30, %v8785_v20  ;;  %v12091_v30 = vld [vmem:[#allocation59_spill] sm:$0xff] }
 0x521   : > { %7045 = vmatprep.mubr.msk.f32.mxu0 %vm977_vm0, %v10406_v4  ;;  %8093 = vmatpush3.bf16.msra.mxu0 %v8090_v9  ;;  %v1897_v34 = vpop.permute.xlu0 %1896  ;;  %v1895_v18 = vpop.permute.xlu1 %1894  ;;  %v8796_v9 = vunpack.i.h.bf16 %v10729_v38  ;;  %v12090_v38 = vld [vmem:[#allocation58_spill] sm:$0xff] }
 0x522   : > { %8095 = vmatprep.subr.bf16.mxu0 %v8094_v5  ;;  %1936 = vst.msk [vmem:[#allocation2 + $0x48] sm:$0xff] %vm1926_vm2, %v1897_v34  ;;  %1935 = vst.msk [vmem:[#allocation2 + $0x40] sm:$0xff] %vm1926_vm2, %v1895_v18  ;;  %v8805_v34 = vunpack.i.l.bf16 %v10788_v2  ;;  %v8110_v18 = vpack.c.bf16 %v8801_v60, %v8800_v6 }
 0x523   : > { %v8106_v63 = vpack.c.bf16 %v8796_v9, %v8795_v24  ;;  %v8815_v9 = vunpack.i.l.bf16 %v10794_v49 }
 0x524   : > { %7046 = vmatmul.mubr.msk.f32.gmra.mrb[82].mxu0 %vm977_vm0, %v10414_v62  ;;  %v8102_v62 = vpack.c.bf16 %v8791_v8, %v8790_v35  ;;  %v12093_v8 = vld [vmem:[#allocation61_spill] sm:$0xff]  ;;  %v8811_v35 = vunpack.i.h.bf16 %v10784_v54 }
 0x525   : > { %7048 = vmatprep.mubr.msk.f32.mxu0 %vm977_vm0, %v10424_v51  ;;  %8097 = vmatpush3.bf16.msra.mxu0 %v8094_v5  ;;  %v1901_v4 = vpop.permute.xlu0 %1900  ;;  %v1899_v19 = vpop.permute.xlu1 %1898  ;;  %v8806_v5 = vunpack.i.h.bf16 %v10788_v2  ;;  %v8816_v2 = vunpack.i.h.bf16 %v10794_v49 }
 0x526   : > { %8099 = vmatprep.subr.bf16.mxu0 %v8098_v41  ;;  %1938 = vst.msk [vmem:[#allocation2 + $0x58] sm:$0xff] %vm1926_vm2, %v1901_v4  ;;  %1937 = vst.msk [vmem:[#allocation2 + $0x50] sm:$0xff] %vm1926_vm2, %v1899_v19  ;;  %v12094_v4 = vld [vmem:[#allocation62_spill] sm:$0xff] }
 0x527   : > { %v8114_v19 = vpack.c.bf16 %v8806_v5, %v8805_v34  ;;  %v8741_v5 = vunpack.i.h.bf16 %v10593_v26  ;;  %v8740_v34 = vunpack.i.l.bf16 %v10593_v26 }
 0x528   : > { %7049 = vmatmul.mubr.msk.f32.gmra.mrb[84].mxu0 %vm977_vm0, %v12089_v27 }
 0x529   : > { %7051 = vmatprep.mubr.msk.f32.mxu0 %vm977_vm0, %v10434_v15  ;;  %8101 = vmatpush3.bf16.msra.mxu0 %v8098_v41  ;;  %v1905_v51 = vpop.permute.xlu0 %1904  ;;  %v1903_v21 = vpop.permute.xlu1 %1902  ;;  %v8810_v41 = vunpack.i.l.bf16 %v10784_v54  ;;  %v11174_v54 = vpack.c.bf16 %v8816_v2, %v8815_v9 }
 0x52a   : > { %8103 = vmatprep.subr.bf16.mxu0 %v8102_v62  ;;  %1940 = vst.msk [vmem:[#allocation2 + $0x68] sm:$0xff] %vm1926_vm2, %v1905_v51  ;;  %1939 = vst.msk [vmem:[#allocation2 + $0x60] sm:$0xff] %vm1926_vm2, %v1903_v21 }
 0x52b   : > { %v8118_v24 = vpack.c.bf16 %v8811_v35, %v8810_v41 }
 0x52c   : > { %7052 = vmatmul.mubr.msk.f32.gmra.mrb[86].mxu0 %vm977_vm0, %v12090_v38 }
 0x52d   : > { %7054 = vmatprep.mubr.msk.f32.mxu0 %vm977_vm0, %v12091_v30  ;;  %8105 = vmatpush3.bf16.msra.mxu0 %v8102_v62  ;;  %v1909_v15 = vpop.permute.xlu0 %1908  ;;  %v1907_v20 = vpop.permute.xlu1 %1906 }
 0x52e   : > { %8107 = vmatprep.subr.bf16.mxu0 %v8106_v63  ;;  %1942 = vst.msk [vmem:[#allocation2 + $0x78] sm:$0xff] %vm1926_vm2, %v1909_v15  ;;  %1941 = vst.msk [vmem:[#allocation2 + $0x70] sm:$0xff] %vm1926_vm2, %v1907_v20 }
 0x530   : > { %7055 = vmatmul.mubr.msk.f32.gmra.mrb[88].mxu0 %vm977_vm0, %v12092_v31 }
 0x531   : > { %7057 = vmatprep.mubr.msk.f32.mxu0 %vm977_vm0, %v12093_v8  ;;  %8109 = vmatpush3.bf16.msra.mxu0 %v8106_v63  ;;  %v8048_v8 = vpack.c.bf16 %v8741_v5, %v8740_v34 }
 0x532   : > { %8111 = vmatprep.subr.bf16.mxu0 %v8110_v18 }
 0x534   : > { %7058 = vmatmul.mubr.msk.f32.gmra.mrb[90].mxu0 %vm977_vm0, %v12094_v4  ;;  %v8746_v4 = vunpack.i.h.bf16 %v10599_v46 }
 0x535   : > { %7060 = vmatprep.mubr.msk.f32.mxu0 %vm977_vm0, %v10482_v23  ;;  %8113 = vmatpush3.bf16.msra.mxu0 %v8110_v18 }
 0x536   : > { %8115 = vmatprep.subr.bf16.mxu0 %v8114_v19 }
 0x538   : > { %7061 = vmatmul.mubr.msk.f32.gmra.mrb[92].mxu0 %vm977_vm0, %v10486_v10 }
 0x539   : > { %7063 = vmatprep.mubr.msk.f32.mxu0 %vm977_vm0, %v10494_v32  ;;  %8117 = vmatpush3.bf16.msra.mxu0 %v8114_v19  ;;  %v8745_v19 = vunpack.i.l.bf16 %v10599_v46 }
 0x53a   : > { %8119 = vmatprep.subr.bf16.mxu0 %v8118_v24 }
 0x53b   : > { %v8054_v9 = vpack.c.bf16 %v8746_v4, %v8745_v19  ;;  %v8856_v19 = vunpack.i.h.bf16 %v10907_v36 }
 0x53c   : > { %7064 = vmatmul.mubr.msk.f32.gmra.mrb[94].mxu0 %vm977_vm0, %v10504_v47 }
 0x53d   : > { %8121 = vmatpush3.bf16.msra.mxu0 %v8118_v24 }
 0x53e   : > { %8124 = vmatprep.subr.msk.bf16.mxu0 %vm9651_vm1, %v11174_v54 }
 0x5b3   : > { %v6988_v23 = vpop.f32.mrb[64].mxu0 }
 0x5b4   : > { %2427 = vrot.lane.b32.xlu1 %v6988_v23, %s9282_s24  ;;  %v2330_v10 = vpop.f32.mrb[65].mxu0  ;;  %v8751_v23 = vunpack.i.h.bf16 %v10605_v52 }
 0x5b5   : > { %2425 = vrot.lane.b32.xlu0 %v2330_v10, %s9282_s24  ;;  %v8750_v10 = vunpack.i.l.bf16 %v10605_v52 }
 0x5b7   : > { %v6991_v49 = vpop.f32.mrb[66].mxu0 }
 0x5b8   : > { %v2340_v32 = vpop.f32.mrb[67].mxu0 }
 0x5b9   : > { %2431 = vrot.lane.b32.xlu0 %v6991_v49, %s9282_s24  ;;  %2429 = vrot.lane.b32.xlu1 %v2340_v32, %s9282_s24  ;;  %v8060_v32 = vpack.c.bf16 %v8751_v23, %v8750_v10  ;;  %v8861_v10 = vunpack.i.h.bf16 %v10905_v14 }
 0x5bb   : > { %v6994_v27 = vpop.f32.mrb[68].mxu0 }
 0x5bc   : > { %v2350_v62 = vpop.f32.mrb[69].mxu0 }
 0x5bd   : > { %2435 = vrot.lane.b32.xlu0 %v6994_v27, %s9282_s24  ;;  %2433 = vrot.lane.b32.xlu1 %v2350_v62, %s9282_s24 }
 0x5bf   : > { %v6997_v47 = vpop.f32.mrb[70].mxu0 }
 0x5c0   : > { %v2360_v51 = vpop.f32.mrb[71].mxu0 }
 0x5c1   : > { %2439 = vrot.lane.b32.xlu0 %v6997_v47, %s9282_s24  ;;  %2437 = vrot.lane.b32.xlu1 %v2360_v51, %s9282_s24  ;;  %v8756_v47 = vunpack.i.h.bf16 %v10609_v59  ;;  %v8755_v51 = vunpack.i.l.bf16 %v10609_v59 }
 0x5c3   : > { %v7000_v21 = vpop.f32.mrb[72].mxu0 }
 0x5c4   : > { %v2370_v60 = vpop.f32.mrb[73].mxu0 }
 0x5c5   : > { %2443 = vrot.lane.b32.xlu0 %v7000_v21, %s9282_s24  ;;  %2441 = vrot.lane.b32.xlu1 %v2370_v60, %s9282_s24  ;;  %v8066_v60 = vpack.c.bf16 %v8756_v47, %v8755_v51  ;;  %v8871_v51 = vunpack.i.h.bf16 %v10909_v44 }
 0x5c7   : > { %v7003_v6 = vpop.f32.mrb[74].mxu0 }
 0x5c8   : > { %v2380_v38 = vpop.f32.mrb[75].mxu0 }
 0x5c9   : > { %2447 = vrot.lane.b32.xlu0 %v7003_v6, %s9282_s24  ;;  %2445 = vrot.lane.b32.xlu1 %v2380_v38, %s9282_s24 }
 0x5cb   : > { %v7006_v63 = vpop.f32.mrb[76].mxu0 }
 0x5cc   : > { %v2390_v30 = vpop.f32.mrb[77].mxu0 }
 0x5cd   : > { %2451 = vrot.lane.b32.xlu0 %v7006_v63, %s9282_s24  ;;  %2449 = vrot.lane.b32.xlu1 %v2390_v30, %s9282_s24  ;;  %v12095_v63 = vld [vmem:[#allocation19_spill] sm:$0xff] }
 0x5ce   : > { %v8761_v30 = vunpack.i.h.bf16 %v12095_v63 }
 0x5cf   : > { %v7009_v15 = vpop.f32.mrb[78].mxu0 }
 0x5d0   : > { %v2400_v20 = vpop.f32.mrb[79].mxu0 }
 0x5d1   : > { %2455 = vrot.lane.b32.xlu0 %v7009_v15, %s9282_s24  ;;  %2453 = vrot.lane.b32.xlu1 %v2400_v20, %s9282_s24  ;;  %v8760_v15 = vunpack.i.l.bf16 %v12095_v63  ;;  %v12096_v20 = vld [vmem:[#allocation20_spill] sm:$0xff]  ;;  %v8886_v63 = vunpack.i.h.bf16 %v10919_v16 }
 0x5d2   : > { %v8766_v5 = vunpack.i.h.bf16 %v12096_v20  ;;  %v8765_v34 = vunpack.i.l.bf16 %v12096_v20 }
 0x5d3   : > { %v8072_v59 = vpack.c.bf16 %v8761_v30, %v8760_v15  ;;  %v8885_v30 = vunpack.i.l.bf16 %v10919_v16  ;;  %v8895_v16 = vunpack.i.l.bf16 %v10923_v29 }
 0x5d5   : > { %v8194_v15 = vpack.c.bf16 %v8886_v63, %v8885_v30 }
 0x5f3   : > { %v7044_v31 = vpop.f32.mrb[80].mxu0 }
 0x5f4   : > { %v2684_v18 = vpop.f32.mrb[81].mxu0 }
 0x5f5   : > { %7098 = vmatprep.mubr.f32.mxu1 %v2684_v18  ;;  %v12097_v18 = vld [vmem:[#allocation21_spill] sm:$0xff] }
 0x5f6   : > { %7099 = vmatmul.mubr.f32.vlgmr.msra.gmra.mrb[64].mxu1 %v7044_v31  ;;  %v8078_v31 = vpack.c.bf16 %v8766_v5, %v8765_v34 }
 0x5f7   : > { %8047 = vmatpush3.bf16.xpose.msk.msra.mxu1 %vm9651_vm1, %v10886_v57  ;;  %v7047_v35 = vpop.f32.mrb[82].mxu0 }
 0x5f8   : > { %8050 = vmatprep.subr.msk.bf16.mxu1 %vm9651_vm1, %v8048_v8  ;;  %v2694_v41 = vpop.f32.mrb[83].mxu0 }
 0x5f9   : > { %7101 = vmatprep.mubr.f32.mxu1 %v2694_v41 }
 0x5fa   : > { %7102 = vmatmul.mubr.f32.gmra.mrb[66].mxu1 %v7047_v35 }
 0x5fb   : > { %v7050_v26 = vpop.f32.mrb[84].mxu0 }
 0x5fc   : > { %v2704_v2 = vpop.f32.mrb[85].mxu0 }
 0x5fd   : > { %7104 = vmatprep.mubr.f32.mxu1 %v2704_v2 }
 0x5fe   : > { %7105 = vmatmul.mubr.f32.gmra.mrb[68].mxu1 %v7050_v26  ;;  %v8855_v26 = vunpack.i.l.bf16 %v10907_v36  ;;  %v8860_v36 = vunpack.i.l.bf16 %v10905_v14 }
 0x5ff   : > { %8053 = vmatpush3.bf16.xpose.msk.msra.mxu1 %vm9651_vm1, %v8048_v8  ;;  %v7053_v57 = vpop.f32.mrb[86].mxu0  ;;  %v8770_v8 = vunpack.i.l.bf16 %v12097_v18 }
 0x600   : > { %8056 = vmatprep.subr.msk.bf16.mxu1 %vm9651_vm1, %v8054_v9  ;;  %v2714_v24 = vpop.f32.mrb[87].mxu0 }
 0x601   : > { %7107 = vmatprep.mubr.f32.mxu1 %v2714_v24 }
 0x602   : > { %7108 = vmatmul.mubr.f32.gmra.mrb[70].mxu1 %v7053_v57  ;;  %v8170_v57 = vpack.c.bf16 %v8856_v19, %v8855_v26 }
 0x603   : > { %v7056_v46 = vpop.f32.mrb[88].mxu0 }
 0x604   : > { %v2724_v49 = vpop.f32.mrb[89].mxu0 }
 0x605   : > { %7110 = vmatprep.mubr.f32.mxu1 %v2724_v49 }
 0x606   : > { %7111 = vmatmul.mubr.f32.gmra.mrb[72].mxu1 %v7056_v46 }
 0x607   : > { %8059 = vmatpush3.bf16.xpose.msk.msra.mxu1 %vm9651_vm1, %v8054_v9  ;;  %v7059_v27 = vpop.f32.mrb[90].mxu0 }
 0x608   : > { %8062 = vmatprep.subr.msk.bf16.mxu1 %vm9651_vm1, %v8060_v32  ;;  %v2734_v62 = vpop.f32.mrb[91].mxu0 }
 0x609   : > { %7113 = vmatprep.mubr.f32.mxu1 %v2734_v62  ;;  %v8174_v62 = vpack.c.bf16 %v8861_v10, %v8860_v36 }
 0x60a   : > { %7114 = vmatmul.mubr.f32.gmra.mrb[74].mxu1 %v7059_v27  ;;  %v8865_v27 = vunpack.i.l.bf16 %v10911_v53 }
 0x60b   : > { %v7062_v52 = vpop.f32.mrb[92].mxu0 }
 0x60c   : > { %v2744_v21 = vpop.f32.mrb[93].mxu0 }
 0x60d   : > { %7116 = vmatprep.mubr.f32.mxu1 %v2744_v21  ;;  %v8876_v21 = vunpack.i.h.bf16 %v10915_v48 }
 0x60e   : > { %7117 = vmatmul.mubr.f32.gmra.mrb[76].mxu1 %v7062_v52  ;;  %v8870_v52 = vunpack.i.l.bf16 %v10909_v44 }
 0x60f   : > { %8065 = vmatpush3.bf16.xpose.msk.msra.mxu1 %vm9651_vm1, %v8060_v32  ;;  %v7065_v6 = vpop.f32.mrb[94].mxu0  ;;  %v8866_v32 = vunpack.i.h.bf16 %v10911_v53 }
 0x610   : > { %8068 = vmatprep.subr.msk.bf16.mxu1 %vm9651_vm1, %v8066_v60  ;;  %v2754_v38 = vpop.f32.mrb[95].mxu0 }
 0x611   : > { %7119 = vmatprep.mubr.f32.mxu1 %v2754_v38  ;;  %v8880_v38 = vunpack.i.l.bf16 %v10913_v39 }
 0x612   : > { %7120 = vmatmul.mubr.f32.gmra.mrb[78].mxu1 %v7065_v6  ;;  %v8881_v6 = vunpack.i.h.bf16 %v10913_v39  ;;  %v8890_v39 = vunpack.i.l.bf16 %v10917_v58 }
 0x613   : > { %7154 = vmatprep.mubr.msk.f32.mxu1 %vm977_vm0, %v10629_v42  ;;  %v8771_v42 = vunpack.i.h.bf16 %v12097_v18 }
 0x615   : > { %v8084_v35 = vpack.c.bf16 %v8771_v42, %v8770_v8 }
 0x617   : > { %8071 = vmatpush3.bf16.xpose.msk.msra.mxu1 %vm9651_vm1, %v8066_v60  ;;  %v8875_v60 = vunpack.i.l.bf16 %v10915_v48 }
 0x618   : > { %8074 = vmatprep.subr.msk.bf16.mxu1 %vm9651_vm1, %v8072_v59 }
 0x61f   : > { %8077 = vmatpush3.bf16.xpose.msk.msra.mxu1 %vm9651_vm1, %v8072_v59  ;;  %v12098_v59 = vld [vmem:[#allocation51_spill] sm:$0xff] }
 0x620   : > { %8080 = vmatprep.subr.msk.bf16.mxu1 %vm9651_vm1, %v8078_v31 }
 0x626   : > { %v2428_v41 = vpop.permute.xlu1 %2427 }
 0x627   : > { %8083 = vmatpush3.bf16.xpose.msk.msra.mxu1 %vm9651_vm1, %v8078_v31  ;;  %2475 = vst.msk [vmem:[#allocation2 + $0x8] sm:$0xff] %vm2473_vm3, %v2428_v41  ;;  %v2426_v4 = vpop.permute.xlu0 %2425 }
 0x628   : > { %8086 = vmatprep.subr.msk.bf16.mxu1 %vm9651_vm1, %v8084_v35  ;;  %2474 = vst.msk [vmem:[#allocation2] sm:$0xff] %vm2473_vm3, %v2426_v4 }
 0x62b   : > { %v2432_v2 = vpop.permute.xlu0 %2431  ;;  %v2430_v9 = vpop.permute.xlu1 %2429 }
 0x62c   : > { %2477 = vst.msk [vmem:[#allocation2 + $0x18] sm:$0xff] %vm2473_vm3, %v2432_v2  ;;  %2476 = vst.msk [vmem:[#allocation2 + $0x10] sm:$0xff] %vm2473_vm3, %v2430_v9  ;;  %v12100_v9 = vld [vmem:[#allocation23_spill] sm:$0xff] }
 0x62f   : > { %8089 = vmatpush3.bf16.xpose.msk.msra.mxu1 %vm9651_vm1, %v8084_v35  ;;  %v2436_v24 = vpop.permute.xlu0 %2435  ;;  %v2434_v23 = vpop.permute.xlu1 %2433 }
 0x630   : > { %8171 = vmatprep.subr.bf16.mxu1 %v8170_v57  ;;  %2479 = vst.msk [vmem:[#allocation2 + $0x28] sm:$0xff] %vm2473_vm3, %v2436_v24  ;;  %2478 = vst.msk [vmem:[#allocation2 + $0x20] sm:$0xff] %vm2473_vm3, %v2434_v23  ;;  %v8820_v24 = vunpack.i.l.bf16 %v12100_v9 }
 0x633   : > { %v2440_v46 = vpop.permute.xlu0 %2439  ;;  %v2438_v49 = vpop.permute.xlu1 %2437 }
 0x634   : > { %2481 = vst.msk [vmem:[#allocation2 + $0x38] sm:$0xff] %vm2473_vm3, %v2440_v46  ;;  %2480 = vst.msk [vmem:[#allocation2 + $0x30] sm:$0xff] %vm2473_vm3, %v2438_v49 }
 0x636   : > { %7155 = vmatmul.mubr.msk.f32.vlgmr.msra.gmra.mrb[80].mxu1 %vm977_vm0, %v10633_v12  ;;  %v8178_v12 = vpack.c.bf16 %v8866_v32, %v8865_v27  ;;  %v12101_v32 = vld [vmem:[#allocation24_spill] sm:$0xff] }
 0x637   : > { %7157 = vmatprep.mubr.msk.f32.mxu1 %vm977_vm0, %v10639_v33  ;;  %8173 = vmatpush3.bf16.msra.mxu1 %v8170_v57  ;;  %v2444_v47 = vpop.permute.xlu0 %2443  ;;  %v2442_v14 = vpop.permute.xlu1 %2441  ;;  %v8821_v57 = vunpack.i.h.bf16 %v12100_v9  ;;  %v8826_v27 = vunpack.i.h.bf16 %v12101_v32 }
 0x638   : > { %8175 = vmatprep.subr.bf16.mxu1 %v8174_v62  ;;  %2483 = vst.msk [vmem:[#allocation2 + $0x48] sm:$0xff] %vm2473_vm3, %v2444_v47  ;;  %2482 = vst.msk [vmem:[#allocation2 + $0x40] sm:$0xff] %vm2473_vm3, %v2442_v14 }
 0x639   : > { %v8128_v36 = vpack.c.bf16 %v8821_v57, %v8820_v24 }
 0x63a   : > { %7158 = vmatmul.mubr.msk.f32.gmra.mrb[82].mxu1 %vm977_vm0, %v10645_v11  ;;  %v8182_v11 = vpack.c.bf16 %v8871_v51, %v8870_v52 }
 0x63b   : > { %7160 = vmatprep.mubr.msk.f32.mxu1 %vm977_vm0, %v10649_v40  ;;  %8177 = vmatpush3.bf16.msra.mxu1 %v8174_v62  ;;  %v2448_v33 = vpop.permute.xlu0 %2447  ;;  %v2446_v53 = vpop.permute.xlu1 %2445  ;;  %v8825_v62 = vunpack.i.l.bf16 %v12101_v32 }
 0x63c   : > { %8179 = vmatprep.subr.bf16.mxu1 %v8178_v12  ;;  %2485 = vst.msk [vmem:[#allocation2 + $0x58] sm:$0xff] %vm2473_vm3, %v2448_v33  ;;  %2484 = vst.msk [vmem:[#allocation2 + $0x50] sm:$0xff] %vm2473_vm3, %v2446_v53 }
 0x63d   : > { %v8134_v51 = vpack.c.bf16 %v8826_v27, %v8825_v62  ;;  %v12112_v27 = vld [vmem:[#allocation31_spill] sm:$0xff] }
 0x63e   : > { %7161 = vmatmul.mubr.msk.f32.gmra.mrb[84].mxu1 %vm977_vm0, %v10653_v50  ;;  %v8186_v50 = vpack.c.bf16 %v8876_v21, %v8875_v60 }
 0x63f   : > { %7163 = vmatprep.mubr.msk.f32.mxu1 %vm977_vm0, %v10659_v61  ;;  %8181 = vmatpush3.bf16.msra.mxu1 %v8178_v12  ;;  %v2452_v40 = vpop.permute.xlu0 %2451  ;;  %v2450_v44 = vpop.permute.xlu1 %2449  ;;  %v12102_v12 = vld [vmem:[#allocation52_spill] sm:$0xff] }
 0x640   : > { %8183 = vmatprep.subr.bf16.mxu1 %v8182_v11  ;;  %2487 = vst.msk [vmem:[#allocation2 + $0x68] sm:$0xff] %vm2473_vm3, %v2452_v40  ;;  %2486 = vst.msk [vmem:[#allocation2 + $0x60] sm:$0xff] %vm2473_vm3, %v2450_v44  ;;  %v8831_v33 = vunpack.i.h.bf16 %v12102_v12  ;;  %v8830_v53 = vunpack.i.l.bf16 %v12102_v12 }
 0x642   : > { %7164 = vmatmul.mubr.msk.f32.gmra.mrb[86].mxu1 %vm977_vm0, %v10665_v7  ;;  %v8190_v7 = vpack.c.bf16 %v8881_v6, %v8880_v38  ;;  %v12103_v6 = vld [vmem:[#allocation26_spill] sm:$0xff] }
 0x643   : > { %7166 = vmatprep.mubr.msk.f32.mxu1 %vm977_vm0, %v10669_v17  ;;  %8185 = vmatpush3.bf16.msra.mxu1 %v8182_v11  ;;  %v2456_v61 = vpop.permute.xlu0 %2455  ;;  %v2454_v48 = vpop.permute.xlu1 %2453  ;;  %v8891_v17 = vunpack.i.h.bf16 %v10917_v58  ;;  %v12099_v58 = vld [vmem:[#allocation22_spill] sm:$0xff]  ;;  %v8140_v11 = vpack.c.bf16 %v8831_v33, %v8830_v53  ;;  %v8836_v38 = vunpack.i.h.bf16 %v12103_v6  ;;  %v12115_v33 = vld [vmem:[#allocation32_spill] sm:$0xff] }
 0x644   : > { %8187 = vmatprep.subr.bf16.mxu1 %v8186_v50  ;;  %2489 = vst.msk [vmem:[#allocation2 + $0x78] sm:$0xff] %vm2473_vm3, %v2456_v61  ;;  %2488 = vst.msk [vmem:[#allocation2 + $0x70] sm:$0xff] %vm2473_vm3, %v2454_v48 }
 0x646   : > { %7167 = vmatmul.mubr.msk.f32.gmra.mrb[88].mxu1 %vm977_vm0, %v10673_v28  ;;  %v8896_v28 = vunpack.i.h.bf16 %v10923_v29 }
 0x647   : > { %7169 = vmatprep.mubr.msk.f32.mxu1 %vm977_vm0, %v10679_v43  ;;  %8189 = vmatpush3.bf16.msra.mxu1 %v8186_v50  ;;  %v8198_v43 = vpack.c.bf16 %v8891_v17, %v8890_v39  ;;  %v8835_v50 = vunpack.i.l.bf16 %v12103_v6  ;;  %v12104_v17 = vld [vmem:[#allocation25_spill] sm:$0xff] }
 0x648   : > { %8191 = vmatprep.subr.bf16.mxu1 %v8190_v7  ;;  %v8841_v39 = vunpack.i.h.bf16 %v12104_v17 }
 0x649   : > { %v8146_v63 = vpack.c.bf16 %v8836_v38, %v8835_v50  ;;  %v12118_v38 = vld [vmem:[#allocation36_spill] sm:$0xff] }
 0x64a   : > { %7170 = vmatmul.mubr.msk.f32.gmra.mrb[90].mxu1 %vm977_vm0, %v10685_v45  ;;  %v11306_v45 = vpack.c.bf16 %v8896_v28, %v8895_v16  ;;  %v12105_v28 = vld [vmem:[#allocation29_spill] sm:$0xff] }
 0x64b   : > { %7172 = vmatprep.mubr.msk.f32.mxu1 %vm977_vm0, %v10689_v55  ;;  %8193 = vmatpush3.bf16.msra.mxu1 %v8190_v7 }
 0x64c   : > { %8195 = vmatprep.subr.bf16.mxu1 %v8194_v15 }
 0x64e   : > { %7173 = vmatmul.mubr.msk.f32.gmra.mrb[92].mxu1 %vm977_vm0, %v10693_v56 }
 0x64f   : > { %7175 = vmatprep.mubr.msk.f32.mxu1 %vm977_vm0, %v12098_v59  ;;  %8197 = vmatpush3.bf16.msra.mxu1 %v8194_v15  ;;  %v8840_v15 = vunpack.i.l.bf16 %v12104_v17 }
 0x650   : > { %8199 = vmatprep.subr.bf16.mxu1 %v8198_v43 }
 0x651   : > { %v8152_v16 = vpack.c.bf16 %v8841_v39, %v8840_v15  ;;  %v12121_v39 = vld [vmem:[#allocation38_spill] sm:$0xff] }
 0x652   : > { %7176 = vmatmul.mubr.msk.f32.gmra.mrb[94].mxu1 %vm977_vm0, %v12099_v58 }
 0x653   : > { %8201 = vmatpush3.bf16.msra.mxu1 %v8198_v43  ;;  %v12106_v43 = vld [vmem:[#allocation35_spill] sm:$0xff] }
 0x654   : > { %8204 = vmatprep.subr.msk.bf16.mxu1 %vm9651_vm1, %v11306_v45  ;;  %v8846_v59 = vunpack.i.h.bf16 %v12106_v43  ;;  %v8845_v58 = vunpack.i.l.bf16 %v12106_v43 }
 0x6c9   : > { %v7100_v55 = vpop.f32.mrb[64].mxu1 }
 0x6ca   : > { %2974 = vrot.lane.b32.xlu1 %v7100_v55, %s9281_s23  ;;  %v2877_v56 = vpop.f32.mrb[65].mxu1  ;;  %v8158_v55 = vpack.c.bf16 %v8846_v59, %v8845_v58  ;;  %v12123_v58 = vld [vmem:[#allocation37_spill] sm:$0xff] }
 0x6cb   : > { %2972 = vrot.lane.b32.xlu0 %v2877_v56, %s9281_s23  ;;  %v12107_v56 = vld [vmem:[#allocation27_spill] sm:$0xff] }
 0x6cd   : > { %v7103_v29 = vpop.f32.mrb[66].mxu1 }
 0x6ce   : > { %v2887_v20 = vpop.f32.mrb[67].mxu1 }
 0x6cf   : > { %2978 = vrot.lane.b32.xlu0 %v7103_v29, %s9281_s23  ;;  %2976 = vrot.lane.b32.xlu1 %v2887_v20, %s9281_s23  ;;  %v8851_v29 = vunpack.i.h.bf16 %v12107_v56  ;;  %v8850_v20 = vunpack.i.l.bf16 %v12107_v56  ;;  %v12124_v56 = vld [vmem:[#allocation40_spill] sm:$0xff] }
 0x6d1   : > { %v7106_v5 = vpop.f32.mrb[68].mxu1 }
 0x6d2   : > { %v2897_v34 = vpop.f32.mrb[69].mxu1 }
 0x6d3   : > { %2982 = vrot.lane.b32.xlu0 %v7106_v5, %s9281_s23  ;;  %2980 = vrot.lane.b32.xlu1 %v2897_v34, %s9281_s23  ;;  %v8164_v5 = vpack.c.bf16 %v8851_v29, %v8850_v20  ;;  %v12125_v29 = vld [vmem:[#allocation86_spill] sm:$0xff] }
 0x6d4   : > { %v8971_v20 = vunpack.i.h.bf16 %v12125_v29 }
 0x6d5   : > { %v7109_v31 = vpop.f32.mrb[70].mxu1 }
 0x6d6   : > { %v2907_v18 = vpop.f32.mrb[71].mxu1 }
 0x6d7   : > { %2986 = vrot.lane.b32.xlu0 %v7109_v31, %s9281_s23  ;;  %2984 = vrot.lane.b32.xlu1 %v2907_v18, %s9281_s23  ;;  %v12108_v18 = vld [vmem:[#allocation81_spill] sm:$0xff] }
 0x6d9   : > { %v7112_v42 = vpop.f32.mrb[72].mxu1 }
 0x6da   : > { %v2917_v8 = vpop.f32.mrb[73].mxu1 }
 0x6db   : > { %2990 = vrot.lane.b32.xlu0 %v7112_v42, %s9281_s23  ;;  %2988 = vrot.lane.b32.xlu1 %v2917_v8, %s9281_s23  ;;  %v8936_v42 = vunpack.i.h.bf16 %v12108_v18  ;;  %v8935_v8 = vunpack.i.l.bf16 %v12108_v18  ;;  %v12127_v18 = vld [vmem:[#allocation42_spill] sm:$0xff] }
 0x6dd   : > { %v7115_v35 = vpop.f32.mrb[74].mxu1 }
 0x6de   : > { %v2927_v41 = vpop.f32.mrb[75].mxu1 }
 0x6df   : > { %2994 = vrot.lane.b32.xlu0 %v7115_v35, %s9281_s23  ;;  %2992 = vrot.lane.b32.xlu1 %v2927_v41, %s9281_s23 }
 0x6e1   : > { %v7118_v4 = vpop.f32.mrb[76].mxu1 }
 0x6e2   : > { %v2937_v19 = vpop.f32.mrb[77].mxu1 }
 0x6e3   : > { %2998 = vrot.lane.b32.xlu0 %v7118_v4, %s9281_s23  ;;  %2996 = vrot.lane.b32.xlu1 %v2937_v19, %s9281_s23  ;;  %v8250_v4 = vpack.c.bf16 %v8936_v42, %v8935_v8  ;;  %v12128_v42 = vld [vmem:[#allocation89_spill] sm:$0xff] }
 0x6e4   : > { %v8976_v8 = vunpack.i.h.bf16 %v12128_v42 }
 0x6e5   : > { %v7121_v26 = vpop.f32.mrb[78].mxu1 }
 0x6e6   : > { %v2947_v2 = vpop.f32.mrb[79].mxu1 }
 0x6e7   : > { %3002 = vrot.lane.b32.xlu0 %v7121_v26, %s9281_s23  ;;  %3000 = vrot.lane.b32.xlu1 %v2947_v2, %s9281_s23  ;;  %v12109_v2 = vld [vmem:[#allocation80_spill] sm:$0xff] }
 0x6e8   : > { %v8941_v9 = vunpack.i.h.bf16 %v12109_v2  ;;  %v8940_v57 = vunpack.i.l.bf16 %v12109_v2  ;;  %v12131_v2 = vld [vmem:[#allocation43_spill] sm:$0xff] }
 0x6ea   : > { %v8254_v32 = vpack.c.bf16 %v8941_v9, %v8940_v57 }
 0x709   : > { %v7156_v23 = vpop.f32.mrb[80].mxu1 }
 0x70a   : > { %v3231_v10 = vpop.f32.mrb[81].mxu1 }
 0x70b   : > { %7210 = vmatprep.mubr.f32.mxu0 %v3231_v10  ;;  %v12110_v10 = vld [vmem:[#allocation83_spill] sm:$0xff] }
 0x70c   : > { %7211 = vmatmul.mubr.f32.vlgmr.msra.gmra.mrb[96].mxu0 %v7156_v23 }
 0x70d   : > { %8127 = vmatpush3.bf16.xpose.msk.msra.mxu0 %vm9651_vm1, %v11174_v54  ;;  %v7159_v46 = vpop.f32.mrb[82].mxu1 }
 0x70e   : > { %8130 = vmatprep.subr.msk.bf16.mxu0 %vm9651_vm1, %v8128_v36  ;;  %v3241_v49 = vpop.f32.mrb[83].mxu1 }
 0x70f   : > { %7213 = vmatprep.mubr.f32.mxu0 %v3241_v49  ;;  %v12111_v49 = vld [vmem:[#allocation28_spill] sm:$0xff] }
 0x710   : > { %7214 = vmatmul.mubr.f32.gmra.mrb[98].mxu0 %v7159_v46  ;;  %v8945_v46 = vunpack.i.l.bf16 %v12110_v10 }
 0x711   : > { %v7162_v47 = vpop.f32.mrb[84].mxu1 }
 0x712   : > { %v3251_v14 = vpop.f32.mrb[85].mxu1 }
 0x713   : > { %7216 = vmatprep.mubr.f32.mxu0 %v3251_v14  ;;  %v12113_v14 = vld [vmem:[#allocation82_spill] sm:$0xff] }
 0x714   : > { %7217 = vmatmul.mubr.f32.gmra.mrb[100].mxu0 %v7162_v47 }
 0x715   : > { %8133 = vmatpush3.bf16.xpose.msk.msra.mxu0 %vm9651_vm1, %v8128_v36  ;;  %v7165_v54 = vpop.f32.mrb[86].mxu1  ;;  %v8946_v36 = vunpack.i.h.bf16 %v12110_v10 }
 0x716   : > { %8136 = vmatprep.subr.msk.bf16.mxu0 %vm9651_vm1, %v8134_v51  ;;  %v3261_v52 = vpop.f32.mrb[87].mxu1 }
 0x717   : > { %7219 = vmatprep.mubr.f32.mxu0 %v3261_v52  ;;  %v12114_v52 = vld [vmem:[#allocation30_spill] sm:$0xff]  ;;  %v8258_v12 = vpack.c.bf16 %v8946_v36, %v8945_v46 }
 0x718   : > { %7220 = vmatmul.mubr.f32.gmra.mrb[102].mxu0 %v7165_v54  ;;  %v8950_v54 = vunpack.i.l.bf16 %v12113_v14 }
 0x719   : > { %v7168_v21 = vpop.f32.mrb[88].mxu1 }
 0x71a   : > { %v3271_v60 = vpop.f32.mrb[89].mxu1 }
 0x71b   : > { %7222 = vmatprep.mubr.f32.mxu0 %v3271_v60  ;;  %v12116_v60 = vld [vmem:[#allocation85_spill] sm:$0xff] }
 0x71c   : > { %7223 = vmatmul.mubr.f32.gmra.mrb[104].mxu0 %v7168_v21 }
 0x71d   : > { %8139 = vmatpush3.bf16.xpose.msk.msra.mxu0 %vm9651_vm1, %v8134_v51  ;;  %v7171_v40 = vpop.f32.mrb[90].mxu1  ;;  %v8951_v51 = vunpack.i.h.bf16 %v12113_v14 }
 0x71e   : > { %8142 = vmatprep.subr.msk.bf16.mxu0 %vm9651_vm1, %v8140_v11  ;;  %v3281_v44 = vpop.f32.mrb[91].mxu1 }
 0x71f   : > { %7225 = vmatprep.mubr.f32.mxu0 %v3281_v44  ;;  %v12117_v44 = vld [vmem:[#allocation34_spill] sm:$0xff]  ;;  %v8262_v6 = vpack.c.bf16 %v8951_v51, %v8950_v54 }
 0x720   : > { %7226 = vmatmul.mubr.f32.gmra.mrb[106].mxu0 %v7171_v40  ;;  %v8955_v40 = vunpack.i.l.bf16 %v12116_v60 }
 0x721   : > { %v7174_v61 = vpop.f32.mrb[92].mxu1 }
 0x722   : > { %v3291_v48 = vpop.f32.mrb[93].mxu1 }
 0x723   : > { %7228 = vmatprep.mubr.f32.mxu0 %v3291_v48  ;;  %v12119_v48 = vld [vmem:[#allocation84_spill] sm:$0xff] }
 0x724   : > { %7229 = vmatmul.mubr.f32.gmra.mrb[108].mxu0 %v7174_v61 }
 0x725   : > { %8145 = vmatpush3.bf16.xpose.msk.msra.mxu0 %vm9651_vm1, %v8140_v11  ;;  %v7177_v30 = vpop.f32.mrb[94].mxu1  ;;  %v8956_v11 = vunpack.i.h.bf16 %v12116_v60 }
 0x726   : > { %8148 = vmatprep.subr.msk.bf16.mxu0 %vm9651_vm1, %v8146_v63  ;;  %v3301_v7 = vpop.f32.mrb[95].mxu1 }
 0x727   : > { %7231 = vmatprep.mubr.f32.mxu0 %v3301_v7  ;;  %v12120_v7 = vld [vmem:[#allocation33_spill] sm:$0xff]  ;;  %v8266_v17 = vpack.c.bf16 %v8956_v11, %v8955_v40 }
 0x728   : > { %7232 = vmatmul.mubr.f32.gmra.mrb[110].mxu0 %v7177_v30  ;;  %v8960_v30 = vunpack.i.l.bf16 %v12119_v48 }
 0x729   : > { %7266 = vmatprep.mubr.msk.f32.mxu0 %vm977_vm0, %v12105_v28 }
 0x72d   : > { %8151 = vmatpush3.bf16.xpose.msk.msra.mxu0 %vm9651_vm1, %v8146_v63  ;;  %v8961_v63 = vunpack.i.h.bf16 %v12119_v48 }
 0x72e   : > { %8154 = vmatprep.subr.msk.bf16.mxu0 %vm9651_vm1, %v8152_v16 }
 0x735   : > { %8157 = vmatpush3.bf16.xpose.msk.msra.mxu0 %vm9651_vm1, %v8152_v16  ;;  %v12122_v16 = vld [vmem:[#allocation87_spill] sm:$0xff] }
 0x736   : > { %8160 = vmatprep.subr.msk.bf16.mxu0 %vm9651_vm1, %v8158_v55  ;;  %v8966_v43 = vunpack.i.h.bf16 %v12122_v16  ;;  %v8965_v59 = vunpack.i.l.bf16 %v12122_v16 }
 0x73c   : > { %v2975_v34 = vpop.permute.xlu1 %2974 }
 0x73d   : > { %8163 = vmatpush3.bf16.xpose.msk.msra.mxu0 %vm9651_vm1, %v8158_v55  ;;  %3022 = vst.msk [vmem:[#allocation2 + $0x8] sm:$0xff] %vm3020_vm4, %v2975_v34  ;;  %v2973_v31 = vpop.permute.xlu0 %2972  ;;  %v8270_v55 = vpack.c.bf16 %v8961_v63, %v8960_v30  ;;  %v12126_v34 = vld [vmem:[#allocation39_spill] sm:$0xff] }
 0x73e   : > { %8166 = vmatprep.subr.msk.bf16.mxu0 %vm9651_vm1, %v8164_v5  ;;  %3021 = vst.msk [vmem:[#allocation2] sm:$0xff] %vm3020_vm4, %v2973_v31  ;;  %v8274_v31 = vpack.c.bf16 %v8966_v43, %v8965_v59 }
 0x741   : > { %v2979_v35 = vpop.permute.xlu0 %2978  ;;  %v2977_v41 = vpop.permute.xlu1 %2976 }
 0x742   : > { %3024 = vst.msk [vmem:[#allocation2 + $0x18] sm:$0xff] %vm3020_vm4, %v2979_v35  ;;  %3023 = vst.msk [vmem:[#allocation2 + $0x10] sm:$0xff] %vm3020_vm4, %v2977_v41  ;;  %v8975_v35 = vunpack.i.l.bf16 %v12128_v42  ;;  %v12129_v41 = vld [vmem:[#allocation41_spill] sm:$0xff] }
 0x745   : > { %8169 = vmatpush3.bf16.xpose.msk.msra.mxu0 %vm9651_vm1, %v8164_v5  ;;  %v2983_v19 = vpop.permute.xlu0 %2982  ;;  %v2981_v26 = vpop.permute.xlu1 %2980  ;;  %v8970_v5 = vunpack.i.l.bf16 %v12125_v29 }
 0x746   : > { %8251 = vmatprep.subr.bf16.mxu0 %v8250_v4  ;;  %3026 = vst.msk [vmem:[#allocation2 + $0x28] sm:$0xff] %vm3020_vm4, %v2983_v19  ;;  %3025 = vst.msk [vmem:[#allocation2 + $0x20] sm:$0xff] %vm3020_vm4, %v2981_v26  ;;  %v12130_v19 = vld [vmem:[#allocation44_spill] sm:$0xff]  ;;  %v11438_v26 = vpack.c.bf16 %v8976_v8, %v8975_v35  ;;  %v12137_v35 = vld [vmem:[#allocation65_spill] sm:$0xff] }
 0x749   : > { %v2987_v24 = vpop.permute.xlu0 %2986  ;;  %v2985_v23 = vpop.permute.xlu1 %2984 }
 0x74a   : > { %3028 = vst.msk [vmem:[#allocation2 + $0x38] sm:$0xff] %vm3020_vm4, %v2987_v24  ;;  %3027 = vst.msk [vmem:[#allocation2 + $0x30] sm:$0xff] %vm3020_vm4, %v2985_v23 }
 0x74c   : > { %7267 = vmatmul.mubr.msk.f32.vlgmr.msra.gmra.mrb[112].mxu0 %vm977_vm0, %v12111_v49 }
 0x74d   : > { %7269 = vmatprep.mubr.msk.f32.mxu0 %vm977_vm0, %v12112_v27  ;;  %8253 = vmatpush3.bf16.msra.mxu0 %v8250_v4  ;;  %v2991_v62 = vpop.permute.xlu0 %2990  ;;  %v2989_v47 = vpop.permute.xlu1 %2988  ;;  %v8278_v4 = vpack.c.bf16 %v8971_v20, %v8970_v5 }
 0x74e   : > { %8255 = vmatprep.subr.bf16.mxu0 %v8254_v32  ;;  %3030 = vst.msk [vmem:[#allocation2 + $0x48] sm:$0xff] %vm3020_vm4, %v2991_v62  ;;  %3029 = vst.msk [vmem:[#allocation2 + $0x40] sm:$0xff] %vm3020_vm4, %v2989_v47 }
 0x750   : > { %7270 = vmatmul.mubr.msk.f32.gmra.mrb[114].mxu0 %vm977_vm0, %v12114_v52 }
 0x751   : > { %7272 = vmatprep.mubr.msk.f32.mxu0 %vm977_vm0, %v12115_v33  ;;  %8257 = vmatpush3.bf16.msra.mxu0 %v8254_v32  ;;  %v2995_v53 = vpop.permute.xlu0 %2994  ;;  %v2993_v21 = vpop.permute.xlu1 %2992 }
 0x752   : > { %8259 = vmatprep.subr.bf16.mxu0 %v8258_v12  ;;  %3032 = vst.msk [vmem:[#allocation2 + $0x58] sm:$0xff] %vm3020_vm4, %v2995_v53  ;;  %3031 = vst.msk [vmem:[#allocation2 + $0x50] sm:$0xff] %vm3020_vm4, %v2993_v21 }
 0x754   : > { %7273 = vmatmul.mubr.msk.f32.gmra.mrb[116].mxu0 %vm977_vm0, %v12117_v44 }
 0x755   : > { %7275 = vmatprep.mubr.msk.f32.mxu0 %vm977_vm0, %v12118_v38  ;;  %8261 = vmatpush3.bf16.msra.mxu0 %v8258_v12  ;;  %v2999_v50 = vpop.permute.xlu0 %2998  ;;  %v2997_v61 = vpop.permute.xlu1 %2996  ;;  %v12132_v12 = vld [vmem:[#allocation45_spill] sm:$0xff] }
 0x756   : > { %8263 = vmatprep.subr.bf16.mxu0 %v8262_v6  ;;  %3034 = vst.msk [vmem:[#allocation2 + $0x68] sm:$0xff] %vm3020_vm4, %v2999_v50  ;;  %3033 = vst.msk [vmem:[#allocation2 + $0x60] sm:$0xff] %vm3020_vm4, %v2997_v61  ;;  %v8901_v33 = vunpack.i.h.bf16 %v12132_v12  ;;  %v8900_v53 = vunpack.i.l.bf16 %v12132_v12  ;;  %v9026_v12 = vunpack.i.h.bf16 %v11084_v22 }
 0x758   : > { %7276 = vmatmul.mubr.msk.f32.gmra.mrb[118].mxu0 %vm977_vm0, %v12120_v7  ;;  %v8208_v11 = vpack.c.bf16 %v8901_v33, %v8900_v53  ;;  %v12134_v7 = vld [vmem:[#allocation46_spill] sm:$0xff]  ;;  %v9025_v33 = vunpack.i.l.bf16 %v11084_v22  ;;  %v12140_v53 = vld [vmem:[#allocation64_spill] sm:$0xff] }
 0x759   : > { %7278 = vmatprep.mubr.msk.f32.mxu0 %vm977_vm0, %v12121_v39  ;;  %8265 = vmatpush3.bf16.msra.mxu0 %v8262_v6  ;;  %v3003_v15 = vpop.permute.xlu0 %3002  ;;  %v3001_v28 = vpop.permute.xlu1 %3000  ;;  %v12133_v6 = vld [vmem:[#allocation47_spill] sm:$0xff]  ;;  %v8910_v39 = vunpack.i.l.bf16 %v12134_v7  ;;  %v12142_v22 = vld [vmem:[#allocation66_spill] sm:$0xff] }
 0x75a   : > { %8267 = vmatprep.subr.bf16.mxu0 %v8266_v17  ;;  %3036 = vst.msk [vmem:[#allocation2 + $0x78] sm:$0xff] %vm3020_vm4, %v3003_v15  ;;  %3035 = vst.msk [vmem:[#allocation2 + $0x70] sm:$0xff] %vm3020_vm4, %v3001_v28  ;;  %v8906_v38 = vunpack.i.h.bf16 %v12133_v6  ;;  %v8905_v50 = vunpack.i.l.bf16 %v12133_v6 }
 0x75c   : > { %7279 = vmatmul.mubr.msk.f32.gmra.mrb[120].mxu0 %vm977_vm0, %v12123_v58  ;;  %v8214_v63 = vpack.c.bf16 %v8906_v38, %v8905_v50  ;;  %v12135_v58 = vld [vmem:[#allocation49_spill] sm:$0xff]  ;;  %v8338_v38 = vpack.c.bf16 %v9026_v12, %v9025_v33 }
 0x75d   : > { %7281 = vmatprep.mubr.msk.f32.mxu0 %vm977_vm0, %v12124_v56  ;;  %8269 = vmatpush3.bf16.msra.mxu0 %v8266_v17  ;;  %v8911_v17 = vunpack.i.h.bf16 %v12134_v7  ;;  %v8915_v56 = vunpack.i.l.bf16 %v12135_v58  ;;  %v12143_v50 = vld [vmem:[#allocation69_spill] sm:$0xff]  ;;  %v12145_v7 = vld [vmem:[#allocation71_spill] sm:$0xff] }
 0x75e   : > { %8271 = vmatprep.subr.bf16.mxu0 %v8270_v55 }
 0x75f   : > { %v8220_v16 = vpack.c.bf16 %v8911_v17, %v8910_v39  ;;  %v9041_v39 = vunpack.i.h.bf16 %v11092_v3 }
 0x760   : > { %7282 = vmatmul.mubr.msk.f32.gmra.mrb[122].mxu0 %vm977_vm0, %v12126_v34 }
 0x761   : > { %7284 = vmatprep.mubr.msk.f32.mxu0 %vm977_vm0, %v12127_v18  ;;  %8273 = vmatpush3.bf16.msra.mxu0 %v8270_v55  ;;  %v8916_v55 = vunpack.i.h.bf16 %v12135_v58  ;;  %v12136_v18 = vld [vmem:[#allocation48_spill] sm:$0xff]  ;;  %v12148_v58 = vld [vmem:[#allocation109_spill] sm:$0xff] }
 0x762   : > { %8275 = vmatprep.subr.bf16.mxu0 %v8274_v31  ;;  %v8921_v42 = vunpack.i.h.bf16 %v12136_v18  ;;  %v8920_v8 = vunpack.i.l.bf16 %v12136_v18 }
 0x763   : > { %v8226_v5 = vpack.c.bf16 %v8916_v55, %v8915_v56  ;;  %v9046_v55 = vunpack.i.h.bf16 %v12148_v58  ;;  %v9045_v56 = vunpack.i.l.bf16 %v12148_v58 }
 0x764   : > { %7285 = vmatmul.mubr.msk.f32.gmra.mrb[124].mxu0 %vm977_vm0, %v12129_v41  ;;  %v8232_v41 = vpack.c.bf16 %v8921_v42, %v8920_v8  ;;  %v12152_v42 = vld [vmem:[#allocation74_spill] sm:$0xff] }
 0x765   : > { %7287 = vmatprep.mubr.msk.f32.mxu0 %vm977_vm0, %v12130_v19  ;;  %8277 = vmatpush3.bf16.msra.mxu0 %v8274_v31  ;;  %v8354_v8 = vpack.c.bf16 %v9046_v55, %v9045_v56  ;;  %v12161_v56 = vld [vmem:[#allocation92_spill] sm:$0xff] }
 0x766   : > { %8279 = vmatprep.subr.bf16.mxu0 %v8278_v4 }
 0x768   : > { %7288 = vmatmul.mubr.msk.f32.gmra.mrb[126].mxu0 %vm977_vm0, %v12131_v2 }
 0x769   : > { %8281 = vmatpush3.bf16.msra.mxu0 %v8278_v4  ;;  %v12138_v4 = vld [vmem:[#allocation63_spill] sm:$0xff] }
 0x76a   : > { %8284 = vmatprep.subr.msk.bf16.mxu0 %vm9651_vm1, %v11438_v26  ;;  %v8926_v19 = vunpack.i.h.bf16 %v12138_v4  ;;  %v8925_v2 = vunpack.i.l.bf16 %v12138_v4 }
 0x7df   : > { %v7212_v9 = vpop.f32.mrb[96].mxu0 }
 0x7e0   : > { %3521 = vrot.lane.b32.xlu0 %v7212_v9, %s9280_s16  ;;  %v3424_v57 = vpop.f32.mrb[97].mxu0  ;;  %v8238_v9 = vpack.c.bf16 %v8926_v19, %v8925_v2  ;;  %v12155_v19 = vld [vmem:[#allocation79_spill] sm:$0xff]  ;;  %v12156_v2 = vld [vmem:[#allocation78_spill] sm:$0xff] }
 0x7e3   : > { %v7215_v24 = vpop.f32.mrb[98].mxu0 }
 0x7e4   : > { %3519 = vrot.lane.b32.xlu0 %v3424_v57, %s9280_s16  ;;  %v3434_v23 = vpop.f32.mrb[99].mxu0  ;;  %v12139_v57 = vld [vmem:[#allocation50_spill] sm:$0xff] }
 0x7e5   : > { %3523 = vrot.lane.b32.xlu1 %v3434_v23, %s9280_s16  ;;  %v8930_v23 = vunpack.i.l.bf16 %v12139_v57 }
 0x7e7   : > { %v7218_v10 = vpop.f32.mrb[100].mxu0 }
 0x7e8   : > { %3525 = vrot.lane.b32.xlu0 %v7215_v24, %s9280_s16  ;;  %v3444_v36 = vpop.f32.mrb[101].mxu0  ;;  %v8931_v24 = vunpack.i.h.bf16 %v12139_v57 }
 0x7e9   : > { %3527 = vrot.lane.b32.xlu1 %v3444_v36, %s9280_s16 }
 0x7eb   : > { %v7221_v46 = vpop.f32.mrb[102].mxu0 }
 0x7ec   : > { %3529 = vrot.lane.b32.xlu0 %v7218_v10, %s9280_s16  ;;  %v3454_v49 = vpop.f32.mrb[103].mxu0  ;;  %v8244_v10 = vpack.c.bf16 %v8931_v24, %v8930_v23 }
 0x7ed   : > { %3531 = vrot.lane.b32.xlu1 %v3454_v49, %s9280_s16  ;;  %v9015_v49 = vunpack.i.l.bf16 %v11076_v25 }
 0x7ef   : > { %v7224_v32 = vpop.f32.mrb[104].mxu0 }
 0x7f0   : > { %3533 = vrot.lane.b32.xlu0 %v7221_v46, %s9280_s16  ;;  %v3464_v27 = vpop.f32.mrb[105].mxu0  ;;  %v9016_v46 = vunpack.i.h.bf16 %v11076_v25  ;;  %v9020_v25 = vunpack.i.l.bf16 %v11072_v0 }
 0x7f1   : > { %3535 = vrot.lane.b32.xlu1 %v3464_v27, %s9280_s16 }
 0x7f3   : > { %v7227_v62 = vpop.f32.mrb[106].mxu0 }
 0x7f4   : > { %3537 = vrot.lane.b32.xlu0 %v7224_v32, %s9280_s16  ;;  %v3474_v47 = vpop.f32.mrb[107].mxu0 }
 0x7f5   : > { %3539 = vrot.lane.b32.xlu1 %v3474_v47, %s9280_s16  ;;  %v8330_v47 = vpack.c.bf16 %v9016_v46, %v9015_v49 }
 0x7f7   : > { %v7230_v14 = vpop.f32.mrb[108].mxu0 }
 0x7f8   : > { %3541 = vrot.lane.b32.xlu0 %v7227_v62, %s9280_s16  ;;  %v3484_v51 = vpop.f32.mrb[109].mxu0 }
 0x7f9   : > { %3543 = vrot.lane.b32.xlu1 %v3484_v51, %s9280_s16  ;;  %v9021_v51 = vunpack.i.h.bf16 %v11072_v0 }
 0x7fb   : > { %v7233_v54 = vpop.f32.mrb[110].mxu0 }
 0x7fc   : > { %3545 = vrot.lane.b32.xlu0 %v7230_v14, %s9280_s16  ;;  %v3494_v52 = vpop.f32.mrb[111].mxu0 }
 0x7fd   : > { %3549 = vrot.lane.b32.xlu1 %v7233_v54, %s9280_s16 }
 0x801   : > { %3547 = vrot.lane.b32.xlu1 %v3494_v52, %s9280_s16  ;;  %s9284_s16 = smov [#allocation12]  }
 0x802   : > { %s9198_s23 = sshll.u32 %s9284_s16, 4  ;;  %s9199_s23 = int_to_ptr.vmem [resolvable:$false] %s9198_s23 }
 0x803   : > { %s9200_s24 = scalar_lea.vmem %s9199_s23, 4096  ;;  %p9201_p12 = scmp.lt.s32.totalorder %s11792_s26, %s9199_s23 }
 0x81f   : > { %v7268_v21 = vpop.f32.mrb[112].mxu0 }
 0x820   : > { %v3778_v60 = vpop.f32.mrb[113].mxu0 }
 0x821   : > { %7322 = vmatprep.mubr.f32.mxu1 %v3778_v60  ;;  %v8334_v60 = vpack.c.bf16 %v9021_v51, %v9020_v25 }
 0x822   : > { %7323 = vmatmul.mubr.f32.vlgmr.msra.gmra.mrb[96].mxu1 %v7268_v21 }
 0x823   : > { %8207 = vmatpush3.bf16.xpose.msk.msra.mxu1 %vm9651_vm1, %v11306_v45  ;;  %v7271_v40 = vpop.f32.mrb[114].mxu0 }
 0x824   : > { %8210 = vmatprep.subr.msk.bf16.mxu1 %vm9651_vm1, %v8208_v11  ;;  %v3788_v44 = vpop.f32.mrb[115].mxu0 }
 0x825   : > { %7325 = vmatprep.mubr.f32.mxu1 %v3788_v44  ;;  %v9030_v44 = vunpack.i.l.bf16 %v11082_v13 }
 0x826   : > { %7326 = vmatmul.mubr.f32.gmra.mrb[98].mxu1 %v7271_v40  ;;  %v9031_v40 = vunpack.i.h.bf16 %v11082_v13  ;;  %v12144_v13 = vld [vmem:[#allocation68_spill] sm:$0xff] }
 0x827   : > { %v7274_v61 = vpop.f32.mrb[116].mxu0 }
 0x828   : > { %v3798_v48 = vpop.f32.mrb[117].mxu0 }
 0x829   : > { %7328 = vmatprep.mubr.f32.mxu1 %v3798_v48  ;;  %v9036_v48 = vunpack.i.h.bf16 %v11094_v1 }
 0x82a   : > { %7329 = vmatmul.mubr.f32.gmra.mrb[100].mxu1 %v7274_v61 }
 0x82b   : > { %8213 = vmatpush3.bf16.xpose.msk.msra.mxu1 %vm9651_vm1, %v8208_v11  ;;  %v7277_v45 = vpop.f32.mrb[118].mxu0  ;;  %v12141_v11 = vld [vmem:[#allocation67_spill] sm:$0xff] }
 0x82c   : > { %8216 = vmatprep.subr.msk.bf16.mxu1 %vm9651_vm1, %v8214_v63  ;;  %v3808_v30 = vpop.f32.mrb[119].mxu0 }
 0x82d   : > { %7331 = vmatprep.mubr.f32.mxu1 %v3808_v30  ;;  %v8342_v30 = vpack.c.bf16 %v9031_v40, %v9030_v44  ;;  %v12158_v40 = vld [vmem:[#allocation91_spill] sm:$0xff] }
 0x82e   : > { %7332 = vmatmul.mubr.f32.gmra.mrb[102].mxu1 %v7277_v45  ;;  %v8986_v44 = vunpack.i.h.bf16 %v12158_v40 }
 0x82f   : > { %v7280_v15 = vpop.f32.mrb[120].mxu0 }
 0x830   : > { %v3818_v28 = vpop.f32.mrb[121].mxu0 }
 0x831   : > { %7334 = vmatprep.mubr.f32.mxu1 %v3818_v28 }
 0x832   : > { %7335 = vmatmul.mubr.f32.gmra.mrb[104].mxu1 %v7280_v15  ;;  %v9040_v15 = vunpack.i.l.bf16 %v11092_v3  ;;  %v12149_v3 = vld [vmem:[#allocation72_spill] sm:$0xff] }
 0x833   : > { %8219 = vmatpush3.bf16.xpose.msk.msra.mxu1 %vm9651_vm1, %v8214_v63  ;;  %v7283_v43 = vpop.f32.mrb[122].mxu0  ;;  %v9035_v63 = vunpack.i.l.bf16 %v11094_v1  ;;  %v12146_v1 = vld [vmem:[#allocation70_spill] sm:$0xff] }
 0x834   : > { %8222 = vmatprep.subr.msk.bf16.mxu1 %vm9651_vm1, %v8220_v16  ;;  %v3828_v59 = vpop.f32.mrb[123].mxu0 }
 0x835   : > { %7337 = vmatprep.mubr.f32.mxu1 %v3828_v59 }
 0x836   : > { %7338 = vmatmul.mubr.f32.gmra.mrb[106].mxu1 %v7283_v43  ;;  %v12147_v43 = vld [vmem:[#allocation73_spill] sm:$0xff] }
 0x837   : > { %v7286_v29 = vpop.f32.mrb[124].mxu0 }
 0x838   : > { %v3838_v20 = vpop.f32.mrb[125].mxu0 }
 0x839   : > { %7340 = vmatprep.mubr.f32.mxu1 %v3838_v20  ;;  %v12150_v20 = vld [vmem:[#allocation75_spill] sm:$0xff] }
 0x83a   : > { %7341 = vmatmul.mubr.f32.gmra.mrb[108].mxu1 %v7286_v29  ;;  %v8350_v29 = vpack.c.bf16 %v9041_v39, %v9040_v15  ;;  %v12160_v15 = vld [vmem:[#allocation93_spill] sm:$0xff] }
 0x83b   : > { %8225 = vmatpush3.bf16.xpose.msk.msra.mxu1 %vm9651_vm1, %v8220_v16  ;;  %v7289_v34 = vpop.f32.mrb[126].mxu0  ;;  %v8346_v16 = vpack.c.bf16 %v9036_v48, %v9035_v63  ;;  %v12159_v48 = vld [vmem:[#allocation90_spill] sm:$0xff] }
 0x83c   : > { %8228 = vmatprep.subr.msk.bf16.mxu1 %vm9651_vm1, %v8226_v5  ;;  %v3848_v31 = vpop.f32.mrb[127].mxu0  ;;  %v8991_v63 = vunpack.i.h.bf16 %v12159_v48 }
 0x83d   : > { %7343 = vmatprep.mubr.f32.mxu1 %v3848_v31 }
 0x83e   : > { %7344 = vmatmul.mubr.f32.gmra.mrb[110].mxu1 %v7289_v34  ;;  %v12151_v34 = vld [vmem:[#allocation56_spill] sm:$0xff] }
 0x83f   : > { %7378 = vmatprep.mubr.msk.f32.mxu1 %vm977_vm0, %v12137_v35  ;;  %v9051_v31 = vunpack.i.h.bf16 %v12151_v34  ;;  %v9050_v18 = vunpack.i.l.bf16 %v12151_v34  ;;  %v12153_v35 = vld [vmem:[#allocation77_spill] sm:$0xff]  ;;  %v12163_v34 = vld [vmem:[#allocation95_spill] sm:$0xff] }
 0x841   : > { %v8358_v4 = vpack.c.bf16 %v9051_v31, %v9050_v18  ;;  %v9006_v31 = vunpack.i.h.bf16 %v12163_v34  ;;  %v9005_v18 = vunpack.i.l.bf16 %v12163_v34 }
 0x843   : > { %8231 = vmatpush3.bf16.xpose.msk.msra.mxu1 %vm9651_vm1, %v8226_v5 }
 0x844   : > { %8234 = vmatprep.subr.msk.bf16.mxu1 %vm9651_vm1, %v8232_v41 }
 0x84b   : > { %8237 = vmatpush3.bf16.xpose.msk.msra.mxu1 %vm9651_vm1, %v8232_v41  ;;  %v12154_v41 = vld [vmem:[#allocation76_spill] sm:$0xff] }
 0x84c   : > { %8240 = vmatprep.subr.msk.bf16.mxu1 %vm9651_vm1, %v8238_v9 }
 0x852   : > { %v3522_v36 = vpop.permute.xlu0 %3521 }
 0x853   : > { %8243 = vmatpush3.bf16.xpose.msk.msra.mxu1 %vm9651_vm1, %v8238_v9  ;;  %3569 = vst.msk [vmem:[#allocation2 + $0x8] sm:$0xff] %vm3567_vm5, %v3522_v36 }
 0x854   : > { %8246 = vmatprep.subr.msk.bf16.mxu1 %vm9651_vm1, %v8244_v10 }
 0x856   : > { %v3520_v32 = vpop.permute.xlu0 %3519 }
 0x857   : > { %3568 = vst.msk [vmem:[#allocation2] sm:$0xff] %vm3567_vm5, %v3520_v32  ;;  %v3524_v27 = vpop.permute.xlu1 %3523 }
 0x858   : > { %3570 = vst.msk [vmem:[#allocation2 + $0x10] sm:$0xff] %vm3567_vm5, %v3524_v27 }
 0x85a   : > { %v3526_v62 = vpop.permute.xlu0 %3525 }
 0x85b   : > { %8249 = vmatpush3.bf16.xpose.msk.msra.mxu1 %vm9651_vm1, %v8244_v10  ;;  %3571 = vst.msk [vmem:[#allocation2 + $0x18] sm:$0xff] %vm3567_vm5, %v3526_v62  ;;  %v3528_v14 = vpop.permute.xlu1 %3527 }
 0x85c   : > { %8331 = vmatprep.subr.bf16.mxu1 %v8330_v47  ;;  %3572 = vst.msk [vmem:[#allocation2 + $0x20] sm:$0xff] %vm3567_vm5, %v3528_v14 }
 0x85e   : > { %v3530_v54 = vpop.permute.xlu0 %3529 }
 0x85f   : > { %3573 = vst.msk [vmem:[#allocation2 + $0x28] sm:$0xff] %vm3567_vm5, %v3530_v54  ;;  %v3532_v52 = vpop.permute.xlu1 %3531 }
 0x860   : > { %3574 = vst.msk [vmem:[#allocation2 + $0x30] sm:$0xff] %vm3567_vm5, %v3532_v52  ;;  %v12157_v52 = vld [vmem:[#allocation88_spill] sm:$0xff] }
 0x861   : > { %v8981_v12 = vunpack.i.h.bf16 %v12157_v52  ;;  %v8980_v33 = vunpack.i.l.bf16 %v12157_v52 }
 0x862   : > { %7379 = vmatmul.mubr.msk.f32.vlgmr.msra.gmra.mrb[112].mxu1 %vm977_vm0, %v12140_v53  ;;  %v3534_v21 = vpop.permute.xlu0 %3533 }
 0x863   : > { %7381 = vmatprep.mubr.msk.f32.mxu1 %vm977_vm0, %v12141_v11  ;;  %8333 = vmatpush3.bf16.msra.mxu1 %v8330_v47  ;;  %3575 = vst.msk [vmem:[#allocation2 + $0x38] sm:$0xff] %vm3567_vm5, %v3534_v21  ;;  %v3536_v0 = vpop.permute.xlu1 %3535 }
 0x864   : > { %8335 = vmatprep.subr.bf16.mxu1 %v8334_v60  ;;  %3576 = vst.msk [vmem:[#allocation2 + $0x40] sm:$0xff] %vm3567_vm5, %v3536_v0 }
 0x866   : > { %7382 = vmatmul.mubr.msk.f32.gmra.mrb[114].mxu1 %vm977_vm0, %v12142_v22  ;;  %v3538_v6 = vpop.permute.xlu0 %3537  ;;  %v8985_v22 = vunpack.i.l.bf16 %v12158_v40  ;;  %v12176_v40 = vld [vmem:[#allocation107_spill] sm:$0xff] }
 0x867   : > { %7384 = vmatprep.mubr.msk.f32.mxu1 %vm977_vm0, %v12143_v50  ;;  %8337 = vmatpush3.bf16.msra.mxu1 %v8334_v60  ;;  %3577 = vst.msk [vmem:[#allocation2 + $0x48] sm:$0xff] %vm3567_vm5, %v3538_v6  ;;  %v3540_v61 = vpop.permute.xlu1 %3539  ;;  %v8288_v60 = vpack.c.bf16 %v8981_v12, %v8980_v33  ;;  %v12171_v12 = vld [vmem:[#allocation53_spill] sm:$0xff]  ;;  %v12172_v33 = vld [vmem:[#allocation104_spill] sm:$0xff] }
 0x868   : > { %8339 = vmatprep.subr.bf16.mxu1 %v8338_v38  ;;  %3578 = vst.msk [vmem:[#allocation2 + $0x50] sm:$0xff] %vm3567_vm5, %v3540_v61  ;;  %v8294_v50 = vpack.c.bf16 %v8986_v44, %v8985_v22  ;;  %v12177_v44 = vld [vmem:[#allocation54_spill] sm:$0xff]  ;;  %v12178_v22 = vld [vmem:[#allocation108_spill] sm:$0xff] }
 0x86a   : > { %7385 = vmatmul.mubr.msk.f32.gmra.mrb[116].mxu1 %vm977_vm0, %v12144_v13  ;;  %v3542_v45 = vpop.permute.xlu0 %3541  ;;  %v8990_v13 = vunpack.i.l.bf16 %v12159_v48 }
 0x86b   : > { %7387 = vmatprep.mubr.msk.f32.mxu1 %vm977_vm0, %v12145_v7  ;;  %8341 = vmatpush3.bf16.msra.mxu1 %v8338_v38  ;;  %3579 = vst.msk [vmem:[#allocation2 + $0x58] sm:$0xff] %vm3567_vm5, %v3542_v45  ;;  %v3544_v17 = vpop.permute.xlu1 %3543 }
 0x86c   : > { %8343 = vmatprep.subr.bf16.mxu1 %v8342_v30  ;;  %3580 = vst.msk [vmem:[#allocation2 + $0x60] sm:$0xff] %vm3567_vm5, %v3544_v17  ;;  %v8300_v7 = vpack.c.bf16 %v8991_v63, %v8990_v13 }
 0x86e   : > { %7388 = vmatmul.mubr.msk.f32.gmra.mrb[118].mxu1 %vm977_vm0, %v12146_v1  ;;  %v3546_v28 = vpop.permute.xlu0 %3545  ;;  %v8996_v1 = vunpack.i.h.bf16 %v12160_v15 }
 0x86f   : > { %7390 = vmatprep.mubr.msk.f32.mxu1 %vm977_vm0, %v12147_v43  ;;  %8345 = vmatpush3.bf16.msra.mxu1 %v8342_v30  ;;  %3581 = vst.msk [vmem:[#allocation2 + $0x68] sm:$0xff] %vm3567_vm5, %v3546_v28  ;;  %v3550_v59 = vpop.permute.xlu1 %3549  ;;  %v8995_v28 = vunpack.i.l.bf16 %v12160_v15 }
 0x870   : > { %8347 = vmatprep.subr.bf16.mxu1 %v8346_v16  ;;  %3583 = vst.msk [vmem:[#allocation2 + $0x78] sm:$0xff] %vm3567_vm5, %v3550_v59 }
 0x871   : > { %v8306_v59 = vpack.c.bf16 %v8996_v1, %v8995_v28 }
 0x872   : > { %7391 = vmatmul.mubr.msk.f32.gmra.mrb[120].mxu1 %vm977_vm0, %v12149_v3  ;;  %v9001_v3 = vunpack.i.h.bf16 %v12161_v56 }
 0x873   : > { %7393 = vmatprep.mubr.msk.f32.mxu1 %vm977_vm0, %v12150_v20  ;;  %8349 = vmatpush3.bf16.msra.mxu1 %v8346_v16  ;;  %v3548_v5 = vpop.permute.xlu1 %3547  ;;  %v12162_v20 = vld [vmem:[#allocation97_spill] sm:$0xff] }
 0x874   : > { %8351 = vmatprep.subr.bf16.mxu1 %v8350_v29  ;;  %3582 = vst.msk [vmem:[#allocation2 + $0x70] sm:$0xff] %vm3567_vm5, %v3548_v5 }
 0x876   : > { %7394 = vmatmul.mubr.msk.f32.gmra.mrb[122].mxu1 %vm977_vm0, %v12152_v42  ;;  %v8318_v42 = vpack.c.bf16 %v9006_v31, %v9005_v18 }
 0x877   : > { %7396 = vmatprep.mubr.msk.f32.mxu1 %vm977_vm0, %v12153_v35  ;;  %8353 = vmatpush3.bf16.msra.mxu1 %v8350_v29  ;;  %v9000_v29 = vunpack.i.l.bf16 %v12161_v56 }
 0x878   : > { %8355 = vmatprep.subr.bf16.mxu1 %v8354_v8 }
 0x879   : > { %v8312_v5 = vpack.c.bf16 %v9001_v3, %v9000_v29 }
 0x87a   : > { %7397 = vmatmul.mubr.msk.f32.gmra.mrb[124].mxu1 %vm977_vm0, %v12154_v41 }
 0x87b   : > { %7399 = vmatprep.mubr.msk.f32.mxu1 %vm977_vm0, %v12155_v19  ;;  %8357 = vmatpush3.bf16.msra.mxu1 %v8354_v8  ;;  %v12164_v8 = vld [vmem:[#allocation94_spill] sm:$0xff] }
 0x87c   : > { %8359 = vmatprep.subr.bf16.mxu1 %v8358_v4  ;;  %v9011_v35 = vunpack.i.h.bf16 %v12164_v8  ;;  %v9010_v41 = vunpack.i.l.bf16 %v12164_v8 }
 0x87e   : > { %7400 = vmatmul.mubr.msk.f32.gmra.mrb[126].mxu1 %vm977_vm0, %v12156_v2 }
 0x87f   : > { %8361 = vmatpush3.bf16.msra.mxu1 %v8358_v4  ;;  %v8324_v4 = vpack.c.bf16 %v9011_v35, %v9010_v41 }
 0x8f5   : > { %v7324_v9 = vpop.f32.mrb[96].mxu1 }
 0x8f6   : > { %4068 = vrot.lane.b32.xlu0 %v7324_v9, %s9279_s18  ;;  %v3971_v57 = vpop.f32.mrb[97].mxu1 }
 0x8f7   : > { %4066 = vrot.lane.b32.xlu1 %v3971_v57, %s9279_s18 }
 0x8f9   : > { %v7327_v24 = vpop.f32.mrb[98].mxu1 }
 0x8fa   : > { %4072 = vrot.lane.b32.xlu0 %v7327_v24, %s9279_s18  ;;  %v3981_v23 = vpop.f32.mrb[99].mxu1 }
 0x8fb   : > { %4070 = vrot.lane.b32.xlu1 %v3981_v23, %s9279_s18 }
 0x8fd   : > { %v7330_v10 = vpop.f32.mrb[100].mxu1 }
 0x8fe   : > { %4076 = vrot.lane.b32.xlu0 %v7330_v10, %s9279_s18  ;;  %v3991_v36 = vpop.f32.mrb[101].mxu1 }
 0x8ff   : > { %4074 = vrot.lane.b32.xlu1 %v3991_v36, %s9279_s18 }
 0x901   : > { %v7333_v46 = vpop.f32.mrb[102].mxu1 }
 0x902   : > { %4080 = vrot.lane.b32.xlu0 %v7333_v46, %s9279_s18  ;;  %v4001_v49 = vpop.f32.mrb[103].mxu1  ;;  %v12165_v46 = vld [vmem:[#allocation96_spill] sm:$0xff] }
 0x903   : > { %4078 = vrot.lane.b32.xlu1 %v4001_v49, %s9279_s18 }
 0x905   : > { %v7336_v32 = vpop.f32.mrb[104].mxu1 }
 0x906   : > { %4084 = vrot.lane.b32.xlu0 %v7336_v32, %s9279_s18  ;;  %v4011_v27 = vpop.f32.mrb[105].mxu1  ;;  %v12166_v32 = vld [vmem:[#allocation99_spill] sm:$0xff] }
 0x907   : > { %4082 = vrot.lane.b32.xlu1 %v4011_v27, %s9279_s18  ;;  %v12167_v27 = vld [vmem:[#allocation98_spill] sm:$0xff] }
 0x909   : > { %v7339_v62 = vpop.f32.mrb[106].mxu1 }
 0x90a   : > { %4088 = vrot.lane.b32.xlu0 %v7339_v62, %s9279_s18  ;;  %v4021_v47 = vpop.f32.mrb[107].mxu1 }
 0x90b   : > { %4086 = vrot.lane.b32.xlu1 %v4021_v47, %s9279_s18  ;;  %v12168_v47 = vld [vmem:[#allocation101_spill] sm:$0xff] }
 0x90d   : > { %v7342_v14 = vpop.f32.mrb[108].mxu1 }
 0x90e   : > { %4092 = vrot.lane.b32.xlu0 %v7342_v14, %s9279_s18  ;;  %v4031_v51 = vpop.f32.mrb[109].mxu1 }
 0x90f   : > { %4090 = vrot.lane.b32.xlu1 %v4031_v51, %s9279_s18  ;;  %v12169_v51 = vld [vmem:[#allocation100_spill] sm:$0xff] }
 0x911   : > { %v7345_v25 = vpop.f32.mrb[110].mxu1 }
 0x912   : > { %v4041_v54 = vpop.f32.mrb[111].mxu1 }
 0x913   : > { %4096 = vrot.lane.b32.xlu1 %v7345_v25, %s9279_s18  ;;  %4094 = vrot.lane.b32.xlu0 %v4041_v54, %s9279_s18  ;;  %v12170_v54 = vld [vmem:[#allocation102_spill] sm:$0xff]  ;;  %s9194_s18 = scalar_lea.vmem %s11792_s26, 2048 }
 0x914   : > { %p9195_p3 = scmp.ne.s32.totalorder %s11792_s26, %s9194_s18  ;;  %p9202_p1 = scmp.lt.s32.totalorder %s9200_s24, %s9194_s18 }
 0x916   : > { %p9196_p5 = pnand %p9195_p3, %p9508_p10  ;;  %p9203_p2 = por %p9202_p1, %p9201_p12 }
 0x918   : > { %p9197_p7 = pneg %p9196_p5 }
 0x91a   : > { %p9204_p13 = pnand %p9203_p2, %p9197_p7 }
 0x935   : > { %v7380_v53 = vpop.f32.mrb[112].mxu1 }
 0x936   : > { %v4325_v21 = vpop.f32.mrb[113].mxu1 }
 0x937   : > { %7434 = vmatprep.mubr.f32.mxu0 %v4325_v21 }
 0x938   : > { %7435 = vmatmul.mubr.f32.vlgmr.msra.gmra.mrb[128].mxu0 %v7380_v53 }
 0x939   : > { %8287 = vmatpush3.bf16.xpose.msk.msra.mxu0 %vm9651_vm1, %v11438_v26  ;;  %v7383_v11 = vpop.f32.mrb[114].mxu1 }
 0x93a   : > { %8290 = vmatprep.subr.msk.bf16.mxu0 %vm9651_vm1, %v8288_v60  ;;  %v4335_v0 = vpop.f32.mrb[115].mxu1 }
 0x93b   : > { %7437 = vmatprep.mubr.f32.mxu0 %v4335_v0  ;;  %v12175_v0 = vld [vmem:[#allocation105_spill] sm:$0xff] }
 0x93c   : > { %7438 = vmatmul.mubr.f32.gmra.mrb[130].mxu0 %v7383_v11  ;;  %v12174_v11 = vld [vmem:[#allocation106_spill] sm:$0xff] }
 0x93d   : > { %v7386_v6 = vpop.f32.mrb[116].mxu1 }
 0x93e   : > { %v4345_v38 = vpop.f32.mrb[117].mxu1 }
 0x93f   : > { %7440 = vmatprep.mubr.f32.mxu0 %v4345_v38 }
 0x940   : > { %7441 = vmatmul.mubr.f32.gmra.mrb[132].mxu0 %v7386_v6  ;;  %v12179_v6 = vld [vmem:[#allocation55_spill] sm:$0xff] }
 0x941   : > { %8293 = vmatpush3.bf16.xpose.msk.msra.mxu0 %vm9651_vm1, %v8288_v60  ;;  %v7389_v26 = vpop.f32.mrb[118].mxu1  ;;  %v12173_v60 = vld [vmem:[#allocation103_spill] sm:$0xff] }
 0x942   : > { %8296 = vmatprep.subr.msk.bf16.mxu0 %vm9651_vm1, %v8294_v50  ;;  %v4355_v61 = vpop.f32.mrb[119].mxu1 }
 0x943   : > { %7443 = vmatprep.mubr.f32.mxu0 %v4355_v61 }
 0x944   : > { %7444 = vmatmul.mubr.f32.gmra.mrb[134].mxu0 %v7389_v26 }
 0x945   : > { %v7392_v45 = vpop.f32.mrb[120].mxu1 }
 0x946   : > { %v4365_v30 = vpop.f32.mrb[121].mxu1 }
 0x947   : > { %7446 = vmatprep.mubr.f32.mxu0 %v4365_v30 }
 0x948   : > { %7447 = vmatmul.mubr.f32.gmra.mrb[136].mxu0 %v7392_v45 }
 0x949   : > { %8299 = vmatpush3.bf16.xpose.msk.msra.mxu0 %vm9651_vm1, %v8294_v50  ;;  %v7395_v17 = vpop.f32.mrb[122].mxu1 }
 0x94a   : > { %8302 = vmatprep.subr.msk.bf16.mxu0 %vm9651_vm1, %v8300_v7  ;;  %v4375_v39 = vpop.f32.mrb[123].mxu1 }
 0x94b   : > { %7449 = vmatprep.mubr.f32.mxu0 %v4375_v39 }
 0x94c   : > { %7450 = vmatmul.mubr.f32.gmra.mrb[138].mxu0 %v7395_v17 }
 0x94d   : > { %v7398_v16 = vpop.f32.mrb[124].mxu1 }
 0x94e   : > { %v4385_v43 = vpop.f32.mrb[125].mxu1 }
 0x94f   : > { %7452 = vmatprep.mubr.f32.mxu0 %v4385_v43 }
 0x950   : > { %7453 = vmatmul.mubr.f32.gmra.mrb[140].mxu0 %v7398_v16 }
 0x951   : > { %8305 = vmatpush3.bf16.xpose.msk.msra.mxu0 %vm9651_vm1, %v8300_v7  ;;  %v7401_v58 = vpop.f32.mrb[126].mxu1 }
 0x952   : > { %8308 = vmatprep.subr.msk.bf16.mxu0 %vm9651_vm1, %v8306_v59  ;;  %v4395_v55 = vpop.f32.mrb[127].mxu1 }
 0x953   : > { %7455 = vmatprep.mubr.f32.mxu0 %v4395_v55 }
 0x954   : > { %7456 = vmatmul.mubr.f32.gmra.mrb[142].mxu0 %v7401_v58 }
 0x955   : > { %7490 = vmatprep.mubr.msk.f32.mxu0 %vm977_vm0, %v12162_v20 }
 0x959   : > { %8311 = vmatpush3.bf16.xpose.msk.msra.mxu0 %vm9651_vm1, %v8306_v59 }
 0x95a   : > { %8314 = vmatprep.subr.msk.bf16.mxu0 %vm9651_vm1, %v8312_v5 }
 0x961   : > { %8317 = vmatpush3.bf16.xpose.msk.msra.mxu0 %vm9651_vm1, %v8312_v5 }
 0x962   : > { %8320 = vmatprep.subr.msk.bf16.mxu0 %vm9651_vm1, %v8318_v42 }
 0x968   : > { %v4069_v19 = vpop.permute.xlu0 %4068 }
 0x969   : > { %8323 = vmatpush3.bf16.xpose.msk.msra.mxu0 %vm9651_vm1, %v8318_v42  ;;  %4116 = vst.msk [vmem:[#allocation2 + $0x8] sm:$0xff] %vm4114_vm6, %v4069_v19  ;;  %v4067_v2 = vpop.permute.xlu1 %4066 }
 0x96a   : > { %8326 = vmatprep.subr.msk.bf16.mxu0 %vm9651_vm1, %v8324_v4  ;;  %4115 = vst.msk [vmem:[#allocation2] sm:$0xff] %vm4114_vm6, %v4067_v2 }
 0x96c   : > { %v4073_v9 = vpop.permute.xlu0 %4072 }
 0x96d   : > { %4118 = vst.msk [vmem:[#allocation2 + $0x18] sm:$0xff] %vm4114_vm6, %v4073_v9  ;;  %v4071_v57 = vpop.permute.xlu1 %4070 }
 0x96e   : > { %4117 = vst.msk [vmem:[#allocation2 + $0x10] sm:$0xff] %vm4114_vm6, %v4071_v57 }
 0x970   : > { %v4077_v24 = vpop.permute.xlu0 %4076 }
 0x971   : > { %8329 = vmatpush3.bf16.xpose.msk.msra.mxu0 %vm9651_vm1, %v8324_v4  ;;  %4120 = vst.msk [vmem:[#allocation2 + $0x28] sm:$0xff] %vm4114_vm6, %v4077_v24  ;;  %v4075_v23 = vpop.permute.xlu1 %4074 }
 0x972   : > { %4119 = vst.msk [vmem:[#allocation2 + $0x20] sm:$0xff] %vm4114_vm6, %v4075_v23 }
 0x974   : > { %v4081_v10 = vpop.permute.xlu0 %4080 }
 0x975   : > { %4122 = vst.msk [vmem:[#allocation2 + $0x38] sm:$0xff] %vm4114_vm6, %v4081_v10  ;;  %v4079_v36 = vpop.permute.xlu1 %4078 }
 0x976   : > { %4121 = vst.msk [vmem:[#allocation2 + $0x30] sm:$0xff] %vm4114_vm6, %v4079_v36 }
 0x978   : > { %7491 = vmatmul.mubr.msk.f32.vlgmr.msra.gmra.mrb[144].mxu0 %vm977_vm0, %v12165_v46  ;;  %v4085_v49 = vpop.permute.xlu0 %4084 }
 0x979   : > { %7493 = vmatprep.mubr.msk.f32.mxu0 %vm977_vm0, %v12166_v32  ;;  %4124 = vst.msk [vmem:[#allocation2 + $0x48] sm:$0xff] %vm4114_vm6, %v4085_v49  ;;  %v4083_v37 = vpop.permute.xlu1 %4082 }
 0x97a   : > { %4123 = vst.msk [vmem:[#allocation2 + $0x40] sm:$0xff] %vm4114_vm6, %v4083_v37 }
 0x97c   : > { %7494 = vmatmul.mubr.msk.f32.gmra.mrb[146].mxu0 %vm977_vm0, %v12167_v27  ;;  %v4089_v62 = vpop.permute.xlu0 %4088 }
 0x97d   : > { %7496 = vmatprep.mubr.msk.f32.mxu0 %vm977_vm0, %v12168_v47  ;;  %4126 = vst.msk [vmem:[#allocation2 + $0x58] sm:$0xff] %vm4114_vm6, %v4089_v62  ;;  %v4087_v14 = vpop.permute.xlu1 %4086  ;;  %v5257_v47 = vld [vmem:[#allocation11] sm:$0xff] }
 0x97e   : > { %4125 = vst.msk [vmem:[#allocation2 + $0x50] sm:$0xff] %vm4114_vm6, %v4087_v14  ;;  %v5258_v14 = vld [vmem:[#allocation11 + $0x8] sm:$0xff] }
 0x980   : > { %7497 = vmatmul.mubr.msk.f32.gmra.mrb[148].mxu0 %vm977_vm0, %v12169_v51  ;;  %v4093_v25 = vpop.permute.xlu0 %4092  ;;  %v5259_v51 = vld [vmem:[#allocation11 + $0x10] sm:$0xff] }
 0x981   : > { %7499 = vmatprep.mubr.msk.f32.mxu0 %vm977_vm0, %v12170_v54  ;;  %4128 = vst.msk [vmem:[#allocation2 + $0x68] sm:$0xff] %vm4114_vm6, %v4093_v25  ;;  %v4091_v52 = vpop.permute.xlu1 %4090  ;;  %v8362_v25 = vpack.c.bf16 %v5258_v14, %v5257_v47  ;;  %v5260_v54 = vld [vmem:[#allocation11 + $0x18] sm:$0xff] }
 0x982   : > { %4127 = vst.msk [vmem:[#allocation2 + $0x60] sm:$0xff] %vm4114_vm6, %v4091_v52  ;;  %v8366_v52 = vpack.c.bf16 %v5260_v54, %v5259_v51 }
 0x983   : > { %8363 = vmatprep.subr.bf16.mxu1 %v8362_v25 }
 0x984   : > { %7500 = vmatmul.mubr.msk.f32.gmra.mrb[150].mxu0 %vm977_vm0, %v12171_v12  ;;  %v5261_v12 = vld [vmem:[#allocation11 + $0x20] sm:$0xff] }
 0x985   : > { %7502 = vmatprep.mubr.msk.f32.mxu0 %vm977_vm0, %v12172_v33  ;;  %v4097_v53 = vpop.permute.xlu1 %4096  ;;  %v4095_v21 = vpop.permute.xlu0 %4094  ;;  %v5262_v33 = vld [vmem:[#allocation11 + $0x28] sm:$0xff] }
 0x986   : > { %4130 = vst.msk [vmem:[#allocation2 + $0x78] sm:$0xff] %vm4114_vm6, %v4097_v53  ;;  %4129 = vst.msk [vmem:[#allocation2 + $0x70] sm:$0xff] %vm4114_vm6, %v4095_v21  ;;  %v8370_v53 = vpack.c.bf16 %v5262_v33, %v5261_v12  ;;  %v5263_v21 = vld [vmem:[#allocation11 + $0x30] sm:$0xff] }
 0x988   : > { %7503 = vmatmul.mubr.msk.f32.gmra.mrb[152].mxu0 %vm977_vm0, %v12173_v60  ;;  %v5264_v60 = vld [vmem:[#allocation11 + $0x38] sm:$0xff] }
 0x989   : > { %7505 = vmatprep.mubr.msk.f32.mxu0 %vm977_vm0, %v12174_v11  ;;  %v8374_v11 = vpack.c.bf16 %v5264_v60, %v5263_v21 }
 0x98c   : > { %7506 = vmatmul.mubr.msk.f32.gmra.mrb[154].mxu0 %vm977_vm0, %v12175_v0  ;;  %v5265_v0 = vld [vmem:[#allocation11 + $0x40] sm:$0xff] }
 0x98d   : > { %7508 = vmatprep.mubr.msk.f32.mxu0 %vm977_vm0, %v12176_v40  ;;  %v5266_v40 = vld [vmem:[#allocation11 + $0x48] sm:$0xff] }
 0x990   : > { %7509 = vmatmul.mubr.msk.f32.gmra.mrb[156].mxu0 %vm977_vm0, %v12177_v44  ;;  %v8378_v44 = vpack.c.bf16 %v5266_v40, %v5265_v0 }
 0x991   : > { %7511 = vmatprep.mubr.msk.f32.mxu0 %vm977_vm0, %v12178_v22  ;;  %v5267_v22 = vld [vmem:[#allocation11 + $0x50] sm:$0xff] }
 0x994   : > { %7512 = vmatmul.mubr.msk.f32.gmra.mrb[158].mxu0 %vm977_vm0, %v12179_v6  ;;  %v5268_v6 = vld [vmem:[#allocation11 + $0x58] sm:$0xff] }
 0xa0b   : > { %v7436_v38 = vpop.f32.mrb[128].mxu0 }
 0xa0c   : > { %4615 = vrot.lane.b32.xlu0 %v7436_v38, %s9278_s29  ;;  %v4518_v50 = vpop.f32.mrb[129].mxu0  ;;  %v8382_v38 = vpack.c.bf16 %v5268_v6, %v5267_v22 }
 0xa0d   : > { %4613 = vrot.lane.b32.xlu1 %v4518_v50, %s9278_s29  ;;  %v5269_v50 = vld [vmem:[#allocation11 + $0x60] sm:$0xff] }
 0xa0f   : > { %v7439_v26 = vpop.f32.mrb[130].mxu0 }
 0xa10   : > { %4619 = vrot.lane.b32.xlu0 %v7439_v26, %s9278_s29  ;;  %v4528_v61 = vpop.f32.mrb[131].mxu0  ;;  %v5270_v26 = vld [vmem:[#allocation11 + $0x68] sm:$0xff] }
 0xa11   : > { %4617 = vrot.lane.b32.xlu1 %v4528_v61, %s9278_s29  ;;  %v8386_v61 = vpack.c.bf16 %v5270_v26, %v5269_v50 }
 0xa13   : > { %v7442_v48 = vpop.f32.mrb[132].mxu0 }
 0xa14   : > { %4623 = vrot.lane.b32.xlu0 %v7442_v48, %s9278_s29  ;;  %v4538_v63 = vpop.f32.mrb[133].mxu0  ;;  %v5271_v48 = vld [vmem:[#allocation11 + $0x70] sm:$0xff] }
 0xa15   : > { %4621 = vrot.lane.b32.xlu1 %v4538_v63, %s9278_s29  ;;  %v5272_v63 = vld [vmem:[#allocation11 + $0x78] sm:$0xff] }
 0xa17   : > { %v7445_v13 = vpop.f32.mrb[134].mxu0 }
 0xa18   : > { %4627 = vrot.lane.b32.xlu0 %v7445_v13, %s9278_s29  ;;  %v4548_v45 = vpop.f32.mrb[135].mxu0  ;;  %v8390_v13 = vpack.c.bf16 %v5272_v63, %v5271_v48 }
 0xa19   : > { %4625 = vrot.lane.b32.xlu1 %v4548_v45, %s9278_s29 }
 0xa1b   : > { %v7448_v30 = vpop.f32.mrb[136].mxu0 }
 0xa1c   : > { %4631 = vrot.lane.b32.xlu0 %v7448_v30, %s9278_s29  ;;  %v4558_v7 = vpop.f32.mrb[137].mxu0 }
 0xa1d   : > { %4629 = vrot.lane.b32.xlu1 %v4558_v7, %s9278_s29 }
 0xa1f   : > { %v7451_v17 = vpop.f32.mrb[138].mxu0 }
 0xa20   : > { %4635 = vrot.lane.b32.xlu0 %v7451_v17, %s9278_s29  ;;  %v4568_v39 = vpop.f32.mrb[139].mxu0 }
 0xa21   : > { %4633 = vrot.lane.b32.xlu1 %v4568_v39, %s9278_s29 }
 0xa23   : > { %v7454_v15 = vpop.f32.mrb[140].mxu0 }
 0xa24   : > { %4639 = vrot.lane.b32.xlu0 %v7454_v15, %s9278_s29  ;;  %v4578_v1 = vpop.f32.mrb[141].mxu0 }
 0xa25   : > { %4637 = vrot.lane.b32.xlu1 %v4578_v1, %s9278_s29 }
 0xa27   : > { %v11693_v28 = vpop.f32.mrb[142].mxu0 }
 0xa28   : > { %v4588_v16 = vpop.f32.mrb[143].mxu0 }
 0xa29   : > { %4641 = vrot.lane.b32.xlu0 %v4588_v16, %s9278_s29 }
 0xa4b   : > { %v7492_v43 = vpop.f32.mrb[144].mxu0 }
 0xa4c   : > { %v4872_v59 = vpop.f32.mrb[145].mxu0 }
 0xa4d   : > { %7546 = vmatprep.mubr.f32.mxu1 %v4872_v59 }
 0xa4e   : > { %7547 = vmatmul.mubr.f32.vlgmr.msra.gmra.mrb[128].mxu1 %v7492_v43 }
 0xa4f   : > { %v7495_v58 = vpop.f32.mrb[146].mxu0  ;;  %8365 = vmatpush3.bf16.msra.mxu1 %v8362_v25 }
 0xa50   : > { %v4882_v55 = vpop.f32.mrb[147].mxu0  ;;  %8367 = vmatprep.subr.bf16.mxu1 %v8366_v52 }
 0xa51   : > { %7549 = vmatprep.mubr.f32.mxu1 %v4882_v55 }
 0xa52   : > { %7550 = vmatmul.mubr.f32.gmra.mrb[130].mxu1 %v7495_v58 }
 0xa53   : > { %v7498_v56 = vpop.f32.mrb[148].mxu0  ;;  %8369 = vmatpush3.bf16.msra.mxu1 %v8366_v52 }
 0xa54   : > { %v4892_v3 = vpop.f32.mrb[149].mxu0  ;;  %8371 = vmatprep.subr.bf16.mxu1 %v8370_v53 }
 0xa55   : > { %7552 = vmatprep.mubr.f32.mxu1 %v4892_v3 }
 0xa56   : > { %7553 = vmatmul.mubr.f32.gmra.mrb[132].mxu1 %v7498_v56 }
 0xa57   : > { %v7501_v29 = vpop.f32.mrb[150].mxu0  ;;  %8373 = vmatpush3.bf16.msra.mxu1 %v8370_v53 }
 0xa58   : > { %v4902_v20 = vpop.f32.mrb[151].mxu0  ;;  %8375 = vmatprep.subr.bf16.mxu1 %v8374_v11 }
 0xa59   : > { %7555 = vmatprep.mubr.f32.mxu1 %v4902_v20 }
 0xa5a   : > { %7556 = vmatmul.mubr.f32.gmra.mrb[134].mxu1 %v7501_v29 }
 0xa5b   : > { %v7504_v5 = vpop.f32.mrb[152].mxu0  ;;  %8377 = vmatpush3.bf16.msra.mxu1 %v8374_v11 }
 0xa5c   : > { %v4912_v34 = vpop.f32.mrb[153].mxu0  ;;  %8379 = vmatprep.subr.bf16.mxu1 %v8378_v44 }
 0xa5d   : > { %7558 = vmatprep.mubr.f32.mxu1 %v4912_v34 }
 0xa5e   : > { %7559 = vmatmul.mubr.f32.gmra.mrb[136].mxu1 %v7504_v5 }
 0xa5f   : > { %v7507_v31 = vpop.f32.mrb[154].mxu0  ;;  %8381 = vmatpush3.bf16.msra.mxu1 %v8378_v44 }
 0xa60   : > { %v4922_v18 = vpop.f32.mrb[155].mxu0  ;;  %8383 = vmatprep.subr.bf16.mxu1 %v8382_v38 }
 0xa61   : > { %7561 = vmatprep.mubr.f32.mxu1 %v4922_v18 }
 0xa62   : > { %7562 = vmatmul.mubr.f32.gmra.mrb[138].mxu1 %v7507_v31 }
 0xa63   : > { %v7510_v42 = vpop.f32.mrb[156].mxu0  ;;  %8385 = vmatpush3.bf16.msra.mxu1 %v8382_v38 }
 0xa64   : > { %v4932_v8 = vpop.f32.mrb[157].mxu0  ;;  %8387 = vmatprep.subr.bf16.mxu1 %v8386_v61 }
 0xa65   : > { %7564 = vmatprep.mubr.f32.mxu1 %v4932_v8 }
 0xa66   : > { %7565 = vmatmul.mubr.f32.gmra.mrb[140].mxu1 %v7510_v42 }
 0xa67   : > { %v7513_v35 = vpop.f32.mrb[158].mxu0  ;;  %8389 = vmatpush3.bf16.msra.mxu1 %v8386_v61 }
 0xa68   : > { %v4942_v41 = vpop.f32.mrb[159].mxu0  ;;  %8391 = vmatprep.subr.bf16.mxu1 %v8390_v13 }
 0xa69   : > { %7567 = vmatprep.mubr.f32.mxu1 %v4942_v41 }
 0xa6a   : > { %7568 = vmatmul.mubr.f32.gmra.mrb[142].mxu1 %v7513_v35 }
 0xa6b   : > { %8393 = vmatpush3.bf16.msra.mxu1 %v8390_v13 }
 0xa7e   : > { %v4616_v4 = vpop.permute.xlu0 %4615 }
 0xa7f   : > { %4663 = vst.msk [vmem:[#allocation2 + $0x8] sm:$0xff] %vm4661_vm7, %v4616_v4  ;;  %v4614_v19 = vpop.permute.xlu1 %4613 }
 0xa80   : > { %4662 = vst.msk [vmem:[#allocation2] sm:$0xff] %vm4661_vm7, %v4614_v19 }
 0xa82   : > { %v4620_v2 = vpop.permute.xlu0 %4619 }
 0xa83   : > { %4665 = vst.msk [vmem:[#allocation2 + $0x18] sm:$0xff] %vm4661_vm7, %v4620_v2  ;;  %v4618_v9 = vpop.permute.xlu1 %4617 }
 0xa84   : > { %4664 = vst.msk [vmem:[#allocation2 + $0x10] sm:$0xff] %vm4661_vm7, %v4618_v9 }
 0xa86   : > { %v4624_v57 = vpop.permute.xlu0 %4623 }
 0xa87   : > { %4667 = vst.msk [vmem:[#allocation2 + $0x28] sm:$0xff] %vm4661_vm7, %v4624_v57  ;;  %v4622_v24 = vpop.permute.xlu1 %4621 }
 0xa88   : > { %4666 = vst.msk [vmem:[#allocation2 + $0x20] sm:$0xff] %vm4661_vm7, %v4622_v24 }
 0xa8a   : > { %v4628_v23 = vpop.permute.xlu0 %4627 }
 0xa8b   : > { %4669 = vst.msk [vmem:[#allocation2 + $0x38] sm:$0xff] %vm4661_vm7, %v4628_v23  ;;  %v4626_v10 = vpop.permute.xlu1 %4625 }
 0xa8c   : > { %4668 = vst.msk [vmem:[#allocation2 + $0x30] sm:$0xff] %vm4661_vm7, %v4626_v10 }
 0xa8e   : > { %v4632_v36 = vpop.permute.xlu0 %4631 }
 0xa8f   : > { %4671 = vst.msk [vmem:[#allocation2 + $0x48] sm:$0xff] %vm4661_vm7, %v4632_v36  ;;  %v4630_v46 = vpop.permute.xlu1 %4629 }
 0xa90   : > { %4670 = vst.msk [vmem:[#allocation2 + $0x40] sm:$0xff] %vm4661_vm7, %v4630_v46 }
 0xa92   : > { %v4636_v49 = vpop.permute.xlu0 %4635 }
 0xa93   : > { %4673 = vst.msk [vmem:[#allocation2 + $0x58] sm:$0xff] %vm4661_vm7, %v4636_v49  ;;  %v4634_v32 = vpop.permute.xlu1 %4633 }
 0xa94   : > { %4672 = vst.msk [vmem:[#allocation2 + $0x50] sm:$0xff] %vm4661_vm7, %v4634_v32 }
 0xa96   : > { %v4640_v37 = vpop.permute.xlu0 %4639 }
 0xa97   : > { %4675 = vst.msk [vmem:[#allocation2 + $0x68] sm:$0xff] %vm4661_vm7, %v4640_v37  ;;  %v4638_v27 = vpop.permute.xlu1 %4637 }
 0xa98   : > { %4674 = vst.msk [vmem:[#allocation2 + $0x60] sm:$0xff] %vm4661_vm7, %v4638_v27 }
 0xa9b   : > { %v4642_v62 = vpop.permute.xlu0 %4641 }
 0xa9c   : > { %4676 = vst.msk [vmem:[#allocation2 + $0x70] sm:$0xff] %vm4661_vm7, %v4642_v62 }
 0xb21   : > { %v7548_v45 = vpop.f32.mrb[128].mxu1 }
 0xb22   : > { %5162 = vrot.lane.b32.xlu0 %v7548_v45, %s9277_s19  ;;  %v5065_v30 = vpop.f32.mrb[129].mxu1 }
 0xb23   : > { %5160 = vrot.lane.b32.xlu1 %v5065_v30, %s9277_s19  ;;  %v11749_v30 = vld [vmem:[%s11846_s8] ss:$0 sm:$0xff] }
 0xb25   : > { %v7551_v7 = vpop.f32.mrb[130].mxu1 }
 0xb26   : > { %5166 = vrot.lane.b32.xlu0 %v7551_v7, %s9277_s19  ;;  %v5075_v17 = vpop.f32.mrb[131].mxu1 }
 0xb27   : > { %5164 = vrot.lane.b32.xlu1 %v5075_v17, %s9277_s19 }
 0xb29   : > { %v7554_v39 = vpop.f32.mrb[132].mxu1 }
 0xb2a   : > { %5170 = vrot.lane.b32.xlu0 %v7554_v39, %s9277_s19  ;;  %v5085_v15 = vpop.f32.mrb[133].mxu1 }
 0xb2b   : > { %5168 = vrot.lane.b32.xlu1 %v5085_v15, %s9277_s19 }
 0xb2d   : > { %v7557_v1 = vpop.f32.mrb[134].mxu1 }
 0xb2e   : > { %5174 = vrot.lane.b32.xlu0 %v7557_v1, %s9277_s19  ;;  %v5095_v16 = vpop.f32.mrb[135].mxu1 }
 0xb2f   : > { %5172 = vrot.lane.b32.xlu1 %v5095_v16, %s9277_s19 }
 0xb31   : > { %v7560_v43 = vpop.f32.mrb[136].mxu1 }
 0xb32   : > { %5178 = vrot.lane.b32.xlu0 %v7560_v43, %s9277_s19  ;;  %v5105_v59 = vpop.f32.mrb[137].mxu1 }
 0xb33   : > { %5176 = vrot.lane.b32.xlu1 %v5105_v59, %s9277_s19 }
 0xb35   : > { %v7563_v58 = vpop.f32.mrb[138].mxu1 }
 0xb36   : > { %5182 = vrot.lane.b32.xlu0 %v7563_v58, %s9277_s19  ;;  %v5115_v55 = vpop.f32.mrb[139].mxu1 }
 0xb37   : > { %5180 = vrot.lane.b32.xlu1 %v5115_v55, %s9277_s19 }
 0xb39   : > { %v7566_v56 = vpop.f32.mrb[140].mxu1 }
 0xb3a   : > { %5186 = vrot.lane.b32.xlu0 %v7566_v56, %s9277_s19  ;;  %v5125_v3 = vpop.f32.mrb[141].mxu1 }
 0xb3b   : > { %5184 = vrot.lane.b32.xlu1 %v5125_v3, %s9277_s19 }
 0xb3d   : > { %v7569_v29 = vpop.f32.mrb[142].mxu1 }
 0xb3e   : > { %v5135_v20 = vpop.f32.mrb[143].mxu1 }
 0xb3f   : > { %4643 = vrot.lane.b32.xlu1 %v11693_v28, %s9278_s29  ;;  %5188 = vrot.lane.b32.xlu0 %v5135_v20, %s9277_s19  ;;  %s11790_s29 = scalar_lea.hbm %s12180_s20, %s5865_s21 }
 0xb43   : > { %5190 = vrot.lane.b32.xlu1 %v7569_v29, %s9277_s19 }
 0xb94   : > { %v5163_v5 = vpop.permute.xlu0 %5162 }
 0xb95   : > { %5210 = vst.msk [vmem:[#allocation2 + $0x8] sm:$0xff] %vm5208_vm8, %v5163_v5  ;;  %v5161_v34 = vpop.permute.xlu1 %5160 }
 0xb96   : > { %5209 = vst.msk [vmem:[#allocation2] sm:$0xff] %vm5208_vm8, %v5161_v34 }
 0xb98   : > { %v5167_v31 = vpop.permute.xlu0 %5166 }
 0xb99   : > { %5212 = vst.msk [vmem:[#allocation2 + $0x18] sm:$0xff] %vm5208_vm8, %v5167_v31  ;;  %v5165_v18 = vpop.permute.xlu1 %5164 }
 0xb9a   : > { %5211 = vst.msk [vmem:[#allocation2 + $0x10] sm:$0xff] %vm5208_vm8, %v5165_v18 }
 0xb9c   : > { %v5171_v42 = vpop.permute.xlu0 %5170  ;;  %v5226_v8 = vld [vmem:[#allocation2 + $0x8] sm:$0xff] }
 0xb9d   : > { %5214 = vst.msk [vmem:[#allocation2 + $0x28] sm:$0xff] %vm5208_vm8, %v5171_v42  ;;  %v5169_v28 = vpop.permute.xlu1 %5168  ;;  %v5225_v35 = vld [vmem:[#allocation2] sm:$0xff]  ;;  %v5242_v4 = vmax.f32 %v5226_v8, 0.0 }
 0xb9e   : > { %5213 = vst.msk [vmem:[#allocation2 + $0x20] sm:$0xff] %vm5208_vm8, %v5169_v28  ;;  %v5241_v41 = vmax.f32 %v5225_v35, 0.0 }
 0xba0   : > { %v5175_v19 = vpop.permute.xlu0 %5174  ;;  %7602 = vmatprep.mubr.f32.mxu1 %v5241_v41  ;;  %v5228_v2 = vld [vmem:[#allocation2 + $0x18] sm:$0xff] }
 0xba1   : > { %5216 = vst.msk [vmem:[#allocation2 + $0x38] sm:$0xff] %vm5208_vm8, %v5175_v19  ;;  %v5173_v9 = vpop.permute.xlu1 %5172  ;;  %7603 = vmatmul.mubr.f32.vlgmr.msra.gmra.mrb[144].mxu1 %v5242_v4  ;;  %v5227_v57 = vld [vmem:[#allocation2 + $0x10] sm:$0xff]  ;;  %v5244_v23 = vmax.f32 %v5228_v2, 0.0 }
 0xba2   : > { %5215 = vst.msk [vmem:[#allocation2 + $0x30] sm:$0xff] %vm5208_vm8, %v5173_v9  ;;  %v5243_v24 = vmax.f32 %v5227_v57, 0.0 }
 0xba4   : > { %v5179_v10 = vpop.permute.xlu0 %5178  ;;  %7605 = vmatprep.mubr.f32.mxu1 %v5243_v24  ;;  %v5230_v36 = vld [vmem:[#allocation2 + $0x28] sm:$0xff] }
 0xba5   : > { %5218 = vst.msk [vmem:[#allocation2 + $0x48] sm:$0xff] %vm5208_vm8, %v5179_v10  ;;  %v5177_v46 = vpop.permute.xlu1 %5176  ;;  %7606 = vmatmul.mubr.f32.gmra.mrb[146].mxu1 %v5244_v23  ;;  %v5229_v49 = vld [vmem:[#allocation2 + $0x20] sm:$0xff]  ;;  %v5246_v37 = vmax.f32 %v5230_v36, 0.0 }
 0xba6   : > { %5217 = vst.msk [vmem:[#allocation2 + $0x40] sm:$0xff] %vm5208_vm8, %v5177_v46  ;;  %v5245_v32 = vmax.f32 %v5229_v49, 0.0 }
 0xba8   : > { %v5183_v27 = vpop.permute.xlu0 %5182  ;;  %7608 = vmatprep.mubr.f32.mxu1 %v5245_v32  ;;  %v5232_v62 = vld [vmem:[#allocation2 + $0x38] sm:$0xff] }
 0xba9   : > { %5220 = vst.msk [vmem:[#allocation2 + $0x58] sm:$0xff] %vm5208_vm8, %v5183_v27  ;;  %v5181_v47 = vpop.permute.xlu1 %5180  ;;  %7609 = vmatmul.mubr.f32.gmra.mrb[148].mxu1 %v5246_v37  ;;  %v5231_v14 = vld [vmem:[#allocation2 + $0x30] sm:$0xff]  ;;  %v5248_v25 = vmax.f32 %v5232_v62, 0.0 }
 0xbaa   : > { %5219 = vst.msk [vmem:[#allocation2 + $0x50] sm:$0xff] %vm5208_vm8, %v5181_v47  ;;  %v5247_v51 = vmax.f32 %v5231_v14, 0.0 }
 0xbac   : > { %v5187_v54 = vpop.permute.xlu0 %5186  ;;  %7611 = vmatprep.mubr.f32.mxu1 %v5247_v51  ;;  %v5234_v52 = vld [vmem:[#allocation2 + $0x48] sm:$0xff] }
 0xbad   : > { %5222 = vst.msk [vmem:[#allocation2 + $0x68] sm:$0xff] %vm5208_vm8, %v5187_v54  ;;  %v5185_v12 = vpop.permute.xlu1 %5184  ;;  %7612 = vmatmul.mubr.f32.gmra.mrb[150].mxu1 %v5248_v25  ;;  %v5233_v33 = vld [vmem:[#allocation2 + $0x40] sm:$0xff]  ;;  %v5250_v21 = vmax.f32 %v5234_v52, 0.0 }
 0xbae   : > { %5221 = vst.msk [vmem:[#allocation2 + $0x60] sm:$0xff] %vm5208_vm8, %v5185_v12  ;;  %v5249_v53 = vmax.f32 %v5233_v33, 0.0 }
 0xbb0   : > { %7614 = vmatprep.mubr.f32.mxu1 %v5249_v53  ;;  %v5236_v60 = vld [vmem:[#allocation2 + $0x58] sm:$0xff] }
 0xbb1   : > { %v4644_v11 = vpop.permute.xlu1 %4643  ;;  %7615 = vmatmul.mubr.f32.gmra.mrb[152].mxu1 %v5250_v21  ;;  %v5189_v0 = vpop.permute.xlu0 %5188  ;;  %v5235_v40 = vld [vmem:[#allocation2 + $0x50] sm:$0xff]  ;;  %v5252_v22 = vmax.f32 %v5236_v60, 0.0 }
 0xbb2   : > { %4677 = vst.msk [vmem:[#allocation2 + $0x78] sm:$0xff] %vm4661_vm7, %v4644_v11  ;;  %v5251_v44 = vmax.f32 %v5235_v40, 0.0 }
 0xbb3   : > { %5223 = vst.msk [vmem:[#allocation2 + $0x70] sm:$0xff] %vm5208_vm8, %v5189_v0 }
 0xbb4   : > { %7617 = vmatprep.mubr.f32.mxu1 %v5251_v44  ;;  %v5238_v6 = vld [vmem:[#allocation2 + $0x68] sm:$0xff] }
 0xbb5   : > { %7618 = vmatmul.mubr.f32.gmra.mrb[154].mxu1 %v5252_v22  ;;  %v5191_v38 = vpop.permute.xlu1 %5190  ;;  %v5237_v50 = vld [vmem:[#allocation2 + $0x60] sm:$0xff]  ;;  %v5254_v61 = vmax.f32 %v5238_v6, 0.0 }
 0xbb6   : > { %5224 = vst.msk [vmem:[#allocation2 + $0x78] sm:$0xff] %vm5208_vm8, %v5191_v38  ;;  %v5253_v26 = vmax.f32 %v5237_v50, 0.0 }
 0xbb8   : > { %7620 = vmatprep.mubr.f32.mxu1 %v5253_v26 }
 0xbb9   : > { %7621 = vmatmul.mubr.f32.gmra.mrb[156].mxu1 %v5254_v61 }
 0xbba   : > { %v5239_v48 = vld [vmem:[#allocation2 + $0x70] sm:$0xff] }
 0xbbb   : > { %v5255_v63 = vmax.f32 %v5239_v48, 0.0 }
 0xbbd   : > { %7623 = vmatprep.mubr.f32.mxu1 %v5255_v63  ;;  %v5240_v13 = vld [vmem:[#allocation2 + $0x78] sm:$0xff] }
 0xbbe   : > { %v5256_v45 = vmax.f32 %v5240_v13, 0.0 }
 0xbc0   : > { %7624 = vmatmul.mubr.f32.gmra.mrb[158].mxu1 %v5256_v45 }
 0xc74   : > { %v7604_v7 = vpop.f32.mrb[144].mxu1 }
 0xc75   : > { %v5352_v17 = vadd.f32 %v7604_v7, %v11749_v30  ;;  %v5346_v39 = vpop.f32.mrb[145].mxu1 }
 0xc76   : > { %v5347_v15 = vadd.f32 %v11749_v30, %v5346_v39 }
 0xc77   : > { %v5426_v1 = vmax.f32 %v5352_v17, 0.0 }
 0xc78   : > { %v5425_v16 = vmax.f32 %v5347_v15, 0.0  ;;  %v7607_v43 = vpop.f32.mrb[146].mxu1 }
 0xc79   : > { %5442 = vst [vmem:[%s11755_s25 + $0x8] sm:$0xff] %v5426_v1  ;;  %v5362_v59 = vadd.f32 %v7607_v43, %v11749_v30  ;;  %v5356_v58 = vpop.f32.mrb[147].mxu1 }
 0xc7a   : > { %5441 = vst [vmem:[%s11755_s25] sm:$0xff] %v5425_v16  ;;  %v5357_v55 = vadd.f32 %v11749_v30, %v5356_v58 }
 0xc7b   : > { %v5428_v56 = vmax.f32 %v5362_v59, 0.0 }
 0xc7c   : > { %v5427_v3 = vmax.f32 %v5357_v55, 0.0  ;;  %v7610_v29 = vpop.f32.mrb[148].mxu1 }
 0xc7d   : > { %5444 = vst [vmem:[%s11755_s25 + $0x18] sm:$0xff] %v5428_v56  ;;  %v5372_v20 = vadd.f32 %v7610_v29, %v11749_v30  ;;  %v5366_v5 = vpop.f32.mrb[149].mxu1 }
 0xc7e   : > { %5443 = vst [vmem:[%s11755_s25 + $0x10] sm:$0xff] %v5427_v3  ;;  %v5367_v34 = vadd.f32 %v11749_v30, %v5366_v5 }
 0xc7f   : > { %v5430_v31 = vmax.f32 %v5372_v20, 0.0 }
 0xc80   : > { %v5429_v18 = vmax.f32 %v5367_v34, 0.0  ;;  %v7613_v42 = vpop.f32.mrb[150].mxu1 }
 0xc81   : > { %5446 = vst [vmem:[%s11755_s25 + $0x28] sm:$0xff] %v5430_v31  ;;  %v5382_v8 = vadd.f32 %v7613_v42, %v11749_v30  ;;  %v5376_v28 = vpop.f32.mrb[151].mxu1 }
 0xc82   : > { %5445 = vst [vmem:[%s11755_s25 + $0x20] sm:$0xff] %v5429_v18  ;;  %v5377_v35 = vadd.f32 %v11749_v30, %v5376_v28 }
 0xc83   : > { %v5432_v41 = vmax.f32 %v5382_v8, 0.0 }
 0xc84   : > { %v5431_v4 = vmax.f32 %v5377_v35, 0.0  ;;  %v7616_v19 = vpop.f32.mrb[152].mxu1 }
 0xc85   : > { %5448 = vst [vmem:[%s11755_s25 + $0x38] sm:$0xff] %v5432_v41  ;;  %v5392_v2 = vadd.f32 %v7616_v19, %v11749_v30  ;;  %v5386_v9 = vpop.f32.mrb[153].mxu1 }
 0xc86   : > { %5447 = vst [vmem:[%s11755_s25 + $0x30] sm:$0xff] %v5431_v4  ;;  %v5387_v57 = vadd.f32 %v11749_v30, %v5386_v9 }
 0xc87   : > { %v5434_v24 = vmax.f32 %v5392_v2, 0.0 }
 0xc88   : > { %v5433_v23 = vmax.f32 %v5387_v57, 0.0  ;;  %v7619_v10 = vpop.f32.mrb[154].mxu1 }
 0xc89   : > { %5450 = vst [vmem:[%s11755_s25 + $0x48] sm:$0xff] %v5434_v24  ;;  %v5402_v36 = vadd.f32 %v7619_v10, %v11749_v30  ;;  %v5396_v46 = vpop.f32.mrb[155].mxu1 }
 0xc8a   : > { %5449 = vst [vmem:[%s11755_s25 + $0x40] sm:$0xff] %v5433_v23  ;;  %v5397_v49 = vadd.f32 %v11749_v30, %v5396_v46 }
 0xc8b   : > { %v5436_v32 = vmax.f32 %v5402_v36, 0.0 }
 0xc8c   : > { %v5435_v37 = vmax.f32 %v5397_v49, 0.0  ;;  %v7622_v27 = vpop.f32.mrb[156].mxu1 }
 0xc8d   : > { %5452 = vst [vmem:[%s11755_s25 + $0x58] sm:$0xff] %v5436_v32  ;;  %v5412_v62 = vadd.f32 %v7622_v27, %v11749_v30  ;;  %v5406_v47 = vpop.f32.mrb[157].mxu1 }
 0xc8e   : > { %5451 = vst [vmem:[%s11755_s25 + $0x50] sm:$0xff] %v5435_v37  ;;  %v5407_v14 = vadd.f32 %v11749_v30, %v5406_v47 }
 0xc8f   : > { %v5438_v51 = vmax.f32 %v5412_v62, 0.0 }
 0xc90   : > { %v5437_v25 = vmax.f32 %v5407_v14, 0.0 }
 0xc91   : > { %5454 = vst [vmem:[%s11755_s25 + $0x68] sm:$0xff] %v5438_v51 }
 0xc92   : > { %5453 = vst [vmem:[%s11755_s25 + $0x60] sm:$0xff] %v5437_v25 }
 0xc93   : > { %v7625_v54 = vpop.f32.mrb[158].mxu1 }
 0xc94   : > { %v5422_v52 = vadd.f32 %v7625_v54, %v11749_v30  ;;  %v5416_v12 = vpop.f32.mrb[159].mxu1 }
 0xc95   : > { %v5417_v33 = vadd.f32 %v11749_v30, %v5416_v12 }
 0xc96   : > { %v5440_v53 = vmax.f32 %v5422_v52, 0.0 }
 0xc97   : > { %v5439_v21 = vmax.f32 %v5417_v33, 0.0 }
 0xc98   : > { %5456 = vst [vmem:[%s11755_s25 + $0x78] sm:$0xff] %v5440_v53 }
 0xc99   : > { %5455 = vst [vmem:[%s11755_s25 + $0x70] sm:$0xff] %v5439_v21 }
 0xc9a   : > { %9207 = shalt.err (!%p9204_p13)
}
 0xc9b   : > { %s9208_s9 = scalar_lea.hbm %s11790_s29, 2048  ;;  %s9212_s25 = scalar_lea.hbm %s12180_s20, 4096 }
 0xc9c   : > { %p9209_p9 = scmp.ne.s32.totalorder %s11790_s29, %s9208_s9  ;;  %p9213_p4 = scmp.lt.u32.totalorder %s11790_s29, %s12180_s20 }
 0xc9d   : > { %p9214_p8 = scmp.lt.u32.totalorder %s9212_s25, %s9208_s9  ;;  %p9216_p3 = scmp.lt.u32.totalorder %s9208_s9, %s11790_s29 }
 0xc9e   : > { %p9210_p0 = pnand %p9209_p9, %p9508_p10 }
 0xc9f   : > { %p9215_p6 = por %p9214_p8, %p9213_p4 }
 0xca0   : > { %p9211_p11 = pneg %p9210_p0 }
 0xca1   : > { %p9217_p5 = por %p9216_p3, %p9215_p6 }
 0xca3   : > { %p9218_p7 = pnand %p9217_p5, %p9211_p11 }
 0xca5   : > { %9221 = shalt.err (!%p9218_p7)
}
 0xca6   : > { %s9285_s22 = smov 128   ;;  %s9286_s18 = smov 8  }
 0xca7   : > { %8412 = dma.vmem_to_hbm [thread:$0]  (%p9508_p10), %s11792_s26, 2048, %s11790_s29, %s5458_s13, %s9285_s22, %s9285_s22, %s9286_s18  }
 0xca8 PF: > { %s12181_s16 = sld [smem:[#allocation17_spill]]  ;;  %s12182_s23 = sld [smem:[#allocation18_spill]] }
 0xca9   : > { %p12184_p1 = scmp.ge.s32.totalorder %s9268_s12, 2 }
 0xcae   : > { %s5486_s24 = sand.u32 1, %s12181_s16   ;;  %p12183_p12 = scmp.ne.s32.totalorder %s12182_s23, 0 }
 0xcaf   : > { %s5487_s9 = scalar_lea.sflag [#allocation5], %s5486_s24 }
 0xcb0   : > { %p8432_p2 = pnand %p12184_p1, %p12183_p12 }
 0xcb2   : > { %9251 = dma.done.wait (!%p8432_p2), %s5487_s9, 2048  }
 0xcb3   : > { %9253 = vsyncadd (!%p8432_p2), %s5487_s9, 4294965248  ;;  %p24_p13 = scmp.ge.s32.totalorder %s9498_s14, 4   ;;  %s12185_s30 = smov %s9260_s10 }
 0xcb4   : > { %s12186_s10 = smov %s9264_s11  ;;  %s12187_s11 = smov %s9514_s28 }
 0xcb5   : > { %s12188_s12 = smov %s9498_s14  ;;  %26 = sbr.rel (!%p24_p13) target bundleno = 9 (0x9), region = 117 }
 0xcbc   :  { %5492 = vsyncpa [#allocation4], 1 }
 0xcbd   :  { %5494 = vsyncpa [#allocation4 + $0x1], 1 }
 0xcbe   :  { %5495 = vsyncpa [#allocation7], 1 }
 0xcbf   :  { %5496 = vsyncpa [#allocation10], 1 }
 0xcc0   :  { %5497 = vsyncpa [#allocation5], 1 }
 0xcc1   :  { %5499 = vsyncpa [#allocation5 + $0x1], 1 }

</bundles_post_ra>
